<compile_context>
chip_gen: v6e
topology: v6e:2x2x1
jax: 0.10.0
libtpu: 0.0.40
codegen_flags: <defaults>
</compile_context>

<pallas_src>
import jax
import jax.numpy as jnp
from jax.experimental import pallas as pl
from jax.experimental.pallas import tpu as pltpu

EPS = 1e-5  # torch.nn.InstanceNorm2d default eps (affine=False, no running stats)


def _residual_block_kernel(x_ref, w1_ref, b1_ref, w2_ref, b2_ref, o_ref,
                           pad_ref, slab_ref):
    # x_ref:   (1, C, H*W)  one batch element, spatial flattened onto lanes
    # w*_ref:  (C, 9*C)     bf16 matmul weights, column index = (dy*3+dx)*C + cin
    # b*_ref:  (C, 1)       f32 bias
    # o_ref:   (1, C, H*W)  lane-dense output block
    # pad_ref: VMEM (C, H+2, W+2) bf16 — reflection-padded image (reused by both convs)
    # slab_ref:VMEM (9*C, H*W)    bf16 — im2col slab (reused by both convs)
    _, C, HW = x_ref.shape
    _, Hp2, Wp2 = pad_ref.shape
    H, W = Hp2 - 2, Wp2 - 2

    def build_pad(img):
        # img: (C, H, W) value -> reflection-padded (C, H+2, W+2) in VMEM scratch.
        img = img.astype(pad_ref.dtype)
        pad_ref[:, 1:H + 1, 1:W + 1] = img                            # interior
        pad_ref[:, 0:1, 1:W + 1] = img[:, 1:2, :]                     # top reflect (row 1)
        pad_ref[:, H + 1:H + 2, 1:W + 1] = img[:, H - 2:H - 1, :]     # bottom reflect
        pad_ref[:, :, 0:1] = pad_ref[:, :, 2:3]                       # left reflect (corners incl.)
        pad_ref[:, :, W + 1:W + 2] = pad_ref[:, :, W - 1:W]           # right reflect

    def conv_norm(w_ref, b_ref, relu):
        # im2col slab: 9 shifted (C, H, W) windows stacked on the contraction axis.
        for dy in range(3):
            for dx in range(3):
                tap = dy * 3 + dx
                patch = pad_ref[:, dy:dy + H, dx:dx + W]              # (C, H, W) bf16
                slab_ref[tap * C:(tap + 1) * C, :] = patch.reshape(C, HW)
        # Single MXU matmul per conv: (C, 9C) @ (9C, HW) -> (C, HW), f32 accumulation.
        y = jnp.dot(w_ref[...], slab_ref[...],
                    preferred_element_type=jnp.float32)
        y = y + b_ref[...]                                            # bias (C,1) broadcasts on lanes
        # Single-pass instance norm over spatial (lane) axis: var = E[y^2] - mean^2.
        inv_hw = 1.0 / HW
        mean = jnp.sum(y, axis=1, keepdims=True) * inv_hw             # (C, 1)
        mean_sq = jnp.sum(y * y, axis=1, keepdims=True) * inv_hw      # (C, 1)
        var = mean_sq - mean * mean
        y = (y - mean) * jax.lax.rsqrt(var + EPS)
        return jnp.maximum(y, 0.0) if relu else y

    # Conv block 1: pad -> conv -> IN -> ReLU   (x goes straight from VMEM into pad scratch)
    build_pad(x_ref[0].reshape(C, H, W))
    h = conv_norm(w1_ref, b1_ref, relu=True)

    # Conv block 2: pad -> conv -> IN
    build_pad(h.reshape(C, H, W))
    h = conv_norm(w2_ref, b2_ref, relu=False)

    # Residual add: re-read x only here (lane-dense (C, HW) add and store).
    o_ref[0] = (x_ref[0] + h).astype(o_ref.dtype)


def residual_block_forward(x_nchw, w1_oihw, b1, w2_oihw, b2):
    """x_nchw: (N, C, H, W) f32.  Weights in PyTorch OIHW layout (C, C, 3, 3)."""
    N, C, H, W = x_nchw.shape
    HW = H * W
    x_flat = x_nchw.reshape(N, C, HW)                                 # lane-dense spatial axis

    def to_mat(w):
        # (O, I, 3, 3) -> (O, 9*I); column index = (dy*3+dx)*I + i  (matches slab row order)
        return jnp.transpose(w, (0, 2, 3, 1)).reshape(C, 9 * C)

    w1_mat = to_mat(w1_oihw).astype(jnp.bfloat16)
    w2_mat = to_mat(w2_oihw).astype(jnp.bfloat16)
    b1_col = b1.reshape(C, 1).astype(jnp.float32)
    b2_col = b2.reshape(C, 1).astype(jnp.float32)

    kernel = pl.pallas_call(
        _residual_block_kernel,
        out_shape=jax.ShapeDtypeStruct((N, C, HW), x_nchw.dtype),
        grid_spec=pltpu.PrefetchScalarGridSpec(
            num_scalar_prefetch=0,
            grid=(N,),
            in_specs=[
                pl.BlockSpec((1, C, HW), lambda n: (n, 0, 0)),        # x (per batch, flattened)
                pl.BlockSpec((C, 9 * C), lambda n: (0, 0)),           # w1 (full, bf16)
                pl.BlockSpec((C, 1), lambda n: (0, 0)),               # b1
                pl.BlockSpec((C, 9 * C), lambda n: (0, 0)),           # w2
                pl.BlockSpec((C, 1), lambda n: (0, 0)),               # b2
            ],
            out_specs=pl.BlockSpec((1, C, HW), lambda n: (n, 0, 0)),  # lane-dense output
            scratch_shapes=[
                pltpu.VMEM((C, H + 2, W + 2), jnp.bfloat16),          # padded image
                pltpu.VMEM((9 * C, HW), jnp.bfloat16),                # im2col slab
            ],
        ),
        compiler_params=pltpu.CompilerParams(
            dimension_semantics=("parallel",)),                       # batch axis: megacore-shardable
    )
    out_flat = kernel(x_flat, w1_mat, b1_col, w2_mat, b2_col)
    return out_flat.reshape(N, C, H, W)


def _reference_forward(x_nchw, w1, b1, w2, b2):
    """Pure-JAX (f32) reference matching the PyTorch module semantics."""
    def stage(h, w, b, relu):
        hp = jnp.pad(h, ((0, 0), (0, 0), (1, 1), (1, 1)), mode="reflect")
        y = jax.lax.conv_general_dilated(
            hp, w, window_strides=(1, 1), padding="VALID",
            dimension_numbers=("NCHW", "OIHW", "NCHW"))
        y = y + b[None, :, None, None]
        mean = jnp.mean(y, axis=(2, 3), keepdims=True)
        var = jnp.mean(jnp.square(y - mean), axis=(2, 3), keepdims=True)
        y = (y - mean) * jax.lax.rsqrt(var + EPS)
        return jnp.maximum(y, 0.0) if relu else y

    h = stage(x_nchw, w1, b1, True)
    h = stage(h, w2, b2, False)
    return x_nchw + h


if __name__ == "__main__":
    key = jax.random.PRNGKey(0)
    N, C, H, W = 2, 4, 16, 16
    kx, k1, k2, k3, k4 = jax.random.split(key, 5)

    x = jax.random.normal(kx, (N, C, H, W), dtype=jnp.float32)

    # Deterministic synthetic Conv2d(C, C, 3) parameters in PyTorch OIHW layout.
    fan_in = C * 3 * 3
    scale = float(1.0 / (fan_in ** 0.5))
    w1 = jax.random.uniform(k1, (C, C, 3, 3), jnp.float32, -scale, scale)
    b1 = jax.random.uniform(k2, (C,), jnp.float32, -scale, scale)
    w2 = jax.random.uniform(k3, (C, C, 3, 3), jnp.float32, -scale, scale)
    b2 = jax.random.uniform(k4, (C,), jnp.float32, -scale, scale)

    out = residual_block_forward(x, w1, b1, w2, b2)
    out = jax.block_until_ready(out)

    ref = _reference_forward(x, w1, b1, w2, b2)
    assert out.shape == ref.shape == (N, C, H, W)
    max_err = float(jnp.max(jnp.abs(out - ref)))
    # Kernel uses bf16 MXU operands (f32 accumulation) per the perf review; compare against the
    # f32 reference with a correspondingly loosened tolerance.
    assert jnp.allclose(out, ref, atol=2e-2, rtol=2e-2), f"max abs err = {max_err}"

    print("KERNEL_OK")
</pallas_src>

<mosaic_0001>
module attributes {stable_mosaic.version = 11 : i64} {
  func.func @_residual_block_kernel(%arg0: i32, %arg1: memref<1x4x256xf32, #tpu.memory_space<vmem>>, %arg2: memref<4x36xbf16, #tpu.memory_space<vmem>>, %arg3: memref<4x1xf32, #tpu.memory_space<vmem>>, %arg4: memref<4x36xbf16, #tpu.memory_space<vmem>>, %arg5: memref<4x1xf32, #tpu.memory_space<vmem>>, %arg6: memref<1x4x256xf32, #tpu.memory_space<vmem>>, %arg7: memref<4x18x18xbf16, #tpu.memory_space<vmem>>, %arg8: memref<36x256xbf16, #tpu.memory_space<vmem>>) attributes {dimension_semantics = [#tpu.dimension_semantics<parallel>], iteration_bounds = array<i64: 2>, scalar_prefetch = 0 : i64, scratch_operands = 2 : i64, tpu.core_type = #tpu.core_type<tc>, window_params = [{transform_indices = @transform_0, window_bounds = array<i64: 1, 4, 256>}, {pipeline_mode = #tpu.pipeline_mode<synchronous>, transform_indices = @transform_1, window_bounds = array<i64: 4, 36>}, {pipeline_mode = #tpu.pipeline_mode<synchronous>, transform_indices = @transform_2, window_bounds = array<i64: 4, 1>}, {pipeline_mode = #tpu.pipeline_mode<synchronous>, transform_indices = @transform_3, window_bounds = array<i64: 4, 36>}, {pipeline_mode = #tpu.pipeline_mode<synchronous>, transform_indices = @transform_4, window_bounds = array<i64: 4, 1>}, {transform_indices = @transform_5, window_bounds = array<i64: 1, 4, 256>}]} {
    %c0 = arith.constant 0 : index
    %c0_0 = arith.constant 0 : index
    %c0_1 = arith.constant 0 : index
    %0 = vector.load %arg1[%c0, %c0_0, %c0_1] : memref<1x4x256xf32, #tpu.memory_space<vmem>>, vector<1x4x256xf32>
    %1 = vector.shape_cast %0 : vector<1x4x256xf32> to vector<4x256xf32>
    %2 = vector.shape_cast %1 : vector<4x256xf32> to vector<4x16x16xf32>
    %3 = arith.truncf %2 : vector<4x16x16xf32> to vector<4x16x16xbf16>
    %c0_2 = arith.constant 0 : index
    %c1 = arith.constant 1 : index
    %c1_3 = arith.constant 1 : index
    %4 = vector.load %arg7[%c0_2, %c1, %c1_3] : memref<4x18x18xbf16, #tpu.memory_space<vmem>>, vector<4x16x16xbf16>
    tpu.vector_store %arg7[%c0_2, %c1, %c1_3], %3 {strides = array<i32>} : memref<4x18x18xbf16, #tpu.memory_space<vmem>>, vector<4x16x16xbf16>,
    %5 = vector.extract_strided_slice %3 {offsets = [0, 1, 0], sizes = [4, 1, 16], strides = [1, 1, 1]} : vector<4x16x16xbf16> to vector<4x1x16xbf16>
    %c0_4 = arith.constant 0 : index
    %c0_5 = arith.constant 0 : index
    %c1_6 = arith.constant 1 : index
    %6 = vector.load %arg7[%c0_4, %c0_5, %c1_6] : memref<4x18x18xbf16, #tpu.memory_space<vmem>>, vector<4x1x16xbf16>
    tpu.vector_store %arg7[%c0_4, %c0_5, %c1_6], %5 {strides = array<i32>} : memref<4x18x18xbf16, #tpu.memory_space<vmem>>, vector<4x1x16xbf16>,
    %7 = vector.extract_strided_slice %3 {offsets = [0, 14, 0], sizes = [4, 1, 16], strides = [1, 1, 1]} : vector<4x16x16xbf16> to vector<4x1x16xbf16>
    %c0_7 = arith.constant 0 : index
    %c17 = arith.constant 17 : index
    %c1_8 = arith.constant 1 : index
    %8 = vector.load %arg7[%c0_7, %c17, %c1_8] : memref<4x18x18xbf16, #tpu.memory_space<vmem>>, vector<4x1x16xbf16>
    tpu.vector_store %arg7[%c0_7, %c17, %c1_8], %7 {strides = array<i32>} : memref<4x18x18xbf16, #tpu.memory_space<vmem>>, vector<4x1x16xbf16>,
    %c0_9 = arith.constant 0 : index
    %c0_10 = arith.constant 0 : index
    %c2 = arith.constant 2 : index
    %9 = vector.load %arg7[%c0_9, %c0_10, %c2] : memref<4x18x18xbf16, #tpu.memory_space<vmem>>, vector<4x18x1xbf16>
    %c0_11 = arith.constant 0 : index
    %c0_12 = arith.constant 0 : index
    %c0_13 = arith.constant 0 : index
    %10 = vector.load %arg7[%c0_11, %c0_12, %c0_13] : memref<4x18x18xbf16, #tpu.memory_space<vmem>>, vector<4x18x1xbf16>
    tpu.vector_store %arg7[%c0_11, %c0_12, %c0_13], %9 {strides = array<i32>} : memref<4x18x18xbf16, #tpu.memory_space<vmem>>, vector<4x18x1xbf16>,
    %c0_14 = arith.constant 0 : index
    %c0_15 = arith.constant 0 : index
    %c15 = arith.constant 15 : index
    %11 = vector.load %arg7[%c0_14, %c0_15, %c15] : memref<4x18x18xbf16, #tpu.memory_space<vmem>>, vector<4x18x1xbf16>
    %c0_16 = arith.constant 0 : index
    %c0_17 = arith.constant 0 : index
    %c17_18 = arith.constant 17 : index
    %12 = vector.load %arg7[%c0_16, %c0_17, %c17_18] : memref<4x18x18xbf16, #tpu.memory_space<vmem>>, vector<4x18x1xbf16>
    tpu.vector_store %arg7[%c0_16, %c0_17, %c17_18], %11 {strides = array<i32>} : memref<4x18x18xbf16, #tpu.memory_space<vmem>>, vector<4x18x1xbf16>,
    %c0_19 = arith.constant 0 : index
    %c0_20 = arith.constant 0 : index
    %c0_21 = arith.constant 0 : index
    %13 = vector.load %arg7[%c0_19, %c0_20, %c0_21] : memref<4x18x18xbf16, #tpu.memory_space<vmem>>, vector<4x16x16xbf16>
    %14 = vector.shape_cast %13 : vector<4x16x16xbf16> to vector<4x256xbf16>
    %c0_22 = arith.constant 0 : index
    %c0_23 = arith.constant 0 : index
    %15 = vector.load %arg8[%c0_22, %c0_23] : memref<36x256xbf16, #tpu.memory_space<vmem>>, vector<4x256xbf16>
    tpu.vector_store %arg8[%c0_22, %c0_23], %14 {strides = array<i32>} : memref<36x256xbf16, #tpu.memory_space<vmem>>, vector<4x256xbf16>,
    %c0_24 = arith.constant 0 : index
    %c0_25 = arith.constant 0 : index
    %c1_26 = arith.constant 1 : index
    %16 = vector.load %arg7[%c0_24, %c0_25, %c1_26] : memref<4x18x18xbf16, #tpu.memory_space<vmem>>, vector<4x16x16xbf16>
    %17 = vector.shape_cast %16 : vector<4x16x16xbf16> to vector<4x256xbf16>
    %c4 = arith.constant 4 : index
    %c0_27 = arith.constant 0 : index
    %18 = vector.load %arg8[%c4, %c0_27] : memref<36x256xbf16, #tpu.memory_space<vmem>>, vector<4x256xbf16>
    tpu.vector_store %arg8[%c4, %c0_27], %17 {strides = array<i32>} : memref<36x256xbf16, #tpu.memory_space<vmem>>, vector<4x256xbf16>,
    %c0_28 = arith.constant 0 : index
    %c0_29 = arith.constant 0 : index
    %c2_30 = arith.constant 2 : index
    %19 = vector.load %arg7[%c0_28, %c0_29, %c2_30] : memref<4x18x18xbf16, #tpu.memory_space<vmem>>, vector<4x16x16xbf16>
    %20 = vector.shape_cast %19 : vector<4x16x16xbf16> to vector<4x256xbf16>
    %c8 = arith.constant 8 : index
    %c0_31 = arith.constant 0 : index
    %21 = vector.load %arg8[%c8, %c0_31] : memref<36x256xbf16, #tpu.memory_space<vmem>>, vector<4x256xbf16>
    tpu.vector_store %arg8[%c8, %c0_31], %20 {strides = array<i32>} : memref<36x256xbf16, #tpu.memory_space<vmem>>, vector<4x256xbf16>,
    %c0_32 = arith.constant 0 : index
    %c1_33 = arith.constant 1 : index
    %c0_34 = arith.constant 0 : index
    %22 = vector.load %arg7[%c0_32, %c1_33, %c0_34] : memref<4x18x18xbf16, #tpu.memory_space<vmem>>, vector<4x16x16xbf16>
    %23 = vector.shape_cast %22 : vector<4x16x16xbf16> to vector<4x256xbf16>
    %c12 = arith.constant 12 : index
    %c0_35 = arith.constant 0 : index
    %24 = vector.load %arg8[%c12, %c0_35] : memref<36x256xbf16, #tpu.memory_space<vmem>>, vector<4x256xbf16>
    tpu.vector_store %arg8[%c12, %c0_35], %23 {strides = array<i32>} : memref<36x256xbf16, #tpu.memory_space<vmem>>, vector<4x256xbf16>,
    %c0_36 = arith.constant 0 : index
    %c1_37 = arith.constant 1 : index
    %c1_38 = arith.constant 1 : index
    %25 = vector.load %arg7[%c0_36, %c1_37, %c1_38] : memref<4x18x18xbf16, #tpu.memory_space<vmem>>, vector<4x16x16xbf16>
    %26 = vector.shape_cast %25 : vector<4x16x16xbf16> to vector<4x256xbf16>
    %c16 = arith.constant 16 : index
    %c0_39 = arith.constant 0 : index
    %27 = vector.load %arg8[%c16, %c0_39] : memref<36x256xbf16, #tpu.memory_space<vmem>>, vector<4x256xbf16>
    tpu.vector_store %arg8[%c16, %c0_39], %26 {strides = array<i32>} : memref<36x256xbf16, #tpu.memory_space<vmem>>, vector<4x256xbf16>,
    %c0_40 = arith.constant 0 : index
    %c1_41 = arith.constant 1 : index
    %c2_42 = arith.constant 2 : index
    %28 = vector.load %arg7[%c0_40, %c1_41, %c2_42] : memref<4x18x18xbf16, #tpu.memory_space<vmem>>, vector<4x16x16xbf16>
    %29 = vector.shape_cast %28 : vector<4x16x16xbf16> to vector<4x256xbf16>
    %c20 = arith.constant 20 : index
    %c0_43 = arith.constant 0 : index
    %30 = vector.load %arg8[%c20, %c0_43] : memref<36x256xbf16, #tpu.memory_space<vmem>>, vector<4x256xbf16>
    tpu.vector_store %arg8[%c20, %c0_43], %29 {strides = array<i32>} : memref<36x256xbf16, #tpu.memory_space<vmem>>, vector<4x256xbf16>,
    %c0_44 = arith.constant 0 : index
    %c2_45 = arith.constant 2 : index
    %c0_46 = arith.constant 0 : index
    %31 = vector.load %arg7[%c0_44, %c2_45, %c0_46] : memref<4x18x18xbf16, #tpu.memory_space<vmem>>, vector<4x16x16xbf16>
    %32 = vector.shape_cast %31 : vector<4x16x16xbf16> to vector<4x256xbf16>
    %c24 = arith.constant 24 : index
    %c0_47 = arith.constant 0 : index
    %33 = vector.load %arg8[%c24, %c0_47] : memref<36x256xbf16, #tpu.memory_space<vmem>>, vector<4x256xbf16>
    tpu.vector_store %arg8[%c24, %c0_47], %32 {strides = array<i32>} : memref<36x256xbf16, #tpu.memory_space<vmem>>, vector<4x256xbf16>,
    %c0_48 = arith.constant 0 : index
    %c2_49 = arith.constant 2 : index
    %c1_50 = arith.constant 1 : index
    %34 = vector.load %arg7[%c0_48, %c2_49, %c1_50] : memref<4x18x18xbf16, #tpu.memory_space<vmem>>, vector<4x16x16xbf16>
    %35 = vector.shape_cast %34 : vector<4x16x16xbf16> to vector<4x256xbf16>
    %c28 = arith.constant 28 : index
    %c0_51 = arith.constant 0 : index
    %36 = vector.load %arg8[%c28, %c0_51] : memref<36x256xbf16, #tpu.memory_space<vmem>>, vector<4x256xbf16>
    tpu.vector_store %arg8[%c28, %c0_51], %35 {strides = array<i32>} : memref<36x256xbf16, #tpu.memory_space<vmem>>, vector<4x256xbf16>,
    %c0_52 = arith.constant 0 : index
    %c2_53 = arith.constant 2 : index
    %c2_54 = arith.constant 2 : index
    %37 = vector.load %arg7[%c0_52, %c2_53, %c2_54] : memref<4x18x18xbf16, #tpu.memory_space<vmem>>, vector<4x16x16xbf16>
    %38 = vector.shape_cast %37 : vector<4x16x16xbf16> to vector<4x256xbf16>
    %c32 = arith.constant 32 : index
    %c0_55 = arith.constant 0 : index
    %39 = vector.load %arg8[%c32, %c0_55] : memref<36x256xbf16, #tpu.memory_space<vmem>>, vector<4x256xbf16>
    tpu.vector_store %arg8[%c32, %c0_55], %38 {strides = array<i32>} : memref<36x256xbf16, #tpu.memory_space<vmem>>, vector<4x256xbf16>,
    %c0_56 = arith.constant 0 : index
    %c0_57 = arith.constant 0 : index
    %40 = vector.load %arg2[%c0_56, %c0_57] : memref<4x36xbf16, #tpu.memory_space<vmem>>, vector<4x36xbf16>
    %c0_58 = arith.constant 0 : index
    %c0_59 = arith.constant 0 : index
    %41 = vector.load %arg8[%c0_58, %c0_59] : memref<36x256xbf16, #tpu.memory_space<vmem>>, vector<36x256xbf16>
    %cst = arith.constant dense<0.000000e+00> : vector<4x256xf32>
    %42 = tpu.matmul %40, %41, %cst {dimension_numbers = #tpu.dot_dimension_numbers<[1], [0], [0], [1], [0, 0, 1, 1], [], []>} : vector<4x36xbf16>, vector<36x256xbf16>, vector<4x256xf32> -> vector<4x256xf32>
    %c0_60 = arith.constant 0 : index
    %c0_61 = arith.constant 0 : index
    %43 = vector.load %arg3[%c0_60, %c0_61] : memref<4x1xf32, #tpu.memory_space<vmem>>, vector<4x1xf32>
    %44 = vector.broadcast %43 : vector<4x1xf32> to vector<4x256xf32>
    %45 = arith.addf %42, %44 : vector<4x256xf32>
    %cst_62 = arith.constant dense<0.000000e+00> : vector<4xf32>
    %46 = vector.multi_reduction <add>, %45, %cst_62 [1] : vector<4x256xf32> to vector<4xf32>
    %47 = vector.shape_cast %46 : vector<4xf32> to vector<4x1xf32>
    %cst_63 = arith.constant 3.906250e-03 : f32
    %48 = vector.broadcast %cst_63 : f32 to vector<4x1xf32>
    %49 = arith.mulf %47, %48 : vector<4x1xf32>
    %50 = arith.mulf %45, %45 : vector<4x256xf32>
    %cst_64 = arith.constant dense<0.000000e+00> : vector<4xf32>
    %51 = vector.multi_reduction <add>, %50, %cst_64 [1] : vector<4x256xf32> to vector<4xf32>
    %52 = vector.shape_cast %51 : vector<4xf32> to vector<4x1xf32>
    %cst_65 = arith.constant 3.906250e-03 : f32
    %53 = vector.broadcast %cst_65 : f32 to vector<4x1xf32>
    %54 = arith.mulf %52, %53 : vector<4x1xf32>
    %55 = arith.mulf %49, %49 : vector<4x1xf32>
    %56 = arith.subf %54, %55 : vector<4x1xf32>
    %57 = vector.broadcast %49 : vector<4x1xf32> to vector<4x256xf32>
    %58 = arith.subf %45, %57 : vector<4x256xf32>
    %cst_66 = arith.constant 9.99999974E-6 : f32
    %59 = vector.broadcast %cst_66 : f32 to vector<4x1xf32>
    %60 = arith.addf %56, %59 : vector<4x1xf32>
    %61 = math.rsqrt %60 : vector<4x1xf32>
    %62 = vector.broadcast %61 : vector<4x1xf32> to vector<4x256xf32>
    %63 = arith.mulf %58, %62 : vector<4x256xf32>
    %cst_67 = arith.constant 0.000000e+00 : f32
    %64 = vector.broadcast %cst_67 : f32 to vector<4x256xf32>
    %65 = arith.maximumf %63, %64 : vector<4x256xf32>
    %66 = vector.shape_cast %65 : vector<4x256xf32> to vector<4x16x16xf32>
    %67 = arith.truncf %66 : vector<4x16x16xf32> to vector<4x16x16xbf16>
    %c0_68 = arith.constant 0 : index
    %c1_69 = arith.constant 1 : index
    %c1_70 = arith.constant 1 : index
    %68 = vector.load %arg7[%c0_68, %c1_69, %c1_70] : memref<4x18x18xbf16, #tpu.memory_space<vmem>>, vector<4x16x16xbf16>
    tpu.vector_store %arg7[%c0_68, %c1_69, %c1_70], %67 {strides = array<i32>} : memref<4x18x18xbf16, #tpu.memory_space<vmem>>, vector<4x16x16xbf16>,
    %69 = vector.extract_strided_slice %67 {offsets = [0, 1, 0], sizes = [4, 1, 16], strides = [1, 1, 1]} : vector<4x16x16xbf16> to vector<4x1x16xbf16>
    %c0_71 = arith.constant 0 : index
    %c0_72 = arith.constant 0 : index
    %c1_73 = arith.constant 1 : index
    %70 = vector.load %arg7[%c0_71, %c0_72, %c1_73] : memref<4x18x18xbf16, #tpu.memory_space<vmem>>, vector<4x1x16xbf16>
    tpu.vector_store %arg7[%c0_71, %c0_72, %c1_73], %69 {strides = array<i32>} : memref<4x18x18xbf16, #tpu.memory_space<vmem>>, vector<4x1x16xbf16>,
    %71 = vector.extract_strided_slice %67 {offsets = [0, 14, 0], sizes = [4, 1, 16], strides = [1, 1, 1]} : vector<4x16x16xbf16> to vector<4x1x16xbf16>
    %c0_74 = arith.constant 0 : index
    %c17_75 = arith.constant 17 : index
    %c1_76 = arith.constant 1 : index
    %72 = vector.load %arg7[%c0_74, %c17_75, %c1_76] : memref<4x18x18xbf16, #tpu.memory_space<vmem>>, vector<4x1x16xbf16>
    tpu.vector_store %arg7[%c0_74, %c17_75, %c1_76], %71 {strides = array<i32>} : memref<4x18x18xbf16, #tpu.memory_space<vmem>>, vector<4x1x16xbf16>,
    %c0_77 = arith.constant 0 : index
    %c0_78 = arith.constant 0 : index
    %c2_79 = arith.constant 2 : index
    %73 = vector.load %arg7[%c0_77, %c0_78, %c2_79] : memref<4x18x18xbf16, #tpu.memory_space<vmem>>, vector<4x18x1xbf16>
    %c0_80 = arith.constant 0 : index
    %c0_81 = arith.constant 0 : index
    %c0_82 = arith.constant 0 : index
    %74 = vector.load %arg7[%c0_80, %c0_81, %c0_82] : memref<4x18x18xbf16, #tpu.memory_space<vmem>>, vector<4x18x1xbf16>
    tpu.vector_store %arg7[%c0_80, %c0_81, %c0_82], %73 {strides = array<i32>} : memref<4x18x18xbf16, #tpu.memory_space<vmem>>, vector<4x18x1xbf16>,
    %c0_83 = arith.constant 0 : index
    %c0_84 = arith.constant 0 : index
    %c15_85 = arith.constant 15 : index
    %75 = vector.load %arg7[%c0_83, %c0_84, %c15_85] : memref<4x18x18xbf16, #tpu.memory_space<vmem>>, vector<4x18x1xbf16>
    %c0_86 = arith.constant 0 : index
    %c0_87 = arith.constant 0 : index
    %c17_88 = arith.constant 17 : index
    %76 = vector.load %arg7[%c0_86, %c0_87, %c17_88] : memref<4x18x18xbf16, #tpu.memory_space<vmem>>, vector<4x18x1xbf16>
    tpu.vector_store %arg7[%c0_86, %c0_87, %c17_88], %75 {strides = array<i32>} : memref<4x18x18xbf16, #tpu.memory_space<vmem>>, vector<4x18x1xbf16>,
    %c0_89 = arith.constant 0 : index
    %c0_90 = arith.constant 0 : index
    %c0_91 = arith.constant 0 : index
    %77 = vector.load %arg7[%c0_89, %c0_90, %c0_91] : memref<4x18x18xbf16, #tpu.memory_space<vmem>>, vector<4x16x16xbf16>
    %78 = vector.shape_cast %77 : vector<4x16x16xbf16> to vector<4x256xbf16>
    %c0_92 = arith.constant 0 : index
    %c0_93 = arith.constant 0 : index
    %79 = vector.load %arg8[%c0_92, %c0_93] : memref<36x256xbf16, #tpu.memory_space<vmem>>, vector<4x256xbf16>
    tpu.vector_store %arg8[%c0_92, %c0_93], %78 {strides = array<i32>} : memref<36x256xbf16, #tpu.memory_space<vmem>>, vector<4x256xbf16>,
    %c0_94 = arith.constant 0 : index
    %c0_95 = arith.constant 0 : index
    %c1_96 = arith.constant 1 : index
    %80 = vector.load %arg7[%c0_94, %c0_95, %c1_96] : memref<4x18x18xbf16, #tpu.memory_space<vmem>>, vector<4x16x16xbf16>
    %81 = vector.shape_cast %80 : vector<4x16x16xbf16> to vector<4x256xbf16>
    %c4_97 = arith.constant 4 : index
    %c0_98 = arith.constant 0 : index
    %82 = vector.load %arg8[%c4_97, %c0_98] : memref<36x256xbf16, #tpu.memory_space<vmem>>, vector<4x256xbf16>
    tpu.vector_store %arg8[%c4_97, %c0_98], %81 {strides = array<i32>} : memref<36x256xbf16, #tpu.memory_space<vmem>>, vector<4x256xbf16>,
    %c0_99 = arith.constant 0 : index
    %c0_100 = arith.constant 0 : index
    %c2_101 = arith.constant 2 : index
    %83 = vector.load %arg7[%c0_99, %c0_100, %c2_101] : memref<4x18x18xbf16, #tpu.memory_space<vmem>>, vector<4x16x16xbf16>
    %84 = vector.shape_cast %83 : vector<4x16x16xbf16> to vector<4x256xbf16>
    %c8_102 = arith.constant 8 : index
    %c0_103 = arith.constant 0 : index
    %85 = vector.load %arg8[%c8_102, %c0_103] : memref<36x256xbf16, #tpu.memory_space<vmem>>, vector<4x256xbf16>
    tpu.vector_store %arg8[%c8_102, %c0_103], %84 {strides = array<i32>} : memref<36x256xbf16, #tpu.memory_space<vmem>>, vector<4x256xbf16>,
    %c0_104 = arith.constant 0 : index
    %c1_105 = arith.constant 1 : index
    %c0_106 = arith.constant 0 : index
    %86 = vector.load %arg7[%c0_104, %c1_105, %c0_106] : memref<4x18x18xbf16, #tpu.memory_space<vmem>>, vector<4x16x16xbf16>
    %87 = vector.shape_cast %86 : vector<4x16x16xbf16> to vector<4x256xbf16>
    %c12_107 = arith.constant 12 : index
    %c0_108 = arith.constant 0 : index
    %88 = vector.load %arg8[%c12_107, %c0_108] : memref<36x256xbf16, #tpu.memory_space<vmem>>, vector<4x256xbf16>
    tpu.vector_store %arg8[%c12_107, %c0_108], %87 {strides = array<i32>} : memref<36x256xbf16, #tpu.memory_space<vmem>>, vector<4x256xbf16>,
    %c0_109 = arith.constant 0 : index
    %c1_110 = arith.constant 1 : index
    %c1_111 = arith.constant 1 : index
    %89 = vector.load %arg7[%c0_109, %c1_110, %c1_111] : memref<4x18x18xbf16, #tpu.memory_space<vmem>>, vector<4x16x16xbf16>
    %90 = vector.shape_cast %89 : vector<4x16x16xbf16> to vector<4x256xbf16>
    %c16_112 = arith.constant 16 : index
    %c0_113 = arith.constant 0 : index
    %91 = vector.load %arg8[%c16_112, %c0_113] : memref<36x256xbf16, #tpu.memory_space<vmem>>, vector<4x256xbf16>
    tpu.vector_store %arg8[%c16_112, %c0_113], %90 {strides = array<i32>} : memref<36x256xbf16, #tpu.memory_space<vmem>>, vector<4x256xbf16>,
    %c0_114 = arith.constant 0 : index
    %c1_115 = arith.constant 1 : index
    %c2_116 = arith.constant 2 : index
    %92 = vector.load %arg7[%c0_114, %c1_115, %c2_116] : memref<4x18x18xbf16, #tpu.memory_space<vmem>>, vector<4x16x16xbf16>
    %93 = vector.shape_cast %92 : vector<4x16x16xbf16> to vector<4x256xbf16>
    %c20_117 = arith.constant 20 : index
    %c0_118 = arith.constant 0 : index
    %94 = vector.load %arg8[%c20_117, %c0_118] : memref<36x256xbf16, #tpu.memory_space<vmem>>, vector<4x256xbf16>
    tpu.vector_store %arg8[%c20_117, %c0_118], %93 {strides = array<i32>} : memref<36x256xbf16, #tpu.memory_space<vmem>>, vector<4x256xbf16>,
    %c0_119 = arith.constant 0 : index
    %c2_120 = arith.constant 2 : index
    %c0_121 = arith.constant 0 : index
    %95 = vector.load %arg7[%c0_119, %c2_120, %c0_121] : memref<4x18x18xbf16, #tpu.memory_space<vmem>>, vector<4x16x16xbf16>
    %96 = vector.shape_cast %95 : vector<4x16x16xbf16> to vector<4x256xbf16>
    %c24_122 = arith.constant 24 : index
    %c0_123 = arith.constant 0 : index
    %97 = vector.load %arg8[%c24_122, %c0_123] : memref<36x256xbf16, #tpu.memory_space<vmem>>, vector<4x256xbf16>
    tpu.vector_store %arg8[%c24_122, %c0_123], %96 {strides = array<i32>} : memref<36x256xbf16, #tpu.memory_space<vmem>>, vector<4x256xbf16>,
    %c0_124 = arith.constant 0 : index
    %c2_125 = arith.constant 2 : index
    %c1_126 = arith.constant 1 : index
    %98 = vector.load %arg7[%c0_124, %c2_125, %c1_126] : memref<4x18x18xbf16, #tpu.memory_space<vmem>>, vector<4x16x16xbf16>
    %99 = vector.shape_cast %98 : vector<4x16x16xbf16> to vector<4x256xbf16>
    %c28_127 = arith.constant 28 : index
    %c0_128 = arith.constant 0 : index
    %100 = vector.load %arg8[%c28_127, %c0_128] : memref<36x256xbf16, #tpu.memory_space<vmem>>, vector<4x256xbf16>
    tpu.vector_store %arg8[%c28_127, %c0_128], %99 {strides = array<i32>} : memref<36x256xbf16, #tpu.memory_space<vmem>>, vector<4x256xbf16>,
    %c0_129 = arith.constant 0 : index
    %c2_130 = arith.constant 2 : index
    %c2_131 = arith.constant 2 : index
    %101 = vector.load %arg7[%c0_129, %c2_130, %c2_131] : memref<4x18x18xbf16, #tpu.memory_space<vmem>>, vector<4x16x16xbf16>
    %102 = vector.shape_cast %101 : vector<4x16x16xbf16> to vector<4x256xbf16>
    %c32_132 = arith.constant 32 : index
    %c0_133 = arith.constant 0 : index
    %103 = vector.load %arg8[%c32_132, %c0_133] : memref<36x256xbf16, #tpu.memory_space<vmem>>, vector<4x256xbf16>
    tpu.vector_store %arg8[%c32_132, %c0_133], %102 {strides = array<i32>} : memref<36x256xbf16, #tpu.memory_space<vmem>>, vector<4x256xbf16>,
    %c0_134 = arith.constant 0 : index
    %c0_135 = arith.constant 0 : index
    %104 = vector.load %arg4[%c0_134, %c0_135] : memref<4x36xbf16, #tpu.memory_space<vmem>>, vector<4x36xbf16>
    %c0_136 = arith.constant 0 : index
    %c0_137 = arith.constant 0 : index
    %105 = vector.load %arg8[%c0_136, %c0_137] : memref<36x256xbf16, #tpu.memory_space<vmem>>, vector<36x256xbf16>
    %cst_138 = arith.constant dense<0.000000e+00> : vector<4x256xf32>
    %106 = tpu.matmul %104, %105, %cst_138 {dimension_numbers = #tpu.dot_dimension_numbers<[1], [0], [0], [1], [0, 0, 1, 1], [], []>} : vector<4x36xbf16>, vector<36x256xbf16>, vector<4x256xf32> -> vector<4x256xf32>
    %c0_139 = arith.constant 0 : index
    %c0_140 = arith.constant 0 : index
    %107 = vector.load %arg5[%c0_139, %c0_140] : memref<4x1xf32, #tpu.memory_space<vmem>>, vector<4x1xf32>
    %108 = vector.broadcast %107 : vector<4x1xf32> to vector<4x256xf32>
    %109 = arith.addf %106, %108 : vector<4x256xf32>
    %cst_141 = arith.constant dense<0.000000e+00> : vector<4xf32>
    %110 = vector.multi_reduction <add>, %109, %cst_141 [1] : vector<4x256xf32> to vector<4xf32>
    %111 = vector.shape_cast %110 : vector<4xf32> to vector<4x1xf32>
    %cst_142 = arith.constant 3.906250e-03 : f32
    %112 = vector.broadcast %cst_142 : f32 to vector<4x1xf32>
    %113 = arith.mulf %111, %112 : vector<4x1xf32>
    %114 = arith.mulf %109, %109 : vector<4x256xf32>
    %cst_143 = arith.constant dense<0.000000e+00> : vector<4xf32>
    %115 = vector.multi_reduction <add>, %114, %cst_143 [1] : vector<4x256xf32> to vector<4xf32>
    %116 = vector.shape_cast %115 : vector<4xf32> to vector<4x1xf32>
    %cst_144 = arith.constant 3.906250e-03 : f32
    %117 = vector.broadcast %cst_144 : f32 to vector<4x1xf32>
    %118 = arith.mulf %116, %117 : vector<4x1xf32>
    %119 = arith.mulf %113, %113 : vector<4x1xf32>
    %120 = arith.subf %118, %119 : vector<4x1xf32>
    %121 = vector.broadcast %113 : vector<4x1xf32> to vector<4x256xf32>
    %122 = arith.subf %109, %121 : vector<4x256xf32>
    %cst_145 = arith.constant 9.99999974E-6 : f32
    %123 = vector.broadcast %cst_145 : f32 to vector<4x1xf32>
    %124 = arith.addf %120, %123 : vector<4x1xf32>
    %125 = math.rsqrt %124 : vector<4x1xf32>
    %126 = vector.broadcast %125 : vector<4x1xf32> to vector<4x256xf32>
    %127 = arith.mulf %122, %126 : vector<4x256xf32>
    %c0_146 = arith.constant 0 : index
    %c0_147 = arith.constant 0 : index
    %c0_148 = arith.constant 0 : index
    %128 = vector.load %arg1[%c0_146, %c0_147, %c0_148] : memref<1x4x256xf32, #tpu.memory_space<vmem>>, vector<1x4x256xf32>
    %129 = vector.shape_cast %128 : vector<1x4x256xf32> to vector<4x256xf32>
    %130 = arith.addf %129, %127 : vector<4x256xf32>
    %c0_149 = arith.constant 0 : index
    %c0_150 = arith.constant 0 : index
    %c0_151 = arith.constant 0 : index
    %131 = vector.load %arg6[%c0_149, %c0_150, %c0_151] : memref<1x4x256xf32, #tpu.memory_space<vmem>>, vector<1x4x256xf32>
    %132 = vector.shape_cast %131 : vector<1x4x256xf32> to vector<4x256xf32>
    %133 = vector.shape_cast %130 : vector<4x256xf32> to vector<1x4x256xf32>
    tpu.vector_store %arg6[%c0_149, %c0_150, %c0_151], %133 {strides = array<i32>} : memref<1x4x256xf32, #tpu.memory_space<vmem>>, vector<1x4x256xf32>,
    return
  }
  func.func @transform_0(%arg0: i32) -> (i32, i32, i32) {
    %c0_i32 = arith.constant 0 : i32
    %c0_i32_0 = arith.constant 0 : i32
    %c0_i32_1 = arith.constant 0 : i32
    return %arg0, %c0_i32, %c0_i32_0 : i32, i32, i32
  }
  func.func @transform_1(%arg0: i32) -> (i32, i32) {
    %c0_i32 = arith.constant 0 : i32
    %c0_i32_0 = arith.constant 0 : i32
    %c0_i32_1 = arith.constant 0 : i32
    return %c0_i32, %c0_i32_0 : i32, i32
  }
  func.func @transform_2(%arg0: i32) -> (i32, i32) {
    %c0_i32 = arith.constant 0 : i32
    %c0_i32_0 = arith.constant 0 : i32
    %c0_i32_1 = arith.constant 0 : i32
    return %c0_i32, %c0_i32_0 : i32, i32
  }
  func.func @transform_3(%arg0: i32) -> (i32, i32) {
    %c0_i32 = arith.constant 0 : i32
    %c0_i32_0 = arith.constant 0 : i32
    %c0_i32_1 = arith.constant 0 : i32
    return %c0_i32, %c0_i32_0 : i32, i32
  }
  func.func @transform_4(%arg0: i32) -> (i32, i32) {
    %c0_i32 = arith.constant 0 : i32
    %c0_i32_0 = arith.constant 0 : i32
    %c0_i32_1 = arith.constant 0 : i32
    return %c0_i32, %c0_i32_0 : i32, i32
  }
  func.func @transform_5(%arg0: i32) -> (i32, i32, i32) {
    %c0_i32 = arith.constant 0 : i32
    %c0_i32_0 = arith.constant 0 : i32
    %c0_i32_1 = arith.constant 0 : i32
    return %arg0, %c0_i32, %c0_i32_0 : i32, i32, i32
  }
}

</mosaic_0001>

<bundles_post_ra>
// kernel: tpu_custom_call.1
= control target key start
LH: loop header
LB: loop body
LE: loop exit
PB: predicated region body
PF: predicated region fallthrough
CT: control target
= control target key end

     0   :  { %10 = vsyncpa [#allocation5], 0  ;;  %s11851_s0 = inlined_call_operand.hbm [shape: f32[2,4,256], index: 0, kind: input, shape index: {}]   ;;  %s11852_s1 = inlined_call_operand.vmem [shape: bf16[4,36], index: 1, kind: input, shape index: {}]   ;;  %s11853_s2 = inlined_call_operand.vmem [shape: f32[4,1], index: 2, kind: input, shape index: {}]   ;;  %s11854_s3 = inlined_call_operand.vmem [shape: bf16[4,36], index: 3, kind: input, shape index: {}]   ;;  %s11855_s4 = inlined_call_operand.vmem [shape: f32[4,1], index: 4, kind: input, shape index: {}]   ;;  %s11856_s5 = inlined_call_operand.hbm [shape: f32[2,4,256], index: 5, kind: output, shape index: {}]  }
   0x1   :  { %12 = vsyncpa [#allocation5 + $0x1], 0 }
   0x2   :  { %13 = vsyncpa [#allocation6], 0 }
   0x3   :  { %15 = vsyncpa [#allocation6 + $0x1], 0  ;;  %s8509_s18 = smov 0   ;;  %s8511_s19 = smov 0  }
   0x4   :  { %s8513_s20 = smov 0   ;;  %s8515_s21 = smov 0  }
   0x5 LB: > { %s8530_s22 = sadd.s32 4294967295, %s8461_s21   ;;  %s7745_s23 = sadd.s32 4294967294, %s8461_s21   ;;  %s8461_s21 = sphi %s8515_s21, %s11988_s21   ;;  %s8457_s20 = sphi %s8513_s20, %s11987_s20   ;;  %s8453_s19 = sphi %s8511_s19, %s11986_s19   ;;  %s8449_s18 = sphi %s8509_s18, %s11985_s18  }
   0x6   : > { %s8534_s24 = sadd.s32 1, %s8461_s21   ;;  %s28_s25 = sadd.s32 1, %s8457_s20 }
   0x7   : > { %s25_s26 = ssub.s32 %s8461_s21, %s8534_s24  ;;  %p35_p0 = scmp.ne.s32.totalorder %s8457_s20, %s8453_s19 }
   0x8   : > { %p26_p1 = scmp.eq.s32.totalorder %s25_s26, 0  ;;  %p36_p2 = scmp.eq.s32.totalorder %s8461_s21, 0 }
   0x9   : > { %p41_p3 = scmp.ne.s32.totalorder %s8453_s19, %s8449_s18  ;;  %p42_p4 = scmp.eq.s32.totalorder %s8530_s22, 0 }
   0xa   : > { %s8546_s27 = scalar_select %p26_p1, %s8457_s20, %s28_s25  }
   0xb   : > { %p8548_p5 = por %p36_p2, %p35_p0  ;;  %p8552_p6 = por %p42_p4, %p41_p3 }
   0xc   : > { %p149_p7 = scmp.eq.s32.totalorder %s8530_s22, 1  ;;  %p155_p8 = scmp.eq.s32.totalorder %s7745_s23, 1 }
   0xd   : > { %s11890_s29 = scalar_select %p8552_p6, 1, 0 }
   0xe   : > { %p8279_p10 = scmp.lt.s32.totalorder %s8461_s21, 2  ;;  %p8559_p11 = por %p149_p7, %p35_p0 }
   0xf   : > { %p8563_p12 = por %p155_p8, %p41_p3  ;;  %s187_s7 = sand.u32 1, %s8457_s20  }
  0x10   : > { %s11891_s30 = scalar_select %p8559_p11, 1, 0 }
  0x11   : > { %s11892_s6 = scalar_select %p8563_p12, 1, 0 }
  0x12   : > { %s8105_s8 = sshll.u32 %s8461_s21, 7  ;;  %s7748_s9 = sshll.u32 %s187_s7, 3 }
  0x13   : > { %s8572_s12 = scalar_lea.hbm %s11851_s0, %s8105_s8  ;;  %s191_s13 = scalar_lea.vmem [#allocation4], %s7748_s9 }
  0x14   : > { %s199_s14 = sshll.u32 %s191_s13, 4  ;;  %p8576_p13 = pnand %p8279_p10, %p8548_p5  ;;  %s8580_s14 = int_to_ptr.vmem [resolvable:$true] %s199_s14 }
  0x15   : > { %s188_s16 = scalar_lea.sflag [#allocation5], %s187_s7  ;;  %s8369_s17 = scalar_lea.hbm %s8572_s12, 128 }
  0x16   : > { %p8370_p2 = scmp.ne.s32.totalorder %s8572_s12, %s8369_s17  ;;  %p8371_p3 = pneg %p8576_p13 }
  0x17   : > { %s8374_s26 = scalar_lea.hbm %s11851_s0, 256  ;;  %p8375_p5 = scmp.lt.s32.totalorder %s8572_s12, %s11851_s0 }
  0x18   : > { %p8372_p4 = pnand %p8371_p3, %p8370_p2  ;;  %p8376_p8 = scmp.lt.s32.totalorder %s8374_s26, %s8369_s17 }
  0x1a   : > { %p8373_p7 = pneg %p8372_p4  ;;  %p8377_p10 = por %p8376_p8, %p8375_p5 }
  0x1c   : > { %p8378_p9 = pnand %p8377_p10, %p8373_p7 }
  0x1e   : > { %8381 = shalt.err (!%p8378_p9)
}
  0x1f   : > { %s8382_s7 = scalar_lea.vmem %s8580_s14, 128  ;;  %s8463_s9 = smov [#allocation4]  }
  0x20   : > { %p8383_p0 = scmp.ne.s32.totalorder %s8580_s14, %s8382_s7  ;;  %s8387_s10 = sshll.u32 %s8463_s9, 4  ;;  %s8388_s10 = int_to_ptr.vmem [resolvable:$false] %s8387_s10 }
  0x21   : > { %s8389_s11 = scalar_lea.vmem %s8388_s10, 256  ;;  %p8390_p4 = scmp.lt.s32.totalorder %s8580_s14, %s8388_s10 }
  0x22   : > { %p8385_p1 = pnand %p8383_p0, %p8371_p3  ;;  %p8391_p12 = scmp.lt.s32.totalorder %s8389_s11, %s8382_s7 }
  0x24   : > { %p8386_p2 = pneg %p8385_p1  ;;  %p8392_p11 = por %p8391_p12, %p8390_p4 }
  0x26   : > { %p8393_p6 = pnand %p8392_p11, %p8386_p2 }
  0x28   : > { %8396 = shalt.err (!%p8393_p6)
}
  0x29   : > { %8274 = dma.hbm_to_vmem [thread:$0]  (!%p8576_p13), %s8572_s12, 128, %s8580_s14, %s188_s16  }
  0x2a   : > { %p11894_p9 = scmp.lt.s32.totalorder %s8461_s21, 3  ;;  %p11895_p7 = scmp.ge.s32.totalorder %s8461_s21, 1 }
  0x2c   : > { %p205_p0 = pnand %p11895_p7, %p11894_p9 }
  0x2e   : > { %208 = sbr.rel (%p205_p0) target bundleno = 2833 (0xb11), region = 40 }
  0x33   : > { %s8607_s13 = sand.u32 1, %s8453_s19   ;;  %p11896_p6 = scmp.ne.s32.totalorder %s11890_s29, 0 }
  0x34   : > { %s7752_s17 = sshll.u32 %s8607_s13, 3  ;;  %s211_s23 = scalar_lea.sflag [#allocation5], %s8607_s13 }
  0x35   : > { %s8613_s15 = scalar_lea.vmem [#allocation4], %s7752_s17 }
  0x36   : > { %8440 = dma.done.wait (%p11896_p6), %s211_s23, 128  }
  0x37   : > { %8442 = vsyncadd (%p11896_p6), %s211_s23, 4294967168  ;;  %v242_v0 = vld [vmem:[%s8613_s15] sm:$0xff]  ;;  %s8464_s12 = smov 80   ;;  %s8465_s14 = smov 112   ;;  %v8471_v3 = vmov 1983009808   ;;  %v285_v5 = vlaneseq }
  0x38   : > { %254 = vrot.lane.b32.xlu1 %v242_v0, %s8464_s12  ;;  %246 = vrot.lane.b32.xlu0 %v242_v0, %s8465_s14  ;;  %s8466_s16 = smov 64   ;;  %s8467_s25 = smov 96   ;;  %v283_v4 = vunpack.c.l.s4 %v8471_v3  ;;  %v8472_v10 = vmov 1934713408   ;;  %v244_v12 = vrot.slane %v242_v0, 4  ;;  %vm580_vm3 = vcmask 134152  }
  0x39   : > { %s8468_s26 = smov 32   ;;  %s8469_s28 = smov 48   ;;  %v286_v9 = vshrl.u32 %v285_v5, 7  ;;  %v300_v11 = vunpack.c.l.s4 %v8472_v10  ;;  %vm473_vm0 = vsmask.f32 256  ;;  %vm588_vm6 = vcmask 131080  }
  0x3a   : > { %s8470_s29 = smov 16   ;;  %v284_v8 = vunpack.c.0.s8 %v283_v4  ;;  %s8473_s8 = smov 1   ;;  %vm474_vm1 = vsmask.f32 4368  ;;  %vm581_vm4 = vsmask.f32 7938  ;;  %vm8694_vm7 = vmand %vm588_vm6, %vm473_vm0 }
  0x3b   : > { %v301_v23 = vunpack.c.0.s8 %v300_v11  ;;  %vm8662_vm2 = vmor %vm473_vm0, %vm474_vm1  ;;  %s8474_s7 = smov 126   ;;  %vm739_vm9 = vcmask 3072   ;;  %s8475_s9 = smov 2   ;;  %vm11878_vm10 = vcmask 0   ;;  %vm11877_vm11 = vcmask 142472  }
  0x3c   : > { %258 = vrot.lane.b32.xlu1 %v242_v0, %s8466_s16  ;;  %250 = vrot.lane.b32.xlu0 %v242_v0, %s8467_s25  ;;  %v8627_v21 = vsub.s32 %v284_v8, %v286_v9  ;;  %vm8680_vm5 = vmand %vm580_vm3, %vm581_vm4  ;;  %s8476_s10 = smov 127   ;;  %vm11876_vm12 = vcmask 139400   ;;  %vm2894_vm13 = vcmask 1042432   ;;  %vm2895_vm14 = vcmask 1046532   ;;  %p11982_p12 = scmp.ne.s32.totalorder %s11891_s30, 0 }
  0x3d   : > { %v8631_v34 = vsub.s32 %v301_v23, %v286_v9  ;;  %vm8716_vm8 = vmand %vm588_vm6, %vm581_vm4  ;;  %vm1720_vm0 = vsmask.f32 3328  ;;  %vm1721_vm1 = vsmask.f32 7440  ;;  %vm1065_vm6 = vcmask 130048   ;;  %s8478_s23 = smov [#allocation7]  }
  0x3e   : > { %vm8808_vm15 = vmor %vm2894_vm13, %vm2895_vm14  ;;  %vm1069_vm13 = vcmask 261120   ;;  %vm1072_vm14 = vcmask 392192  }
  0x3f   : > { %vm8911_vm4 = vmor %vm1720_vm0, %vm1721_vm1  ;;  %vm1075_vm0 = vcmask 523264   ;;  %vm1078_vm1 = vcmask 654336  }
  0x40   : > { %266 = vrot.lane.b32.xlu1 %v242_v0, %s8468_s26  ;;  %262 = vrot.lane.b32.xlu0 %v242_v0, %s8469_s28 }
  0x44   : > { %270 = vrot.lane.b32.xlu0 %v242_v0, %s8470_s29 }
  0xaa   : > { %v255_v1 = vpop.permute.xlu1 %254  ;;  %v247_v2 = vpop.permute.xlu0 %246 }
  0xab   : > { %v256_v17 = vrot.slane %v255_v1, 4  ;;  %v248_v18 = vrot.slane %v247_v2, 4  ;;  %v289_v22 = vcombine.low %v247_v2, %v255_v1 }
  0xad   : > { %v357_v28 = vcombine.low %v248_v18, %v256_v17  ;;  %v296_v32 = vrot.slane %v289_v22, %v8627_v21 }
  0xae   : > { %v259_v6 = vpop.permute.xlu1 %258  ;;  %v251_v7 = vpop.permute.xlu0 %250 }
  0xaf   : > { %v252_v13 = vrot.slane %v251_v7, 4  ;;  %v281_v14 = vcombine.low %v242_v0, %v251_v7  ;;  %v260_v19 = vrot.slane %v259_v6, 4  ;;  %v364_v41 = vrot.slane %v357_v28, %v8627_v21 }
  0xb1   : > { %v349_v24 = vcombine.low %v244_v12, %v252_v13  ;;  %v288_v25 = vrot.slane %v281_v14, %v8627_v21 }
  0xb2   : > { %v267_v15 = vpop.permute.xlu1 %266  ;;  %v263_v16 = vpop.permute.xlu0 %262 }
  0xb3   : > { %v268_v20 = vrot.slane %v267_v15, 4  ;;  %v315_v26 = vcombine.low %v259_v6, %v267_v15  ;;  %v264_v30 = vrot.slane %v263_v16, 4  ;;  %v356_v35 = vrot.slane %v349_v24, %v8627_v21 }
  0xb4   : > { %v297_v37 = vcombine.low %v288_v25, %v296_v32  ;;  %v298_v38 = vcombine.high %v288_v25, %v296_v32 }
  0xb5   : > { %v383_v29 = vcombine.low %v260_v19, %v268_v20  ;;  %v322_v39 = vrot.slane %v315_v26, %v8627_v21  ;;  %v365_v46 = vcombine.low %v356_v35, %v364_v41  ;;  %v366_v47 = vcombine.high %v356_v35, %v364_v41 }
  0xb6   : > { %v271_v27 = vpop.permute.xlu0 %270  ;;  %v305_v50 = vrot.slane %v297_v37, %v8631_v34  ;;  %v312_v52 = vrot.slane %v298_v38, %v8631_v34 }
  0xb7   : > { %v272_v31 = vrot.slane %v271_v27, 4  ;;  %v323_v33 = vcombine.low %v263_v16, %v271_v27  ;;  %v390_v42 = vrot.slane %v383_v29, %v8627_v21  ;;  %v380_v60 = vrot.slane %v366_v47, %v8631_v34 }
  0xb8   : > { %v373_v61 = vrot.slane %v365_v46, %v8631_v34 }
  0xb9   : > { %v391_v36 = vcombine.low %v264_v30, %v272_v31  ;;  %v330_v40 = vrot.slane %v323_v33, %v8627_v21 }
  0xbb   : > { %v398_v43 = vrot.slane %v391_v36, %v8627_v21  ;;  %v331_v44 = vcombine.low %v322_v39, %v330_v40  ;;  %v332_v45 = vcombine.high %v322_v39, %v330_v40 }
  0xbd   : > { %v399_v48 = vcombine.low %v390_v42, %v398_v43  ;;  %v400_v49 = vcombine.high %v390_v42, %v398_v43  ;;  %v339_v51 = vrot.slane %v331_v44, %v8631_v34  ;;  %v346_v53 = vrot.slane %v332_v45, %v8631_v34 }
  0xbf   : > { %v407_v54 = vrot.slane %v399_v48, %v8631_v34  ;;  %v414_v55 = vrot.slane %v400_v49, %v8631_v34  ;;  %v7754_v56 = vcombine.high %v305_v50, %v339_v51  ;;  %v433_v57 = vcombine.low %v305_v50, %v339_v51 }
  0xc0   : > { %v7756_v58 = vcombine.high %v312_v52, %v346_v53  ;;  %v437_v59 = vcombine.low %v312_v52, %v346_v53  ;;  %v11897_v52 = vmov 0 }
  0xc1   : > { %v8108_v62 = vpack.c.bf16 %v7754_v56, %v7754_v56  ;;  %v8106_v63 = vpack.c.bf16 %v433_v57, %v433_v57  ;;  %v438_v2 = vcombine.low %v380_v60, %v414_v55  ;;  %v7757_v3 = vcombine.high %v380_v60, %v414_v55 }
  0xc2   : > { %v8112_v0 = vpack.c.bf16 %v7756_v58, %v7756_v58  ;;  %v8110_v1 = vpack.c.bf16 %v437_v59, %v437_v59  ;;  %v434_v6 = vcombine.low %v373_v61, %v407_v54  ;;  %v7755_v7 = vcombine.high %v373_v61, %v407_v54 }
  0xc3   : > { %v494_v4 = vshrl.u32 %v8108_v62, 16  ;;  %v477_v5 = vshrl.u32 %v8106_v63, 16  ;;  %v8111_v10 = vpack.c.bf16 %v438_v2, %v438_v2  ;;  %v8113_v11 = vpack.c.bf16 %v7757_v3, %v7757_v3 }
  0xc4   : > { %v528_v8 = vshrl.u32 %v8112_v0, 16  ;;  %v511_v9 = vshrl.u32 %v8110_v1, 16  ;;  %v8107_v14 = vpack.c.bf16 %v434_v6, %v434_v6  ;;  %v8109_v15 = vpack.c.bf16 %v7755_v7, %v7755_v7 }
  0xc5   : > { %624 = vrot.lane.b32.xlu0 %v494_v4, %s8473_s8  ;;  %622 = vrot.lane.b32.xlu1 %v477_v5, %s8473_s8  ;;  %v496_v12 = vrot.slane %v494_v4, 7  ;;  %v479_v13 = vrot.slane %v477_v5, 7  ;;  %v497_v16 = vshll.u32 %v8108_v62, 16  ;;  %v480_v17 = vshll.u32 %v8106_v63, 16  ;;  %v593_v4 = vld [vmem:[#allocation2 + $0xc] sm:$0xf] }
  0xc6   : > { %v530_v18 = vrot.slane %v528_v8, 7  ;;  %v513_v19 = vrot.slane %v511_v9, 7  ;;  %v522_v20 = vshll.u32 %v8111_v10, 16  ;;  %v539_v22 = vshll.u32 %v8113_v11, 16  ;;  %v583_v5 = vld [vmem:[#allocation2] sm:$0xf] }
  0xc7   : > { %v499_v23 = vor.u32 %v497_v16, %v496_v12  ;;  %v482_v24 = vor.u32 %v480_v17, %v479_v13  ;;  %v488_v25 = vshll.u32 %v8107_v14, 16  ;;  %v505_v26 = vshll.u32 %v8109_v15, 16 }
  0xc8   : > { %v531_v27 = vshll.u32 %v8112_v0, 16  ;;  %v514_v28 = vshll.u32 %v8110_v1, 16  ;;  %v7772_v31 = vrot.slane %v522_v20, 11  ;;  %v7773_v32 = vrot.slane %v539_v22, 11 }
  0xc9   : > { %628 = vrot.lane.b32.xlu0 %v528_v8, %s8473_s8  ;;  %626 = vrot.lane.b32.xlu1 %v511_v9, %s8473_s8  ;;  %v7770_v33 = vrot.slane %v488_v25, 11  ;;  %v7771_v35 = vrot.slane %v505_v26, 11  ;;  %v502_v36 = vshrl.u32 %v8109_v15, 16  ;;  %v485_v37 = vshrl.u32 %v8107_v14, 16 }
  0xca   : > { %v533_v29 = vor.u32 %v531_v27, %v530_v18  ;;  %v516_v30 = vor.u32 %v514_v28, %v513_v19  ;;  %v536_v38 = vshrl.u32 %v8113_v11, 16  ;;  %v519_v39 = vshrl.u32 %v8111_v10, 16  ;;  %v607_v10 = vld [vmem:[#allocation2 + $0x24] sm:$0xf]  ;;  %v600_v11 = vld [vmem:[#allocation2 + $0x18] sm:$0xf] }
  0xcb   : > { %v8332_v40 = vpack.i.bf16 %v7773_v32, %v7772_v31  ;;  %v8327_v41 = vpack.i.bf16 %v7771_v35, %v7770_v33  ;;  %v504_v42 = vrot.slane %v502_v36, 7  ;;  %v487_v43 = vrot.slane %v485_v37, 7  ;;  %v611_v35 = vld [vmem:[#allocation2 + $0x2c] sm:$0x1]  ;;  %v604_v36 = vld [vmem:[#allocation2 + $0x20] sm:$0x1] }
  0xcc   : > { %v538_v46 = vrot.slane %v536_v38, 7  ;;  %v521_v47 = vrot.slane %v519_v39, 7  ;;  %v11898_v52 = vsel %vm8662_vm2, 4294967295, %v11897_v52  ;;  %v500_v53 = vrot.slane %v496_v12, 4 }
  0xcd   : > { %550 = vrot.lane.b32.xlu0 %v499_v23, %s8473_s8  ;;  %544 = vrot.lane.b32.xlu1 %v482_v24, %s8473_s8  ;;  %v509_v44 = vrot.slane %v504_v42, 4  ;;  %v492_v45 = vrot.slane %v487_v43, 4  ;;  %v507_v50 = vor.u32 %v505_v26, %v504_v42  ;;  %v490_v51 = vor.u32 %v488_v25, %v487_v43  ;;  %11899 = vst [vmem:[#allocation10_spill] sm:$0xff] %v11898_v52  ;;  %v597_v24 = vld [vmem:[#allocation2 + $0x14] sm:$0x1] }
  0xce   : > { %v543_v48 = vrot.slane %v538_v46, 4  ;;  %v526_v49 = vrot.slane %v521_v47, 4  ;;  %v483_v54 = vrot.slane %v479_v13, 4  ;;  %v541_v57 = vor.u32 %v539_v22, %v538_v46  ;;  %v590_v25 = vld [vmem:[#allocation2 + $0x8] sm:$0x1] }
  0xcf   : > { %v508_v55 = vsel %vm8662_vm2, %v500_v53, %v507_v50  ;;  %v524_v58 = vor.u32 %v522_v20, %v521_v47  ;;  %v534_v59 = vrot.slane %v530_v18, 4  ;;  %v517_v60 = vrot.slane %v513_v19, 4 }
  0xd0   : > { %v491_v56 = vsel %vm8662_vm2, %v483_v54, %v490_v51  ;;  %v11900_v3 = vmov 0  ;;  %v11903_v16 = vmov 0  ;;  %v11906_v42 = vmov 0 }
  0xd1   : > { %562 = vrot.lane.b32.xlu0 %v533_v29, %s8473_s8  ;;  %556 = vrot.lane.b32.xlu1 %v516_v30, %s8473_s8  ;;  %v542_v61 = vsel %vm8662_vm2, %v534_v59, %v541_v57  ;;  %v525_v62 = vsel %vm8662_vm2, %v517_v60, %v524_v58  ;;  %v11901_v3 = vsel %vm8680_vm5, 4294967295, %v11900_v3  ;;  %v11904_v16 = vsel %vm8694_vm7, 4294967295, %v11903_v16 }
  0xd2   : > { %11902 = vst [vmem:[#allocation11_spill] sm:$0xff] %v11901_v3  ;;  %11905 = vst [vmem:[#allocation12_spill] sm:$0xff] %v11904_v16  ;;  %v11907_v42 = vsel %vm8716_vm8, 4294967295, %v11906_v42 }
  0xd3   : > { %11908 = vst [vmem:[#allocation13_spill] sm:$0xff] %v11907_v42 }
  0xd5   : > { %8333 = vrot.lane.b32.xlu0 %v8332_v40, %s8473_s8  ;;  %8328 = vrot.lane.b32.xlu1 %v8327_v41, %s8473_s8 }
  0xd9   : > { %554 = vrot.lane.b32.xlu0 %v509_v44, %s8473_s8  ;;  %548 = vrot.lane.b32.xlu1 %v492_v45, %s8473_s8 }
  0xdd   : > { %566 = vrot.lane.b32.xlu0 %v543_v48, %s8473_s8  ;;  %560 = vrot.lane.b32.xlu1 %v526_v49, %s8473_s8 }
  0xe1   : > { %552 = vrot.lane.b32.xlu0 %v508_v55, %s8473_s8  ;;  %546 = vrot.lane.b32.xlu1 %v491_v56, %s8473_s8 }
  0xe5   : > { %564 = vrot.lane.b32.xlu0 %v542_v61, %s8473_s8  ;;  %558 = vrot.lane.b32.xlu1 %v525_v62, %s8473_s8 }
 0x137   : > { %v625_v63 = vpop.permute.xlu0 %624  ;;  %v623_v0 = vpop.permute.xlu1 %622 }
 0x13b   : > { %v629_v1 = vpop.permute.xlu0 %628  ;;  %v627_v2 = vpop.permute.xlu1 %626 }
 0x13f   : > { %v551_v6 = vpop.permute.xlu0 %550  ;;  %v545_v7 = vpop.permute.xlu1 %544 }
 0x140   : > { %v594_v8 = vsel %vm8680_vm5, %v551_v6, %v593_v4  ;;  %v584_v9 = vsel %vm8680_vm5, %v545_v7, %v583_v5 }
 0x141   : > { %595 = vst [vmem:[#allocation2 + $0xc] sm:$0xf] %v594_v8  ;;  %585 = vst [vmem:[#allocation2] sm:$0xf] %v584_v9 }
 0x143   : > { %v563_v12 = vpop.permute.xlu0 %562  ;;  %v557_v13 = vpop.permute.xlu1 %556 }
 0x144   : > { %v608_v14 = vsel %vm8680_vm5, %v563_v12, %v607_v10  ;;  %v601_v15 = vsel %vm8680_vm5, %v557_v13, %v600_v11 }
 0x145   : > { %609 = vst [vmem:[#allocation2 + $0x24] sm:$0xf] %v608_v14  ;;  %602 = vst [vmem:[#allocation2 + $0x18] sm:$0xf] %v601_v15 }
 0x147   : > { %v8334_v17 = vpop.permute.xlu0 %8333  ;;  %v8329_v18 = vpop.permute.xlu1 %8328 }
 0x148   : > { %v637_v19 = vld [vmem:[#allocation2 + $0xc] sm:$0x1]  ;;  %v634_v20 = vld [vmem:[#allocation2] sm:$0x1]  ;;  %v8331_v43 = vunpack.i.h.bf16 %v8329_v18  ;;  %v8330_v44 = vunpack.i.l.bf16 %v8329_v18  ;;  %v8336_v53 = vunpack.i.h.bf16 %v8334_v17  ;;  %v8335_v54 = vunpack.i.l.bf16 %v8334_v17 }
 0x149   : > { %v638_v22 = vsel %vm8694_vm7, %v625_v63, %v637_v19  ;;  %v635_v23 = vsel %vm8694_vm7, %v623_v0, %v634_v20 }
 0x14a   : > { %639 = vst [vmem:[#allocation2 + $0xc] sm:$0x1] %v638_v22  ;;  %636 = vst [vmem:[#allocation2] sm:$0x1] %v635_v23 }
 0x14b   : > { %v555_v26 = vpop.permute.xlu0 %554  ;;  %v549_v27 = vpop.permute.xlu1 %548 }
 0x14c   : > { %v643_v28 = vld [vmem:[#allocation2 + $0x24] sm:$0x1]  ;;  %v640_v29 = vld [vmem:[#allocation2 + $0x18] sm:$0x1]  ;;  %v598_v30 = vsel %vm8694_vm7, %v555_v26, %v597_v24  ;;  %v591_v31 = vsel %vm8694_vm7, %v549_v27, %v590_v25 }
 0x14d   : > { %v644_v32 = vsel %vm8694_vm7, %v629_v1, %v643_v28  ;;  %v641_v33 = vsel %vm8694_vm7, %v627_v2, %v640_v29  ;;  %599 = vst [vmem:[#allocation2 + $0x14] sm:$0x1] %v598_v30  ;;  %592 = vst [vmem:[#allocation2 + $0x8] sm:$0x1] %v591_v31 }
 0x14e   : > { %645 = vst [vmem:[#allocation2 + $0x24] sm:$0x1] %v644_v32  ;;  %642 = vst [vmem:[#allocation2 + $0x18] sm:$0x1] %v641_v33 }
 0x14f   : > { %v567_v37 = vpop.permute.xlu0 %566  ;;  %v561_v38 = vpop.permute.xlu1 %560 }
 0x150   : > { %v612_v39 = vsel %vm8694_vm7, %v567_v37, %v611_v35  ;;  %v605_v40 = vsel %vm8694_vm7, %v561_v38, %v604_v36 }
 0x151   : > { %613 = vst [vmem:[#allocation2 + $0x2c] sm:$0x1] %v612_v39  ;;  %606 = vst [vmem:[#allocation2 + $0x20] sm:$0x1] %v605_v40  ;;  %v679_v41 = vld [vmem:[#allocation2] sm:$0xf] }
 0x152   : > { %703 = vrot.lane.b32.xlu1 %v679_v41, %s8474_s7  ;;  %v682_v51 = vld [vmem:[#allocation2 + $0xc] sm:$0xf] }
 0x153   : > { %v553_v45 = vpop.permute.xlu0 %552  ;;  %v547_v46 = vpop.permute.xlu1 %546 }
 0x154   : > { %v670_v47 = vld [vmem:[#allocation2 + $0x14] sm:$0x1]  ;;  %v667_v48 = vld [vmem:[#allocation2 + $0x8] sm:$0x1]  ;;  %596 = vst.msk [vmem:[#allocation2 + $0x10] sm:$0xf] %vm580_vm3, %v553_v45 }
 0x155   : > { %587 = vst.msk [vmem:[#allocation2 + $0x4] sm:$0xf] %vm580_vm3, %v547_v46  ;;  %v671_v49 = vsel %vm8716_vm8, %v8331_v43, %v670_v47  ;;  %v668_v50 = vsel %vm8716_vm8, %v8330_v44, %v667_v48  ;;  %v685_v61 = vld [vmem:[#allocation2 + $0x18] sm:$0xf]  ;;  %v688_v63 = vld [vmem:[#allocation2 + $0x24] sm:$0xf] }
 0x156   : > { %672 = vst [vmem:[#allocation2 + $0x14] sm:$0x1] %v671_v49  ;;  %669 = vst [vmem:[#allocation2 + $0x8] sm:$0x1] %v668_v50  ;;  %709 = vrot.lane.b32.xlu1 %v682_v51, %s8474_s7 }
 0x157   : > { %v565_v55 = vpop.permute.xlu0 %564  ;;  %v559_v56 = vpop.permute.xlu1 %558 }
 0x158   : > { %v676_v57 = vld [vmem:[#allocation2 + $0x2c] sm:$0x1]  ;;  %v673_v58 = vld [vmem:[#allocation2 + $0x20] sm:$0x1]  ;;  %610 = vst.msk [vmem:[#allocation2 + $0x28] sm:$0xf] %vm580_vm3, %v565_v55 }
 0x159   : > { %603 = vst.msk [vmem:[#allocation2 + $0x1c] sm:$0xf] %vm580_vm3, %v559_v56  ;;  %v677_v59 = vsel %vm8716_vm8, %v8336_v53, %v676_v57  ;;  %v674_v60 = vsel %vm8716_vm8, %v8335_v54, %v673_v58 }
 0x15a   : > { %678 = vst [vmem:[#allocation2 + $0x2c] sm:$0x1] %v677_v59  ;;  %675 = vst [vmem:[#allocation2 + $0x20] sm:$0x1] %v674_v60  ;;  %715 = vrot.lane.b32.xlu1 %v685_v61, %s8474_s7 }
 0x15b   : > { %v683_v0 = vld [vmem:[#allocation2 + $0x10] sm:$0xf] }
 0x15c   : > { %v680_v62 = vld [vmem:[#allocation2 + $0x4] sm:$0xf] }
 0x15d   : > { %705 = vrot.lane.b32.xlu0 %v680_v62, %s8474_s7  ;;  %v681_v1 = vld [vmem:[#allocation2 + $0x8] sm:$0x1]  ;;  %v684_v6 = vld [vmem:[#allocation2 + $0x14] sm:$0x1] }
 0x15e   : > { %721 = vrot.lane.b32.xlu1 %v688_v63, %s8474_s7 }
 0x15f   : > { %v689_v5 = vld [vmem:[#allocation2 + $0x28] sm:$0xf] }
 0x160   : > { %v686_v2 = vld [vmem:[#allocation2 + $0x1c] sm:$0xf] }
 0x161   : > { %711 = vrot.lane.b32.xlu0 %v683_v0, %s8474_s7  ;;  %v687_v4 = vld [vmem:[#allocation2 + $0x20] sm:$0x1]  ;;  %v690_v7 = vld [vmem:[#allocation2 + $0x2c] sm:$0x1] }
 0x162   : > { %707 = vrot.lane.b32.xlu1 %v681_v1, %s8474_s7 }
 0x165   : > { %717 = vrot.lane.b32.xlu0 %v686_v2, %s8474_s7 }
 0x166   : > { %719 = vrot.lane.b32.xlu1 %v687_v4, %s8474_s7 }
 0x169   : > { %723 = vrot.lane.b32.xlu0 %v689_v5, %s8474_s7 }
 0x16d   : > { %713 = vrot.lane.b32.xlu0 %v684_v6, %s8474_s7 }
 0x171   : > { %725 = vrot.lane.b32.xlu0 %v690_v7, %s8474_s7 }
 0x1c4   : > { %v704_v8 = vpop.permute.xlu1 %703 }
 0x1c5   : > { %740 = vst.msk [vmem:[#allocation2] sm:$0xf] %vm739_vm9, %v704_v8  ;;  %v11909_v8 = vmov 0 }
 0x1c6   : > { %v11910_v8 = vsel %vm8808_vm15, 4294967295, %v11909_v8 }
 0x1c7   : > { %11911 = vst [vmem:[#allocation14_spill] sm:$0xff] %v11910_v8 }
 0x1c8   : > { %v710_v9 = vpop.permute.xlu1 %709 }
 0x1c9   : > { %744 = vst.msk [vmem:[#allocation2 + $0xc] sm:$0xf] %vm739_vm9, %v710_v9 }
 0x1cc   : > { %v716_v10 = vpop.permute.xlu1 %715  ;;  %v753_v11 = vld [vmem:[#allocation2] sm:$0xf] }
 0x1cd   : > { %747 = vst.msk [vmem:[#allocation2 + $0x18] sm:$0xf] %vm739_vm9, %v716_v10  ;;  %777 = vrot.lane.b32.xlu1 %v753_v11, %s8475_s9 }
 0x1cf   : > { %v706_v12 = vpop.permute.xlu0 %705 }
 0x1d0   : > { %741 = vst.msk [vmem:[#allocation2 + $0x4] sm:$0xf] %vm739_vm9, %v706_v12  ;;  %v722_v13 = vpop.permute.xlu1 %721  ;;  %v756_v14 = vld [vmem:[#allocation2 + $0xc] sm:$0xf] }
 0x1d1   : > { %750 = vst.msk [vmem:[#allocation2 + $0x24] sm:$0xf] %vm739_vm9, %v722_v13  ;;  %783 = vrot.lane.b32.xlu1 %v756_v14, %s8475_s9 }
 0x1d3   : > { %v712_v15 = vpop.permute.xlu0 %711 }
 0x1d4   : > { %745 = vst.msk [vmem:[#allocation2 + $0x10] sm:$0xf] %vm739_vm9, %v712_v15  ;;  %v708_v17 = vpop.permute.xlu1 %707  ;;  %v759_v18 = vld [vmem:[#allocation2 + $0x18] sm:$0xf] }
 0x1d5   : > { %743 = vst.msk [vmem:[#allocation2 + $0x8] sm:$0x1] %vm11878_vm10, %v708_v17  ;;  %789 = vrot.lane.b32.xlu1 %v759_v18, %s8475_s9 }
 0x1d7   : > { %v718_v19 = vpop.permute.xlu0 %717  ;;  %v754_v20 = vld [vmem:[#allocation2 + $0x4] sm:$0xf] }
 0x1d8   : > { %748 = vst.msk [vmem:[#allocation2 + $0x1c] sm:$0xf] %vm739_vm9, %v718_v19  ;;  %779 = vrot.lane.b32.xlu0 %v754_v20, %s8475_s9  ;;  %v720_v22 = vpop.permute.xlu1 %719  ;;  %v762_v23 = vld [vmem:[#allocation2 + $0x24] sm:$0xf] }
 0x1d9   : > { %749 = vst.msk [vmem:[#allocation2 + $0x20] sm:$0x1] %vm11878_vm10, %v720_v22  ;;  %795 = vrot.lane.b32.xlu1 %v762_v23, %s8475_s9 }
 0x1db   : > { %v724_v24 = vpop.permute.xlu0 %723  ;;  %v757_v25 = vld [vmem:[#allocation2 + $0x10] sm:$0xf] }
 0x1dc   : > { %751 = vst.msk [vmem:[#allocation2 + $0x28] sm:$0xf] %vm739_vm9, %v724_v24  ;;  %785 = vrot.lane.b32.xlu0 %v757_v25, %s8475_s9  ;;  %v755_v26 = vld [vmem:[#allocation2 + $0x8] sm:$0x1] }
 0x1dd   : > { %781 = vrot.lane.b32.xlu1 %v755_v26, %s8475_s9 }
 0x1df   : > { %v714_v27 = vpop.permute.xlu0 %713  ;;  %v760_v28 = vld [vmem:[#allocation2 + $0x1c] sm:$0xf] }
 0x1e0   : > { %746 = vst.msk [vmem:[#allocation2 + $0x14] sm:$0x1] %vm11878_vm10, %v714_v27  ;;  %791 = vrot.lane.b32.xlu0 %v760_v28, %s8475_s9  ;;  %v761_v29 = vld [vmem:[#allocation2 + $0x20] sm:$0x1] }
 0x1e1   : > { %793 = vrot.lane.b32.xlu1 %v761_v29, %s8475_s9 }
 0x1e3   : > { %v726_v30 = vpop.permute.xlu0 %725  ;;  %v763_v31 = vld [vmem:[#allocation2 + $0x28] sm:$0xf] }
 0x1e4   : > { %752 = vst.msk [vmem:[#allocation2 + $0x2c] sm:$0x1] %vm11878_vm10, %v726_v30  ;;  %797 = vrot.lane.b32.xlu0 %v763_v31, %s8475_s9  ;;  %vm11879_vm10 = vcmask 1041408  }
 0x1e7   : > { %v758_v32 = vld [vmem:[#allocation2 + $0x14] sm:$0x1] }
 0x1e8   : > { %787 = vrot.lane.b32.xlu0 %v758_v32, %s8475_s9 }
 0x1eb   : > { %v764_v33 = vld [vmem:[#allocation2 + $0x2c] sm:$0x1] }
 0x1ec   : > { %799 = vrot.lane.b32.xlu0 %v764_v33, %s8475_s9 }
 0x23f   : > { %v778_v35 = vpop.permute.xlu1 %777 }
 0x240   : > { %814 = vst.msk [vmem:[#allocation2] sm:$0xf] %vm11877_vm11, %v778_v35 }
 0x243   : > { %v784_v36 = vpop.permute.xlu1 %783 }
 0x244   : > { %818 = vst.msk [vmem:[#allocation2 + $0xc] sm:$0xf] %vm11877_vm11, %v784_v36 }
 0x247   : > { %v790_v37 = vpop.permute.xlu1 %789  ;;  %v1109_v38 = vld [vmem:[#allocation2] sm:$0xf] }
 0x248   : > { %821 = vst.msk [vmem:[#allocation2 + $0x18] sm:$0xf] %vm11877_vm11, %v790_v37  ;;  %1125 = vrot.lane.b32.xlu1 %v1109_v38, %s8476_s10  ;;  %v1409_v53 = vld [vmem:[#allocation2] sm:$0xf] }
 0x249   : > { %v3528_v4 = vld [vmem:[#allocation2] sm:$0xe] }
 0x24a   : > { %v780_v39 = vpop.permute.xlu0 %779  ;;  %v7902_v12 = vrot.slane %v3528_v4, 9 }
 0x24b   : > { %815 = vst.msk [vmem:[#allocation2 + $0x4] sm:$0xf] %vm11877_vm11, %v780_v39  ;;  %v796_v40 = vpop.permute.xlu1 %795  ;;  %v1111_v41 = vld [vmem:[#allocation2 + $0xc] sm:$0xf]  ;;  %v3192_v39 = vld [vmem:[#allocation2] sm:$0xe] }
 0x24c   : > { %824 = vst.msk [vmem:[#allocation2 + $0x24] sm:$0xf] %vm11877_vm11, %v796_v40  ;;  %1129 = vrot.lane.b32.xlu1 %v1111_v41, %s8476_s10  ;;  %v1411_v56 = vld [vmem:[#allocation2 + $0xc] sm:$0xf] }
 0x24d   : > { %v3531_v13 = vld [vmem:[#allocation2 + $0xc] sm:$0xe] }
 0x24e   : > { %v786_v43 = vpop.permute.xlu0 %785  ;;  %v7903_v22 = vrot.slane %v3531_v13, 9 }
 0x24f   : > { %819 = vst.msk [vmem:[#allocation2 + $0x10] sm:$0xf] %vm11877_vm11, %v786_v43  ;;  %v782_v44 = vpop.permute.xlu1 %781  ;;  %v1113_v45 = vld [vmem:[#allocation2 + $0x18] sm:$0xf]  ;;  %v2478_v43 = vld [vmem:[#allocation2] sm:$0xf] }
 0x250   : > { %817 = vst.msk [vmem:[#allocation2 + $0x8] sm:$0x1] %vm11876_vm12, %v782_v44  ;;  %1133 = vrot.lane.b32.xlu1 %v1113_v45, %s8476_s10  ;;  %v1413_v60 = vld [vmem:[#allocation2 + $0x18] sm:$0xf] }
 0x251   : > { %v3534_v23 = vld [vmem:[#allocation2 + $0x18] sm:$0xe] }
 0x252   : > { %v792_v46 = vpop.permute.xlu0 %791  ;;  %v1110_v47 = vld [vmem:[#allocation2 + $0x4] sm:$0xf]  ;;  %v7904_v30 = vrot.slane %v3534_v23, 9 }
 0x253   : > { %822 = vst.msk [vmem:[#allocation2 + $0x1c] sm:$0xf] %vm11877_vm11, %v792_v46  ;;  %1127 = vrot.lane.b32.xlu0 %v1110_v47, %s8476_s10  ;;  %v794_v48 = vpop.permute.xlu1 %793  ;;  %v1115_v49 = vld [vmem:[#allocation2 + $0x24] sm:$0xf]  ;;  %v7883_v46 = vrot.slane %v3192_v39, 9 }
 0x254   : > { %823 = vst.msk [vmem:[#allocation2 + $0x20] sm:$0x1] %vm11876_vm12, %v794_v48  ;;  %1137 = vrot.lane.b32.xlu1 %v1115_v49, %s8476_s10  ;;  %v8797_v63 = vld [vmem:[#allocation2 + $0x4] sm:$0xf]  ;;  %v3195_v47 = vld [vmem:[#allocation2 + $0xc] sm:$0xe] }
 0x255   : > { %v1410_v1 = vld [vmem:[#allocation2 + $0x4] sm:$0xf]  ;;  %v3554_v7 = vrot.slane %v8797_v63, 5  ;;  %v2491_v49 = vshrl.u32 %v2478_v43, 16 }
 0x256   : > { %v798_v50 = vpop.permute.xlu0 %797  ;;  %v1112_v51 = vld [vmem:[#allocation2 + $0x10] sm:$0xf]  ;;  %v8801_v2 = vld [vmem:[#allocation2 + $0x4] sm:$0xf] }
 0x257   : > { %825 = vst.msk [vmem:[#allocation2 + $0x28] sm:$0xf] %vm11877_vm11, %v798_v50  ;;  %1131 = vrot.lane.b32.xlu0 %v1112_v51, %s8476_s10  ;;  %v8792_v61 = vld [vmem:[#allocation2 + $0x10] sm:$0xf]  ;;  %v1415_v6 = vld [vmem:[#allocation2 + $0x24] sm:$0xf]  ;;  %v3555_v15 = vsel %vm8808_vm15, %v7902_v12, %v3554_v7 }
 0x258   : > { %1425 = vrot.lane.b32.xlu1 %v1409_v53, %s8474_s7  ;;  %v849_v5 = vpack.i.b16 %v8792_v61, %v8801_v2  ;;  %v8812_v9 = vld [vmem:[#allocation2 + $0x10] sm:$0xf]  ;;  %v3537_v31 = vld [vmem:[#allocation2 + $0x24] sm:$0xe]  ;;  %v3530_v48 = vld [vmem:[#allocation2 + $0x8] sm:$0x1] }
 0x259   : > { %v1412_v11 = vld [vmem:[#allocation2 + $0x10] sm:$0xf]  ;;  %v3561_v17 = vrot.slane %v8812_v9, 5  ;;  %v8847_v37 = vld [vmem:[#allocation2 + $0x4] sm:$0xf]  ;;  %v7905_v38 = vrot.slane %v3537_v31, 9 }
 0x25a   : > { %v788_v54 = vpop.permute.xlu0 %787  ;;  %v1114_v55 = vld [vmem:[#allocation2 + $0x1c] sm:$0xf]  ;;  %v934_v14 = vrot.slane %v849_v5, %v8627_v21  ;;  %v3218_v41 = vrot.slane %v8847_v37, 5  ;;  %v8856_v45 = vld [vmem:[#allocation2 + $0x10] sm:$0xf]  ;;  %v2494_v50 = vshll.u32 %v2478_v43, 16 }
 0x25b   : > { %820 = vst.msk [vmem:[#allocation2 + $0x14] sm:$0x1] %vm11876_vm12, %v788_v54  ;;  %1135 = vrot.lane.b32.xlu0 %v1114_v55, %s8476_s10  ;;  %v8794_v62 = vld [vmem:[#allocation2 + $0x1c] sm:$0xf]  ;;  %v3562_v24 = vsel %vm8808_vm15, %v7903_v22, %v3561_v17  ;;  %v3225_v53 = vrot.slane %v8856_v45, 5  ;;  %vm11880_vm11 = vcmask 916480  }
 0x25c   : > { %1429 = vrot.lane.b32.xlu1 %v1411_v56, %s8474_s7  ;;  %v8823_v18 = vld [vmem:[#allocation2 + $0x1c] sm:$0xf]  ;;  %v3219_v51 = vsel %vm8808_vm15, %v7883_v46, %v3218_v41  ;;  %v7884_v56 = vrot.slane %v3195_v47, 9  ;;  %v2496_v4 = vrot.slane %v2494_v50, 5  ;;  %v8878_v12 = vld [vmem:[#allocation2 + $0x4] sm:$0xf] }
 0x25d   : > { %v1414_v20 = vld [vmem:[#allocation2 + $0x1c] sm:$0xf]  ;;  %v3568_v25 = vrot.slane %v8823_v18, 5  ;;  %v2484_v22 = vld [vmem:[#allocation2 + $0x18] sm:$0xf]  ;;  %v11912_v18 = vmov 0 }
 0x25e   : > { %v800_v57 = vpop.permute.xlu0 %799  ;;  %v1116_v58 = vld [vmem:[#allocation2 + $0x28] sm:$0xf]  ;;  %v8865_v55 = vld [vmem:[#allocation2 + $0x1c] sm:$0xf]  ;;  %v3226_v5 = vsel %vm8808_vm15, %v7884_v56, %v3225_v53  ;;  %v3201_v63 = vld [vmem:[#allocation2 + $0x24] sm:$0xe] }
 0x25f   : > { %v8788_v59 = vld [vmem:[#allocation2 + $0x28] sm:$0xf]  ;;  %826 = vst.msk [vmem:[#allocation2 + $0x2c] sm:$0x1] %vm11876_vm12, %v800_v57  ;;  %1139 = vrot.lane.b32.xlu0 %v1116_v58, %s8476_s10  ;;  %v3569_v32 = vsel %vm8808_vm15, %v7904_v30, %v3568_v25  ;;  %v3557_v57 = vrot.slane %v3530_v48, 5  ;;  %v2500_v30 = vshll.u32 %v8878_v12, 16 }
 0x260   : > { %1433 = vrot.lane.b32.xlu1 %v1413_v60, %s8474_s7  ;;  %v855_v0 = vpack.i.b16 %v8788_v59, %v8794_v62  ;;  %v8835_v27 = vld [vmem:[#allocation2 + $0x28] sm:$0xf]  ;;  %v2481_v58 = vld [vmem:[#allocation2 + $0xc] sm:$0xf]  ;;  %v3198_v60 = vld [vmem:[#allocation2 + $0x18] sm:$0xe] }
 0x261   : > { %v1416_v29 = vld [vmem:[#allocation2 + $0x28] sm:$0xf]  ;;  %v3575_v33 = vrot.slane %v8835_v27, 5  ;;  %v2515_v13 = vshrl.u32 %v2481_v58, 16  ;;  %v2087_v31 = vld [vmem:[#allocation2] sm:$0xf] }
 0x262   : > { %v942_v10 = vrot.slane %v855_v0, %v8627_v21  ;;  %v3533_v0 = vld [vmem:[#allocation2 + $0x14] sm:$0x1]  ;;  %v2542_v39 = vshll.u32 %v2484_v22, 16  ;;  %v7886_v43 = vrot.slane %v3201_v63, 9  ;;  %v3570_v9 = vrot.slane %v3568_v25, 4 }
 0x263   : > { %1427 = vrot.lane.b32.xlu0 %v1410_v1, %s8474_s7  ;;  %v3576_v40 = vsel %vm8808_vm15, %v7905_v38, %v3575_v33  ;;  %v2493_v1 = vrot.slane %v2491_v49, 4  ;;  %v2539_v38 = vshrl.u32 %v2484_v22, 16  ;;  %v2487_v46 = vld [vmem:[#allocation2 + $0x24] sm:$0xf]  ;;  %v8903_v48 = vrot.slane %v2500_v30, 5 }
 0x264   : > { %1437 = vrot.lane.b32.xlu1 %v1415_v6, %s8474_s7  ;;  %v943_v19 = vcombine.low %v934_v14, %v942_v10  ;;  %v944_v28 = vcombine.high %v934_v14, %v942_v10  ;;  %v3556_v6 = vrot.slane %v3554_v7, 4  ;;  %v3232_v10 = vrot.slane %v8865_v55, 5  ;;  %v3536_v7 = vld [vmem:[#allocation2 + $0x20] sm:$0x1]  ;;  %v8906_v50 = vld [vmem:[#allocation2 + $0x1c] sm:$0xf] }
 0x265   : > { %v2518_v14 = vshll.u32 %v2481_v58, 16  ;;  %v2497_v23 = vor.u32 %v2496_v4, %v2493_v1  ;;  %v11913_v18 = vsel %vm8911_vm4, 4294967295, %v11912_v18  ;;  %v2541_v56 = vrot.slane %v2539_v38, 4  ;;  %v3194_v4 = vld [vmem:[#allocation2 + $0x8] sm:$0x1] }
 0x266   : > { %v8833_v26 = vrot.slane %v943_v19, %v8631_v34  ;;  %v958_v36 = vrot.slane %v944_v28, %v8631_v34  ;;  %v7885_v19 = vrot.slane %v3198_v60, 9  ;;  %v3563_v28 = vrot.slane %v3561_v17, 4  ;;  %11914 = vst [vmem:[#allocation15_spill] sm:$0xff] %v11913_v18  ;;  %v8927_v63 = vld [vmem:[#allocation2 + $0x28] sm:$0xf] }
 0x267   : > { %1431 = vrot.lane.b32.xlu0 %v1412_v11, %s8474_s7  ;;  %v8876_v11 = vld [vmem:[#allocation2 + $0x28] sm:$0xf]  ;;  %v3571_v17 = vrot.slane %v3536_v7, 5  ;;  %v2498_v25 = vrot.slane %v2497_v23, 4  ;;  %v2566_v1 = vshll.u32 %v2487_v46, 16  ;;  %v857_v23 = vshrl.u32 %v8788_v59, 16 }
 0x268   : > { %3580 = vrot.lane.b32.xlu1 %v3555_v15, %s8474_s7  ;;  %v8118_v35 = vcombine.high %v8833_v26, %v8833_v26  ;;  %v7784_v44 = vcombine.low %v958_v36, %v958_v36  ;;  %v8120_v54 = vcombine.high %v958_v36, %v958_v36  ;;  %v3558_v15 = vsel %vm8808_vm15, %v3556_v6, %v3557_v57  ;;  %v2090_v7 = vld [vmem:[#allocation2 + $0xc] sm:$0xf]  ;;  %v3197_v30 = vld [vmem:[#allocation2 + $0x14] sm:$0x1] }
 0x269   : > { %v2520_v36 = vrot.slane %v2518_v14, 5  ;;  %v2544_v57 = vrot.slane %v2542_v39, 5  ;;  %v3572_v58 = vsel %vm8808_vm15, %v3570_v9, %v3571_v17  ;;  %v2103_v6 = vshll.u32 %v2087_v31, 16  ;;  %v8949_v37 = vld [vmem:[#allocation2 + $0xc] sm:$0xf] }
 0x26a   : > { %v3577_v14 = vrot.slane %v3575_v33, 4  ;;  %v2568_v27 = vrot.slane %v2566_v1, 5  ;;  %v856_v38 = vshrl.u32 %v8794_v62, 16  ;;  %v3220_v39 = vrot.slane %v3218_v41, 4  ;;  %v8962_v1 = vld [vmem:[#allocation2] sm:$0xf] }
 0x26b   : > { %1435 = vrot.lane.b32.xlu0 %v1414_v20, %s8474_s7  ;;  %v3564_v20 = vrot.slane %v3533_v0, 5  ;;  %v2563_v0 = vshrl.u32 %v2487_v46, 16  ;;  %v2545_v22 = vor.u32 %v2544_v57, %v2541_v56  ;;  %v2124_v9 = vshrl.u32 %v2090_v7, 16  ;;  %v8944_v46 = vld [vmem:[#allocation2 + $0x4] sm:$0xf] }
 0x26c   : > { %3584 = vrot.lane.b32.xlu1 %v3562_v24, %s8474_s7  ;;  %v3233_v24 = vsel %vm8808_vm15, %v7885_v19, %v3232_v10  ;;  %v858_v62 = vpack.i.b16 %v857_v23, %v856_v38  ;;  %v3203_v45 = vld [vmem:[#allocation2 + $0x2c] sm:$0x1]  ;;  %v837_v55 = vpack.i.b16 %v8949_v37, %v8962_v1  ;;  %vm1081_vm12 = vcmask 785408  }
 0x26d   : > { %v2546_v17 = vrot.slane %v2545_v22, 4 }
 0x26f   : > { %1439 = vrot.lane.b32.xlu0 %v1416_v29, %s8474_s7  ;;  %v3239_v29 = vrot.slane %v8876_v11, 5 }
 0x270   : > { %3588 = vrot.lane.b32.xlu1 %v3569_v32, %s8474_s7  ;;  %v8892_v32 = vld [vmem:[#allocation2 + $0x10] sm:$0xf] }
 0x271   : > { %v3240_v47 = vsel %vm8808_vm15, %v7886_v43, %v3239_v29  ;;  %v2524_v49 = vshll.u32 %v8892_v32, 16  ;;  %v3200_v43 = vld [vmem:[#allocation2 + $0x20] sm:$0x1]  ;;  %v2528_v22 = vshrl.u32 %v8892_v32, 16 }
 0x273   : > { %1038 = vrot.lane.b32.xlu0 %v8118_v35, %s8468_s26  ;;  %v2517_v35 = vrot.slane %v2515_v13, 4  ;;  %v2503_v13 = vsel %vm8911_vm4, %v2498_v25, %v8903_v48  ;;  %v3227_v25 = vrot.slane %v3225_v53, 4  ;;  %v8967_v53 = vld [vmem:[#allocation2 + $0x10] sm:$0xf] }
 0x274   : > { %3592 = vrot.lane.b32.xlu1 %v3576_v40, %s8474_s7  ;;  %v3565_v40 = vsel %vm8808_vm15, %v3563_v28, %v3564_v20  ;;  %v3221_v28 = vrot.slane %v3194_v4, 5  ;;  %v2133_v32 = vshll.u32 %v8967_v53, 16 }
 0x277   : > { %1048 = vrot.lane.b32.xlu0 %v7784_v44, %s8466_s16  ;;  %v3539_v44 = vld [vmem:[#allocation2 + $0x2c] sm:$0x1] }
 0x278   : > { %3244 = vrot.lane.b32.xlu1 %v3219_v51, %s8476_s10  ;;  %v2100_v51 = vshrl.u32 %v2087_v31, 16  ;;  %v3578_v60 = vrot.slane %v3539_v44, 5  ;;  %v2565_v31 = vrot.slane %v2563_v0, 4  ;;  %v3228_v44 = vrot.slane %v3197_v30, 5 }
 0x279   : > { %v2109_v0 = vshll.u32 %v8944_v46, 16 }
 0x27a   : > { %v2102_v19 = vrot.slane %v2100_v51, 4  ;;  %v2127_v51 = vshll.u32 %v2090_v7, 16  ;;  %v3229_v4 = vsel %vm8808_vm15, %v3227_v25, %v3228_v44  ;;  %v2552_v7 = vshrl.u32 %v8906_v50, 16 }
 0x27b   : > { %1058 = vrot.lane.b32.xlu0 %v8120_v54, %s8467_s25  ;;  %v2521_v54 = vor.u32 %v2520_v36, %v2517_v35  ;;  %v2105_v35 = vrot.slane %v2103_v6, 5  ;;  %v851_v36 = vshrl.u32 %v8792_v61, 16  ;;  %v850_v61 = vshrl.u32 %v8801_v2, 16  ;;  %v2093_v2 = vld [vmem:[#allocation2 + $0x18] sm:$0xf] }
 0x27c   : > { %3248 = vrot.lane.b32.xlu1 %v3226_v5, %s8476_s10  ;;  %v2548_v5 = vshll.u32 %v8906_v50, 16  ;;  %v8970_v6 = vrot.slane %v858_v62, %v8627_v21  ;;  %v2094_v50 = vld [vmem:[#allocation2 + $0x1c] sm:$0xf]  ;;  %v8997_v44 = vrot.slane %v2528_v22, 4  ;;  %v2576_v62 = vshrl.u32 %v8927_v63, 16 }
 0x27d   : > { %v2522_v20 = vrot.slane %v2521_v54, 4  ;;  %v2106_v54 = vor.u32 %v2105_v35, %v2102_v19  ;;  %v852_v56 = vpack.i.b16 %v851_v36, %v850_v61  ;;  %v2151_v19 = vshll.u32 %v2093_v2, 16 }
 0x27e   : > { %v8933_v33 = vrot.slane %v2548_v5, 5  ;;  %v2126_v5 = vrot.slane %v2124_v9, 4  ;;  %v3242_v35 = vrot.slane %v3203_v45, 5  ;;  %v8999_v61 = vrot.slane %v2552_v7, 4 }
 0x27f   : > { %3582 = vrot.lane.b32.xlu0 %v3558_v15, %s8474_s7  ;;  %v8924_v15 = vrot.slane %v2524_v49, 5  ;;  %v2569_v49 = vor.u32 %v2568_v27, %v2565_v31  ;;  %v2107_v23 = vrot.slane %v2106_v54, 4  ;;  %v8987_v27 = vrot.slane %v2109_v0, 5  ;;  %v2097_v54 = vld [vmem:[#allocation2 + $0x28] sm:$0xf] }
 0x280   : > { %3252 = vrot.lane.b32.xlu1 %v3233_v24, %s8476_s10  ;;  %v3579_v24 = vsel %vm8808_vm15, %v3577_v14, %v3578_v60  ;;  %v2551_v41 = vsel %vm8911_vm4, %v2546_v17, %v8933_v33  ;;  %v3235_v60 = vrot.slane %v3200_v43, 5  ;;  %v2148_v14 = vshrl.u32 %v2093_v2, 16 }
 0x281   : > { %v2527_v59 = vsel %vm8911_vm4, %v2522_v20, %v8924_v15  ;;  %v2096_v20 = vld [vmem:[#allocation2 + $0x24] sm:$0xf]  ;;  %v2153_v9 = vrot.slane %v2151_v19, 5  ;;  %v2157_v25 = vshll.u32 %v2094_v50, 16  ;;  %v2161_v45 = vshrl.u32 %v2094_v50, 16 }
 0x282   : > { %v2172_v38 = vshrl.u32 %v2096_v20, 16  ;;  %v2150_v43 = vrot.slane %v2148_v14, 4  ;;  %v2555_v19 = vor.u32 %v8999_v61, %v8933_v33 }
 0x283   : > { %3586 = vrot.lane.b32.xlu0 %v3565_v40, %s8474_s7  ;;  %v2572_v40 = vshll.u32 %v8927_v63, 16 }
 0x284   : > { %3256 = vrot.lane.b32.xlu1 %v3240_v47, %s8476_s10  ;;  %v3222_v47 = vsel %vm8808_vm15, %v3220_v39, %v3221_v28  ;;  %v8980_v28 = vld [vmem:[#allocation2 + $0x24] sm:$0xf]  ;;  %v8993_v39 = vld [vmem:[#allocation2 + $0x18] sm:$0xf]  ;;  %v2174_v2 = vrot.slane %v2172_v38, 4 }
 0x285   : > { %v8957_v57 = vrot.slane %v2572_v40, 5  ;;  %v843_v17 = vpack.i.b16 %v8980_v28, %v8993_v39 }
 0x287   : > { %3590 = vrot.lane.b32.xlu0 %v3572_v58, %s8474_s7  ;;  %v3234_v58 = vrot.slane %v3232_v10, 4  ;;  %v2570_v10 = vrot.slane %v2569_v49, 4  ;;  %v2112_v49 = vsel %vm8911_vm4, %v2107_v23, %v8987_v27  ;;  %v874_v11 = vrot.slane %v843_v17, %v8627_v21  ;;  %v2483_v17 = vld [vmem:[#allocation2 + $0x14] sm:$0x1] }
 0x288   : > { %2586 = vrot.lane.b32.xlu1 %v2503_v13, %s8474_s7  ;;  %v2129_v13 = vrot.slane %v2127_v51, 5  ;;  %v3241_v51 = vrot.slane %v3239_v29, 4  ;;  %v2531_v29 = vor.u32 %v8997_v44, %v8924_v15 }
 0x289   : > { %v2575_v30 = vsel %vm8911_vm4, %v2570_v10, %v8957_v57  ;;  %v3236_v31 = vsel %vm8808_vm15, %v3234_v58, %v3235_v60  ;;  %v9026_v10 = vrot.slane %v2157_v25, 5  ;;  %v838_v25 = vshrl.u32 %v8962_v1, 16 }
 0x28a   : > { %v2130_v40 = vor.u32 %v2129_v13, %v2126_v5  ;;  %v3243_v60 = vsel %vm8808_vm15, %v3241_v51, %v3242_v35  ;;  %v2181_v5 = vshll.u32 %v2097_v54, 16  ;;  %v2185_v13 = vshrl.u32 %v2097_v54, 16  ;;  %v9061_v54 = vld [vmem:[#allocation2 + $0x28] sm:$0xf] }
 0x28b   : > { %3594 = vrot.lane.b32.xlu0 %v3579_v24, %s8474_s7  ;;  %v8978_v24 = vrot.slane %v852_v56, %v8627_v21  ;;  %v2113_v56 = vshrl.u32 %v8944_v46, 16  ;;  %v2137_v46 = vshrl.u32 %v8967_v53, 16  ;;  %v845_v35 = vshrl.u32 %v8980_v28, 16 }
 0x28c   : > { %2590 = vrot.lane.b32.xlu1 %v2527_v59, %s8474_s7  ;;  %v2175_v59 = vshll.u32 %v2096_v20, 16  ;;  %v2131_v0 = vrot.slane %v2130_v40, 4  ;;  %v9032_v20 = vrot.slane %v2576_v62, 4  ;;  %v9050_v38 = vrot.slane %v2185_v13, 4 }
 0x28d   : > { %v977_v36 = vcombine.low %v8978_v24, %v8970_v6  ;;  %v978_v14 = vcombine.high %v8978_v24, %v8970_v6  ;;  %v9035_v7 = vrot.slane %v2113_v56, 4  ;;  %v9039_v50 = vrot.slane %v2137_v46, 4  ;;  %v2489_v46 = vld [vmem:[#allocation2 + $0x2c] sm:$0x1] }
 0x28e   : > { %v2177_v58 = vrot.slane %v2175_v59, 5  ;;  %v9042_v6 = vrot.slane %v2161_v45, 4  ;;  %v9044_v24 = vrot.slane %v2181_v5, 5  ;;  %v844_v62 = vshrl.u32 %v8993_v39, 16  ;;  %v9082_v45 = vld [vmem:[#allocation2 + $0x4] sm:$0xf] }
 0x28f   : > { %3246 = vrot.lane.b32.xlu0 %v3222_v47, %s8476_s10  ;;  %v9004_v47 = vrot.slane %v837_v55, %v8627_v21  ;;  %v985_v63 = vrot.slane %v977_v36, %v8631_v34  ;;  %v992_v59 = vrot.slane %v978_v14, %v8631_v34  ;;  %v2116_v56 = vor.u32 %v9035_v7, %v8987_v27  ;;  %v2879_v27 = vld [vmem:[#allocation2 + $0x24] sm:$0xe] }
 0x290   : > { %2594 = vrot.lane.b32.xlu1 %v2551_v41, %s8474_s7  ;;  %v9011_v41 = vrot.slane %v2133_v32, 5  ;;  %v2178_v22 = vor.u32 %v2177_v58, %v2174_v2  ;;  %v2504_v32 = vshrl.u32 %v8878_v12, 16  ;;  %v839_v12 = vshrl.u32 %v8949_v37, 16  ;;  %v9070_v2 = vld [vmem:[#allocation2 + $0x10] sm:$0xf] }
 0x291   : > { %v7781_v53 = vcombine.low %v985_v63, %v985_v63  ;;  %v8119_v40 = vcombine.high %v985_v63, %v985_v63  ;;  %v2579_v37 = vor.u32 %v9032_v20, %v8957_v57  ;;  %v846_v39 = vpack.i.b16 %v845_v35, %v844_v62 }
 0x292   : > { %v2136_v55 = vsel %vm8911_vm4, %v2131_v0, %v9011_v41  ;;  %v2506_v51 = vrot.slane %v2504_v32, 4  ;;  %v2140_v63 = vor.u32 %v9039_v50, %v9011_v41  ;;  %v2534_v58 = vshll.u32 %v2483_v17, 16 }
 0x293   : > { %3250 = vrot.lane.b32.xlu0 %v3229_v4, %s8476_s10  ;;  %v2154_v4 = vor.u32 %v2153_v9, %v2150_v43  ;;  %v2179_v43 = vrot.slane %v2178_v22, 4  ;;  %v840_v57 = vpack.i.b16 %v839_v12, %v838_v25  ;;  %v2188_v0 = vor.u32 %v9050_v38, %v9044_v24  ;;  %v2876_v22 = vld [vmem:[#allocation2 + $0x18] sm:$0xe]  ;;  %v2870_v12 = vld [vmem:[#allocation2] sm:$0xe] }
 0x294   : > { %2598 = vrot.lane.b32.xlu1 %v2575_v30, %s8474_s7  ;;  %v875_v30 = vcombine.low %v9004_v47, %v874_v11  ;;  %v2920_v5 = vrot.slane %v9061_v54, 5  ;;  %v2507_v14 = vor.u32 %v2506_v51, %v8903_v48  ;;  %v9091_v7 = vrot.slane %v846_v39, %v8627_v21  ;;  %v2092_v25 = vld [vmem:[#allocation2 + $0x14] sm:$0x1] }
 0x295   : > { %v2155_v23 = vrot.slane %v2154_v4, 4  ;;  %v2184_v1 = vsel %vm8911_vm4, %v2179_v43, %v9044_v24  ;;  %v7785_v4 = vcombine.low %v992_v59, %v992_v59  ;;  %v7867_v32 = vrot.slane %v2879_v27, 9 }
 0x296   : > { %v9057_v28 = vrot.slane %v875_v30, %v8631_v34  ;;  %v2906_v30 = vrot.slane %v9070_v2, 5  ;;  %v2532_v35 = vrot.slane %v2531_v29, 4  ;;  %v900_v48 = vrot.slane %v840_v57, %v8627_v21  ;;  %v2881_v57 = vld [vmem:[#allocation2 + $0x2c] sm:$0x1] }
 0x297   : > { %3254 = vrot.lane.b32.xlu0 %v3236_v31, %s8476_s10  ;;  %v2480_v31 = vld [vmem:[#allocation2 + $0x8] sm:$0x1]  ;;  %v2160_v36 = vsel %vm8911_vm4, %v2155_v23, %v9026_v10  ;;  %v2486_v23 = vld [vmem:[#allocation2 + $0x20] sm:$0x1]  ;;  %v2899_v43 = vrot.slane %v9082_v45, 5  ;;  %v7866_v17 = vrot.slane %v2876_v22, 9  ;;  %v9105_v62 = vsel %vm8808_vm15, %v7867_v32, %v2920_v5 }
 0x298   : > { %2195 = vrot.lane.b32.xlu1 %v2112_v49, %s8476_s10  ;;  %v2510_v9 = vshll.u32 %v2480_v31, 16  ;;  %v876_v49 = vcombine.high %v9004_v47, %v874_v11  ;;  %v2164_v47 = vor.u32 %v9042_v6, %v9026_v10  ;;  %v8121_v11 = vcombine.high %v992_v59, %v992_v59 }
 0x299   : > { %v2582_v59 = vshll.u32 %v2489_v46, 16  ;;  %v2508_v44 = vrot.slane %v2507_v14, 4  ;;  %v9110_v29 = vrot.slane %v2555_v19, 4  ;;  %v909_v51 = vcombine.low %v900_v48, %v9091_v7  ;;  %v2875_v46 = vld [vmem:[#allocation2 + $0x14] sm:$0x1] }
 0x29a   : > { %v890_v13 = vrot.slane %v876_v49, %v8631_v34  ;;  %v2512_v20 = vrot.slane %v2510_v9, 5  ;;  %v2558_v49 = vshll.u32 %v2486_v23, 16  ;;  %v7864_v39 = vrot.slane %v2870_v12, 9  ;;  %v2872_v23 = vld [vmem:[#allocation2 + $0x8] sm:$0x1] }
 0x29b   : > { %3258 = vrot.lane.b32.xlu0 %v3243_v60, %s8476_s10  ;;  %v9077_v60 = vld [vmem:[#allocation2 + $0x1c] sm:$0xf]  ;;  %v9129_v27 = vrot.slane %v2579_v37, 4  ;;  %v910_v37 = vcombine.high %v900_v48, %v9091_v7  ;;  %v9144_v22 = vrot.slane %v2140_v63, 4  ;;  %v2923_v32 = vrot.slane %v2881_v57, 5 }
 0x29c   : > { %2199 = vrot.lane.b32.xlu1 %v2136_v55, %s8476_s10  ;;  %v8114_v55 = vcombine.high %v9057_v28, %v9057_v28  ;;  %v2913_v31 = vrot.slane %v9077_v60, 5  ;;  %v7777_v15 = vcombine.low %v890_v13, %v890_v13  ;;  %v2513_v33 = vsel %vm8911_vm4, %v2508_v44, %v2512_v20  ;;  %v2878_v20 = vld [vmem:[#allocation2 + $0x20] sm:$0x1] }
 0x29d   : > { %v8116_v61 = vcombine.high %v890_v13, %v890_v13  ;;  %v2560_v45 = vrot.slane %v2558_v49, 5  ;;  %v2143_v13 = vshll.u32 %v2092_v25, 16  ;;  %v2909_v12 = vrot.slane %v2875_v46, 5 }
 0x29e   : > { %v2915_v50 = vrot.slane %v2913_v31, 4  ;;  %v2916_v63 = vrot.slane %v2878_v20, 5  ;;  %v2922_v7 = vrot.slane %v2920_v5, 4 }
 0x29f   : > { %1033 = vrot.lane.b32.xlu0 %v7781_v53, %s8470_s29  ;;  %v2873_v53 = vld [vmem:[#allocation2 + $0xc] sm:$0xe]  ;;  %v9159_v48 = vrot.slane %v2143_v13, 5 }
 0x2a0   : > { %2203 = vrot.lane.b32.xlu1 %v2160_v36, %s8476_s10  ;;  %v2536_v36 = vrot.slane %v2534_v58, 5  ;;  %v7865_v9 = vrot.slane %v2873_v53, 9  ;;  %v917_v53 = vrot.slane %v909_v51, %v8631_v34  ;;  %v2901_v51 = vrot.slane %v2899_v43, 4 }
 0x2a1   : > { %v2146_v24 = vsel %vm8911_vm4, %v9144_v22, %v9159_v48  ;;  %v1711_v22 = vld [vmem:[#allocation2 + $0xc] sm:$0xf] }
 0x2a2   : > { %v9116_v2 = vsel %vm8808_vm15, %v7865_v9, %v2906_v30  ;;  %v2537_v60 = vsel %vm8911_vm4, %v2532_v35, %v2536_v36  ;;  %v2095_v9 = vld [vmem:[#allocation2 + $0x20] sm:$0x1]  ;;  %v7774_v44 = vcombine.low %v917_v53, %v917_v53 }
 0x2a3   : > { %1043 = vrot.lane.b32.xlu0 %v8119_v40, %s8469_s28  ;;  %v2089_v40 = vld [vmem:[#allocation2 + $0x8] sm:$0x1] }
 0x2a4   : > { %2207 = vrot.lane.b32.xlu1 %v2184_v1, %s8476_s10  ;;  %v9120_v1 = vsel %vm8808_vm15, %v7866_v17, %v2913_v31  ;;  %v2119_v19 = vshll.u32 %v2089_v40, 16  ;;  %v2902_v17 = vrot.slane %v2872_v23, 5  ;;  %v9168_v31 = vsel %vm8808_vm15, %v2922_v7, %v2923_v32  ;;  %v1717_v23 = vld [vmem:[#allocation2 + $0x24] sm:$0xf] }
 0x2a5   : > { %v2933_v58 = vpack.i.b16 %v9105_v62, %v9120_v1  ;;  %v2947_v48 = vshrl.u32 %v9168_v31, 16 }
 0x2a6   : > { %v9149_v35 = vrot.slane %v2119_v19, 5  ;;  %v8115_v19 = vcombine.high %v917_v53, %v917_v53 }
 0x2a7   : > { %1053 = vrot.lane.b32.xlu0 %v7785_v4, %s8464_s12  ;;  %v9131_v4 = vrot.slane %v2582_v59, 5  ;;  %v2964_v36 = vrot.slane %v2933_v58, %v8627_v21  ;;  %v2098_v59 = vld [vmem:[#allocation2 + $0x2c] sm:$0x1]  ;;  %v9182_v58 = vrot.slane %v2164_v47, 4 }
 0x2a8   : > { %1003 = vrot.lane.b32.xlu1 %v8114_v55, %s8468_s26  ;;  %v9135_v55 = vrot.slane %v2116_v56, 4  ;;  %v2561_v56 = vsel %vm8911_vm4, %v9110_v29, %v2560_v45  ;;  %v9164_v29 = vrot.slane %v910_v37, %v8631_v34  ;;  %v2191_v49 = vshll.u32 %v2098_v59, 16  ;;  %v1708_v59 = vld [vmem:[#allocation2] sm:$0xf] }
 0x2a9   : > { %v2585_v41 = vsel %vm8911_vm4, %v9129_v27, %v9131_v4  ;;  %v9205_v4 = vrot.slane %v2188_v0, 4 }
 0x2aa   : > { %v2122_v10 = vsel %vm8911_vm4, %v9135_v55, %v9149_v35  ;;  %v7778_v55 = vcombine.low %v9164_v29, %v9164_v29  ;;  %v8117_v13 = vcombine.high %v9164_v29, %v9164_v29  ;;  %v1796_v29 = vshrl.u32 %v1717_v23, 16 }
 0x2ab   : > { %1063 = vrot.lane.b32.xlu0 %v8121_v11, %s8465_s14  ;;  %v2900_v11 = vsel %vm8808_vm15, %v7864_v39, %v2899_v43  ;;  %v9175_v39 = vsel %vm8808_vm15, %v2915_v50, %v2916_v63  ;;  %v2903_v43 = vsel %vm8808_vm15, %v2901_v51, %v2902_v17  ;;  %v1751_v51 = vshll.u32 %v1711_v22, 16 }
 0x2ac   : > { %1013 = vrot.lane.b32.xlu1 %v7777_v15, %s8466_s16  ;;  %v2927_v14 = vpack.i.b16 %v9116_v2, %v2900_v11  ;;  %v2908_v15 = vrot.slane %v2906_v30, 4  ;;  %v2167_v30 = vshll.u32 %v2095_v9, 16  ;;  %v2945_v57 = vpack.i.b16 %v9168_v31, %v9175_v39  ;;  %v1718_v9 = vld [vmem:[#allocation2 + $0x28] sm:$0xf] }
 0x2ad   : > { %v2940_v37 = vshrl.u32 %v2903_v43, 16 }
 0x2ae   : > { %v2956_v40 = vrot.slane %v2927_v14, %v8627_v21  ;;  %v2910_v25 = vsel %vm8808_vm15, %v2908_v15, %v2909_v12  ;;  %v9219_v38 = vrot.slane %v2945_v57, %v8627_v21  ;;  %v1709_v12 = vld [vmem:[#allocation2 + $0x4] sm:$0xf]  ;;  %v1712_v15 = vld [vmem:[#allocation2 + $0x10] sm:$0xf] }
 0x2af   : > { %2588 = vrot.lane.b32.xlu0 %v2513_v33, %s8474_s7  ;;  %v2929_v33 = vshrl.u32 %v9116_v2, 16  ;;  %v2939_v27 = vpack.i.b16 %v2910_v25, %v2903_v43  ;;  %v2928_v2 = vshrl.u32 %v2900_v11, 16  ;;  %v9208_v11 = vrot.slane %v2167_v30, 5 }
 0x2b0   : > { %1023 = vrot.lane.b32.xlu1 %v8116_v61, %s8467_s25  ;;  %v2965_v54 = vcombine.low %v2956_v40, %v2964_v36  ;;  %v2966_v5 = vcombine.high %v2956_v40, %v2964_v36  ;;  %v2935_v61 = vshrl.u32 %v9105_v62, 16  ;;  %v2934_v62 = vshrl.u32 %v9120_v1, 16  ;;  %v1715_v40 = vld [vmem:[#allocation2 + $0x1c] sm:$0xf] }
 0x2b1   : > { %v2930_v1 = vpack.i.b16 %v2929_v33, %v2928_v2  ;;  %v2941_v45 = vshrl.u32 %v2910_v25, 16  ;;  %v2170_v14 = vsel %vm8911_vm4, %v9182_v58, %v9208_v11  ;;  %v9233_v53 = vrot.slane %v2939_v27, %v8627_v21 }
 0x2b2   : > { %v9197_v6 = vrot.slane %v2965_v54, %v8631_v34  ;;  %v9200_v47 = vrot.slane %v2966_v5, %v8631_v34  ;;  %v2936_v46 = vpack.i.b16 %v2935_v61, %v2934_v62  ;;  %v2946_v36 = vshrl.u32 %v9175_v39, 16 }
 0x2b3   : > { %2592 = vrot.lane.b32.xlu0 %v2537_v60, %s8474_s7  ;;  %v9189_v60 = vrot.slane %v2191_v49, 5  ;;  %v9244_v50 = vrot.slane %v2930_v1, %v8627_v21  ;;  %v9249_v7 = vpack.i.b16 %v2941_v45, %v2940_v37  ;;  %v3033_v17 = vcombine.low %v9233_v53, %v9219_v38 }
 0x2b4   : > { %998 = vrot.lane.b32.xlu1 %v7774_v44, %s8470_s29  ;;  %v8162_v32 = vcombine.high %v9197_v6, %v9197_v6  ;;  %v8164_v35 = vcombine.high %v9200_v47, %v9200_v47  ;;  %v9247_v63 = vrot.slane %v2936_v46, %v8627_v21  ;;  %v1748_v44 = vshrl.u32 %v1711_v22, 16 }
 0x2b5   : > { %v2194_v20 = vsel %vm8911_vm4, %v9205_v4, %v9189_v60  ;;  %v1799_v49 = vshll.u32 %v1717_v23, 16  ;;  %v3034_v5 = vcombine.high %v9233_v53, %v9219_v38  ;;  %v1781_v31 = vshll.u32 %v1715_v40, 16  ;;  %v1719_v53 = vld [vmem:[#allocation2 + $0x2c] sm:$0x1] }
 0x2b6   : > { %v1805_v39 = vshll.u32 %v1718_v9, 16  ;;  %v1785_v33 = vshrl.u32 %v1715_v40, 16  ;;  %v1809_v61 = vshrl.u32 %v1718_v9, 16  ;;  %v1727_v43 = vshll.u32 %v1708_v59, 16 }
 0x2b7   : > { %2596 = vrot.lane.b32.xlu0 %v2561_v56, %s8474_s7  ;;  %v7871_v56 = vcombine.low %v9200_v47, %v9200_v47  ;;  %v1733_v57 = vshll.u32 %v1709_v12, 16  ;;  %v1757_v27 = vshll.u32 %v1712_v15, 16  ;;  %v1750_v2 = vrot.slane %v1748_v44, 4  ;;  %v1713_v44 = vld [vmem:[#allocation2 + $0x14] sm:$0x1] }
 0x2b8   : > { %1008 = vrot.lane.b32.xlu1 %v8115_v19, %s8469_s28  ;;  %v1724_v19 = vshrl.u32 %v1708_v59, 16  ;;  %v1798_v62 = vrot.slane %v1796_v29, 4  ;;  %v1761_v1 = vshrl.u32 %v1712_v15, 16  ;;  %v1753_v45 = vrot.slane %v1751_v51, 5  ;;  %v1710_v51 = vld [vmem:[#allocation2 + $0x8] sm:$0x1] }
 0x2b9   : > { %v1737_v37 = vshrl.u32 %v1709_v12, 16  ;;  %v1783_v22 = vrot.slane %v1781_v31, 5  ;;  %v1807_v23 = vrot.slane %v1805_v39, 5  ;;  %v2999_v40 = vcombine.low %v9244_v50, %v9247_v63 }
 0x2ba   : > { %v9222_v0 = vpop.permute.xlu1 %1125  ;;  %v2948_v9 = vpack.i.b16 %v2947_v48, %v2946_v36  ;;  %v1729_v15 = vrot.slane %v1727_v43, 5  ;;  %v1759_v29 = vrot.slane %v1757_v27, 5  ;;  %v1815_v12 = vshll.u32 %v1719_v53, 16  ;;  %v1716_v48 = vld [vmem:[#allocation2 + $0x20] sm:$0x1] }
 0x2bb   : > { %2600 = vrot.lane.b32.xlu0 %v2585_v41, %s8474_s7  ;;  %v1714_v41 = vld [vmem:[#allocation2 + $0x18] sm:$0xf]  ;;  %v1754_v31 = vor.u32 %v1753_v45, %v1750_v2  ;;  %v1739_v39 = vrot.slane %v1737_v37, 4  ;;  %v3007_v58 = vrot.slane %v2999_v40, %v8631_v34  ;;  %v3048_v11 = vrot.slane %v3034_v5, %v8631_v34 }
 0x2bc   : > { %1018 = vrot.lane.b32.xlu1 %v7778_v55, %s8464_s12  ;;  %v1772_v25 = vshrl.u32 %v1714_v41, 16  ;;  %v1775_v30 = vshll.u32 %v1714_v41, 16  ;;  %v1811_v41 = vrot.slane %v1809_v61, 4  ;;  %v1767_v61 = vshll.u32 %v1713_v44, 16 }
 0x2bd   : > { %v1755_v45 = vrot.slane %v1754_v31, 4  ;;  %v3000_v44 = vcombine.high %v9244_v50, %v9247_v63  ;;  %v7878_v50 = vcombine.low %v3048_v11, %v3048_v11  ;;  %v1144_v16 = vshrl.u32 %v9222_v0, 16 }
 0x2be   : > { %v9255_v54 = vpop.permute.xlu1 %1129  ;;  %v1774_v55 = vrot.slane %v1772_v25, 4  ;;  %v1777_v38 = vrot.slane %v1775_v30, 5  ;;  %v1763_v25 = vrot.slane %v1761_v1, 4  ;;  %v1735_v30 = vrot.slane %v1733_v57, 5 }
 0x2bf   : > { %2197 = vrot.lane.b32.xlu0 %v2122_v10, %s8476_s10  ;;  %v1801_v10 = vrot.slane %v1799_v49, 5  ;;  %v1812_v43 = vor.u32 %v1811_v41, %v1807_v23  ;;  %v1743_v57 = vshll.u32 %v1710_v51, 16  ;;  %v1769_v53 = vrot.slane %v1767_v61, 5 }
 0x2c0   : > { %1028 = vrot.lane.b32.xlu1 %v8117_v13, %s8465_s14  ;;  %v1787_v13 = vrot.slane %v1785_v33, 4  ;;  %v1778_v36 = vor.u32 %v1777_v38, %v1774_v55  ;;  %v9277_v33 = vrot.slane %v3033_v17, %v8631_v34  ;;  %v1791_v17 = vshll.u32 %v1716_v48, 16 }
 0x2c1   : > { %v1802_v49 = vor.u32 %v1801_v10, %v1798_v62  ;;  %v1764_v62 = vor.u32 %v1763_v25, %v1759_v29  ;;  %v1817_v10 = vrot.slane %v1815_v12, 5  ;;  %v1740_v55 = vor.u32 %v1739_v39, %v1735_v30 }
 0x2c2   : > { %v9261_v46 = vpop.permute.xlu1 %1133  ;;  %v1779_v5 = vrot.slane %v1778_v36, 4  ;;  %v8166_v60 = vcombine.high %v9277_v33, %v9277_v33  ;;  %v1745_v40 = vrot.slane %v1743_v57, 5  ;;  %v8163_v39 = vcombine.high %v3007_v58, %v3007_v58 }
 0x2c3   : > { %2201 = vrot.lane.b32.xlu0 %v2146_v24, %s8476_s10  ;;  %v1726_v24 = vrot.slane %v1724_v19, 4  ;;  %v1788_v19 = vor.u32 %v1787_v13, %v1783_v22  ;;  %v1803_v2 = vrot.slane %v1802_v49, 4  ;;  %v1813_v13 = vrot.slane %v1812_v43, 4 }
 0x2c4   : > { %3093 = vrot.lane.b32.xlu1 %v8162_v32, %s8468_s26  ;;  %v1741_v51 = vrot.slane %v1740_v55, 4  ;;  %v3014_v61 = vrot.slane %v3000_v44, %v8631_v34  ;;  %v8168_v57 = vcombine.high %v3048_v11, %v3048_v11  ;;  %v1150_v8 = vshrl.u32 %v9261_v46, 16 }
 0x2c5   : > { %v9263_v59 = vpop.permute.xlu0 %1127  ;;  %v1808_v38 = vsel %vm8911_vm4, %v1803_v2, %v1807_v23  ;;  %v1789_v37 = vrot.slane %v1788_v19, 4  ;;  %v1784_v23 = vsel %vm8911_vm4, %v1779_v5, %v1783_v22 }
 0x2c6   : > { %v9274_v32 = vpop.permute.xlu1 %1137  ;;  %v1827_v49 = vpack.i.b16 %v1808_v38, %v1784_v23  ;;  %v9341_v36 = vsel %vm8911_vm4, %v1741_v51, %v1745_v40  ;;  %v1829_v55 = vshrl.u32 %v1808_v38, 16 }
 0x2c7   : > { %2205 = vrot.lane.b32.xlu0 %v2170_v14, %s8476_s10  ;;  %v1730_v14 = vor.u32 %v1729_v15, %v1726_v24  ;;  %v1793_v24 = vrot.slane %v1791_v17, 5  ;;  %v9314_v15 = vsel %vm8911_vm4, %v1813_v13, %v1817_v10  ;;  %v7872_v10 = vcombine.low %v3014_v61, %v3014_v61 }
 0x2c8   : > { %3103 = vrot.lane.b32.xlu1 %v7871_v56, %s8466_s16  ;;  %v9296_v56 = vrot.slane %v2948_v9, %v8627_v21  ;;  %v1765_v9 = vrot.slane %v1764_v62, 4  ;;  %v1858_v19 = vrot.slane %v1827_v49, %v8627_v21 }
 0x2c9   : > { %v9279_v27 = vpop.permute.xlu0 %1131  ;;  %v1731_v4 = vrot.slane %v1730_v14, 4  ;;  %v9331_v12 = vsel %vm8911_vm4, %v1789_v37, %v1793_v24 }
 0x2ca   : > { %v9293_v1 = vpop.permute.xlu1 %1425  ;;  %v9327_v25 = vsel %vm8911_vm4, %v1765_v9, %v1769_v53 }
 0x2cb   : > { %2209 = vrot.lane.b32.xlu0 %v2194_v20, %s8476_s10  ;;  %v1760_v20 = vsel %vm8911_vm4, %v1755_v45, %v1759_v29  ;;  %v3058_v29 = vrot.slane %v9249_v7, %v8627_v21  ;;  %v1736_v22 = vsel %vm8911_vm4, %v1731_v4, %v1735_v30  ;;  %v1839_v30 = vpack.i.b16 %v9314_v15, %v9331_v12 }
 0x2cc   : > { %3113 = vrot.lane.b32.xlu1 %v8164_v35, %s8467_s25  ;;  %v7868_v35 = vcombine.low %v3007_v58, %v3007_v58  ;;  %v1821_v7 = vpack.i.b16 %v1760_v20, %v1736_v22  ;;  %v1833_v43 = vpack.i.b16 %v9327_v25, %v9341_v36  ;;  %v1823_v13 = vshrl.u32 %v1760_v20, 16 }
 0x2cd   : > { %v9300_v41 = vpop.permute.xlu0 %1135  ;;  %v3067_v63 = vcombine.low %v3058_v29, %v9296_v56  ;;  %v1926_v17 = vrot.slane %v1839_v30, %v8627_v21  ;;  %v8165_v4 = vcombine.high %v3014_v61, %v3014_v61  ;;  %v3068_v38 = vcombine.high %v3058_v29, %v9296_v56 }
 0x2ce   : > { %v9317_v47 = vpop.permute.xlu1 %1429  ;;  %v1850_v62 = vrot.slane %v1821_v7, %v8627_v21  ;;  %v1918_v5 = vrot.slane %v1833_v43, %v8627_v21 }
 0x2cf   : > { %3128 = vrot.lane.b32.xlu0 %v8166_v60, %s8468_s26  ;;  %v3075_v2 = vrot.slane %v3067_v63, %v8631_v34  ;;  %v1828_v60 = vshrl.u32 %v1784_v23, 16  ;;  %v3082_v29 = vrot.slane %v3068_v38, %v8631_v34 }
 0x2d0   : > { %3088 = vrot.lane.b32.xlu1 %v7868_v35, %s8470_s29  ;;  %v1859_v45 = vcombine.low %v1850_v62, %v1858_v19  ;;  %v1927_v37 = vcombine.low %v1918_v5, %v1926_v17  ;;  %v1860_v24 = vcombine.high %v1850_v62, %v1858_v19  ;;  %v1822_v35 = vshrl.u32 %v1736_v22, 16 }
 0x2d1   : > { %v9333_v31 = vpop.permute.xlu0 %1139  ;;  %v7875_v11 = vcombine.low %v3075_v2, %v3075_v2  ;;  %v1830_v44 = vpack.i.b16 %v1829_v55, %v1828_v60  ;;  %v8167_v51 = vcombine.high %v3075_v2, %v3075_v2  ;;  %v1841_v19 = vshrl.u32 %v9314_v15, 16 }
 0x2d2   : > { %v9344_v48 = vpop.permute.xlu1 %1433  ;;  %v9367_v9 = vrot.slane %v1859_v45, %v8631_v34  ;;  %v9374_v20 = vrot.slane %v1927_v37, %v8631_v34  ;;  %v1824_v23 = vpack.i.b16 %v1823_v13, %v1822_v35  ;;  %v1874_v22 = vrot.slane %v1860_v24, %v8631_v34 }
 0x2d3   : > { %3138 = vrot.lane.b32.xlu0 %v7878_v50, %s8466_s16  ;;  %v1892_v56 = vrot.slane %v1830_v44, %v8627_v21  ;;  %v1835_v62 = vshrl.u32 %v9327_v25, 16  ;;  %v7879_v55 = vcombine.low %v3082_v29, %v3082_v29  ;;  %v1149_v24 = vpack.i.b16 %v9274_v32, %v9261_v46 }
 0x2d4   : > { %3098 = vrot.lane.b32.xlu1 %v8163_v39, %s8469_s28  ;;  %11915 = vst [vmem:[#allocation16_spill] sm:$0xff] %v9374_v20  ;;  %v8138_v63 = vcombine.high %v9367_v9, %v9367_v9  ;;  %v8142_v30 = vcombine.high %v9374_v20, %v9374_v20  ;;  %v1928_v39 = vcombine.high %v1918_v5, %v1926_v17  ;;  %v1834_v5 = vshrl.u32 %v9341_v36, 16 }
 0x2d5   : > { %v9350_v14 = vpop.permute.xlu0 %1427  ;;  %v1884_v61 = vrot.slane %v1824_v23, %v8627_v21  ;;  %v8140_v37 = vcombine.high %v1874_v22, %v1874_v22 }
 0x2d6   : > { %v9357_v58 = vpop.permute.xlu1 %1437  ;;  %v1942_v17 = vrot.slane %v1928_v39, %v8631_v34  ;;  %v1836_v25 = vpack.i.b16 %v1835_v62, %v1834_v5 }
 0x2d7   : > { %3148 = vrot.lane.b32.xlu0 %v8168_v57, %s8467_s25  ;;  %v7822_v57 = vcombine.low %v1874_v22, %v1874_v22  ;;  %v1893_v2 = vcombine.low %v1884_v61, %v1892_v56  ;;  %v1894_v44 = vcombine.high %v1884_v61, %v1892_v56 }
 0x2d8   : > { %3108 = vrot.lane.b32.xlu1 %v7872_v10, %s8464_s12  ;;  %v1840_v10 = vshrl.u32 %v9331_v12, 16  ;;  %v7829_v12 = vcombine.low %v1942_v17, %v1942_v17  ;;  %v1952_v38 = vrot.slane %v1836_v25, %v8627_v21 }
 0x2d9   : > { %v9360_v53 = vpop.permute.xlu0 %1431  ;;  %v1901_v13 = vrot.slane %v1893_v2, %v8631_v34  ;;  %v1908_v56 = vrot.slane %v1894_v44, %v8631_v34  ;;  %v8144_v2 = vcombine.high %v1942_v17, %v1942_v17 }
 0x2da   : > { %v9364_v40 = vpop.permute.xlu1 %3580  ;;  %v1842_v15 = vpack.i.b16 %v1841_v19, %v1840_v10  ;;  %v1449_v10 = vpack.i.b16 %v9357_v58, %v9344_v48 }
 0x2db   : > { %3123 = vrot.lane.b32.xlu0 %v7875_v11, %s8470_s29  ;;  %v7819_v35 = vcombine.low %v1901_v13, %v1901_v13  ;;  %v8139_v19 = vcombine.high %v1901_v13, %v1901_v13  ;;  %v7823_v5 = vcombine.low %v1908_v56, %v1908_v56 }
 0x2dc   : > { %3118 = vrot.lane.b32.xlu1 %v8165_v4, %s8465_s14  ;;  %v1960_v4 = vrot.slane %v1842_v15, %v8627_v21  ;;  %v1443_v15 = vpack.i.b16 %v9317_v47, %v9293_v1  ;;  %v1480_v44 = vrot.slane %v1449_v10, %v8627_v21 }
 0x2dd   : > { %v9370_v49 = vpop.permute.xlu0 %1435 }
 0x2de   : > { %v9377_v50 = vpop.permute.xlu1 %3584  ;;  %v1961_v22 = vcombine.low %v1952_v38, %v1960_v4  ;;  %v1962_v25 = vcombine.high %v1952_v38, %v1960_v4 }
 0x2df   : > { %3133 = vrot.lane.b32.xlu0 %v8167_v51, %s8469_s28  ;;  %v1143_v51 = vpack.i.b16 %v9255_v54, %v9222_v0 }
 0x2e0   : > { %1987 = vrot.lane.b32.xlu1 %v8138_v63, %s8468_s26  ;;  %v8169_v63 = vcombine.high %v3082_v29, %v3082_v29  ;;  %v1969_v62 = vrot.slane %v1961_v22, %v8631_v34  ;;  %v1472_v22 = vrot.slane %v1443_v15, %v8627_v21 }
 0x2e1   : > { %v9384_v7 = vpop.permute.xlu0 %1439  ;;  %v1172_v61 = vrot.slane %v1143_v51, %v8627_v21 }
 0x2e2   : > { %v9392_v43 = vpop.permute.xlu1 %3588  ;;  %v7826_v13 = vcombine.low %v1969_v62, %v1969_v62  ;;  %v8143_v38 = vcombine.high %v1969_v62, %v1969_v62  ;;  %v1461_v15 = vpack.i.b16 %v9384_v7, %v9370_v49 }
 0x2e3   : > { %2022 = vrot.lane.b32.xlu0 %v8142_v30, %s8468_s26  ;;  %v1180_v30 = vrot.slane %v1149_v24, %v8627_v21 }
 0x2e4   : > { %1997 = vrot.lane.b32.xlu1 %v7822_v57, %s8466_s16  ;;  %v1548_v42 = vrot.slane %v1461_v15, %v8627_v21 }
 0x2e5   : > { %v9396_v45 = vpop.permute.xlu0 %1038  ;;  %v1181_v29 = vcombine.low %v1172_v61, %v1180_v30  ;;  %v1182_v24 = vcombine.high %v1172_v61, %v1180_v30  ;;  %v1976_v30 = vrot.slane %v1962_v25, %v8631_v34  ;;  %v1481_v61 = vcombine.low %v1472_v22, %v1480_v44 }
 0x2e6   : > { %v9402_v11 = vpop.permute.xlu1 %3592  ;;  %v1455_v25 = vpack.i.b16 %v9360_v53, %v9350_v14 }
 0x2e7   : > { %3143 = vrot.lane.b32.xlu0 %v7879_v55, %s8464_s12  ;;  %v1196_v10 = vrot.slane %v1182_v24, %v8631_v34  ;;  %v7830_v62 = vcombine.low %v1976_v30, %v1976_v30  ;;  %v9476_v24 = vrot.slane %v1481_v61, %v8631_v34  ;;  %v8145_v18 = vcombine.high %v1976_v30, %v1976_v30 }
 0x2e8   : > { %2007 = vrot.lane.b32.xlu1 %v8140_v37, %s8467_s25  ;;  %v1161_v37 = vpack.i.b16 %v9333_v31, %v9300_v41  ;;  %v1482_v61 = vcombine.high %v1472_v22, %v1480_v44  ;;  %v1540_v52 = vrot.slane %v1455_v25, %v8627_v21  ;;  %v1163_v25 = vshrl.u32 %v9333_v31, 16 }
 0x2e9   : > { %v9405_v60 = vpop.permute.xlu0 %1048  ;;  %11917 = vst [vmem:[#allocation18_spill] sm:$0xff] %v9476_v24  ;;  %v8130_v46 = vcombine.high %v9476_v24, %v9476_v24 }
 0x2ea   : > { %v9412_v36 = vpop.permute.xlu1 %3244  ;;  %v1549_v30 = vcombine.low %v1540_v52, %v1548_v42 }
 0x2eb   : > { %2032 = vrot.lane.b32.xlu0 %v7829_v12, %s8466_s16  ;;  %v8141_v12 = vcombine.high %v1908_v56, %v1908_v56 }
 0x2ec   : > { %1982 = vrot.lane.b32.xlu1 %v7819_v35, %s8470_s29  ;;  %v1155_v35 = vpack.i.b16 %v9279_v27, %v9263_v59 }
 0x2ed   : > { %v9417_v23 = vpop.permute.xlu0 %1058 }
 0x2ee   : > { %v9422_v39 = vpop.permute.xlu1 %3248  ;;  %v1240_v56 = vrot.slane %v1155_v35, %v8627_v21  ;;  %v7792_v35 = vcombine.low %v1196_v10, %v1196_v10 }
 0x2ef   : > { %3153 = vrot.lane.b32.xlu0 %v8169_v63, %s8465_s14  ;;  %v9449_v63 = vrot.slane %v1181_v29, %v8631_v34 }
 0x2f0   : > { %1992 = vrot.lane.b32.xlu1 %v8139_v19, %s8469_s28  ;;  %v1248_v19 = vrot.slane %v1161_v37, %v8627_v21 }
 0x2f1   : > { %v9427_v57 = vpop.permute.xlu0 %3582  ;;  %11916 = vst [vmem:[#allocation17_spill] sm:$0xff] %v9449_v63  ;;  %v8122_v29 = vcombine.high %v9449_v63, %v9449_v63 }
 0x2f2   : > { %v9433_v55 = vpop.permute.xlu1 %3252 }
 0x2f3   : > { %2042 = vrot.lane.b32.xlu0 %v8144_v2, %s8467_s25 }
 0x2f4   : > { %2002 = vrot.lane.b32.xlu1 %v7823_v5, %s8464_s12  ;;  %v1249_v5 = vcombine.low %v1240_v56, %v1248_v19 }
 0x2f5   : > { %v9440_v17 = vpop.permute.xlu0 %3586 }
 0x2f6   : > { %v9446_v51 = vpop.permute.xlu1 %3256 }
 0x2f7   : > { %2017 = vrot.lane.b32.xlu0 %v7826_v13, %s8470_s29  ;;  %v1151_v13 = vshrl.u32 %v9274_v32, 16 }
 0x2f8   : > { %2012 = vrot.lane.b32.xlu1 %v8141_v12, %s8465_s14 }
 0x2f9   : > { %v9454_v4 = vpop.permute.xlu0 %3590  ;;  %v1152_v3 = vpack.i.b16 %v1151_v13, %v1150_v8  ;;  %v1445_v13 = vshrl.u32 %v9317_v47, 16  ;;  %v1162_v47 = vshrl.u32 %v9300_v41, 16 }
 0x2fa   : > { %v9459_v2 = vpop.permute.xlu1 %2586 }
 0x2fb   : > { %2027 = vrot.lane.b32.xlu0 %v8143_v38, %s8469_s28  ;;  %v1145_v38 = vshrl.u32 %v9255_v54, 16  ;;  %v9501_v44 = vrot.slane %v1152_v3, %v8627_v21 }
 0x2fc   : > { %1309 = vrot.lane.b32.xlu1 %v8122_v29, %s8468_s26  ;;  %v1250_v29 = vcombine.high %v1240_v56, %v1248_v19 }
 0x2fd   : > { %v9466_v37 = vpop.permute.xlu0 %3594  ;;  %v1146_v19 = vpack.i.b16 %v1145_v38, %v1144_v16  ;;  %v8124_v16 = vcombine.high %v1196_v10, %v1196_v10  ;;  %v9518_v38 = vrot.slane %v1549_v30, %v8631_v34  ;;  %v1157_v10 = vshrl.u32 %v9279_v27, 16 }
 0x2fe   : > { %v9473_v12 = vpop.permute.xlu1 %2590  ;;  %v1264_v8 = vrot.slane %v1250_v29, %v8631_v34  ;;  %v1444_v29 = vshrl.u32 %v9293_v1, 16  ;;  %v1164_v30 = vpack.i.b16 %v1163_v25, %v1162_v47  ;;  %v1462_v47 = vshrl.u32 %v9370_v49, 16 }
 0x2ff   : > { %2037 = vrot.lane.b32.xlu0 %v7830_v62, %s8464_s12  ;;  %v9485_v62 = vrot.slane %v1249_v5, %v8631_v34  ;;  %v1496_v5 = vrot.slane %v1482_v61, %v8631_v34  ;;  %v9509_v15 = vrot.slane %v1146_v19, %v8627_v21  ;;  %11919 = vst [vmem:[#allocation20_spill] sm:$0xff] %v9518_v38  ;;  %v1156_v19 = vshrl.u32 %v9263_v59, 16 }
 0x300   : > { %1319 = vrot.lane.b32.xlu1 %v7792_v35, %s8466_s16  ;;  %v1450_v35 = vshrl.u32 %v9344_v48, 16  ;;  %v8134_v27 = vcombine.high %v9518_v38, %v9518_v38 }
 0x301   : > { %v9481_v32 = vpop.permute.xlu0 %3246  ;;  %11918 = vst [vmem:[#allocation19_spill] sm:$0xff] %v9485_v62  ;;  %v8126_v0 = vcombine.high %v9485_v62, %v9485_v62  ;;  %v1215_v61 = vcombine.low %v9509_v15, %v9501_v44  ;;  %v1158_v1 = vpack.i.b16 %v1157_v10, %v1156_v19  ;;  %v1456_v19 = vshrl.u32 %v9350_v14, 16 }
 0x302   : > { %v9490_v54 = vpop.permute.xlu1 %2594 }
 0x303   : > { %2047 = vrot.lane.b32.xlu0 %v8145_v18, %s8465_s14  ;;  %v1451_v18 = vshrl.u32 %v9357_v58, 16  ;;  %v7799_v58 = vcombine.low %v1264_v8, %v1264_v8  ;;  %v1223_v59 = vrot.slane %v1215_v61, %v8631_v34  ;;  %v1457_v61 = vshrl.u32 %v9360_v53, 16 }
 0x304   : > { %1609 = vrot.lane.b32.xlu1 %v8130_v46, %s8468_s26  ;;  %v7807_v46 = vcombine.low %v1496_v5, %v1496_v5 }
 0x305   : > { %v9494_v56 = vpop.permute.xlu0 %3250  ;;  %v1452_v31 = vpack.i.b16 %v1451_v18, %v1450_v35  ;;  %v8132_v35 = vcombine.high %v1496_v5, %v1496_v5  ;;  %v1458_v53 = vpack.i.b16 %v1457_v61, %v1456_v19 }
 0x306   : > { %v9505_v22 = vpop.permute.xlu1 %2598 }
 0x307   : > { %1344 = vrot.lane.b32.xlu0 %v8126_v0, %s8468_s26  ;;  %v1446_v0 = vpack.i.b16 %v1445_v13, %v1444_v29  ;;  %v9535_v41 = vrot.slane %v1452_v31, %v8627_v21  ;;  %v1463_v13 = vshrl.u32 %v9384_v7, 16  ;;  %v1274_v29 = vrot.slane %v1158_v1, %v8627_v21 }
 0x308   : > { %1329 = vrot.lane.b32.xlu1 %v8124_v16, %s8467_s25  ;;  %v1550_v16 = vcombine.high %v1540_v52, %v1548_v42  ;;  %v1282_v42 = vrot.slane %v1164_v30, %v8627_v21  ;;  %v7789_v7 = vcombine.low %v1223_v59, %v1223_v59 }
 0x309   : > { %v9514_v3 = vpop.permute.xlu0 %3254  ;;  %v9542_v52 = vrot.slane %v1446_v0, %v8627_v21 }
 0x30a   : > { %v9526_v48 = vpop.permute.xlu1 %2195  ;;  %v1564_v10 = vrot.slane %v1550_v16, %v8631_v34  ;;  %v1216_v16 = vcombine.high %v9509_v15, %v9501_v44  ;;  %v9576_v44 = vrot.slane %v1458_v53, %v8627_v21 }
 0x30b   : > { %1354 = vrot.lane.b32.xlu0 %v7799_v58, %s8466_s16  ;;  %v8128_v58 = vcombine.high %v1264_v8, %v1264_v8  ;;  %v1515_v5 = vcombine.low %v9542_v52, %v9535_v41  ;;  %v1464_v8 = vpack.i.b16 %v1463_v13, %v1462_v47 }
 0x30c   : > { %1619 = vrot.lane.b32.xlu1 %v7807_v46, %s8466_s16  ;;  %v1283_v46 = vcombine.low %v1274_v29, %v1282_v42  ;;  %v7814_v30 = vcombine.low %v1564_v10, %v1564_v10  ;;  %v8136_v13 = vcombine.high %v1564_v10, %v1564_v10  ;;  %v3604_v10 = vpack.i.b16 %v9402_v11, %v9392_v43 }
 0x30d   : > { %v9529_v24 = vpop.permute.xlu0 %3258  ;;  %v1523_v1 = vrot.slane %v1515_v5, %v8631_v34 }
 0x30e   : > { %v9538_v18 = vpop.permute.xlu1 %2199 }
 0x30f   : > { %1644 = vrot.lane.b32.xlu0 %v8134_v27, %s8468_s26  ;;  %v8123_v27 = vcombine.high %v1223_v59, %v1223_v59  ;;  %v7804_v61 = vcombine.low %v1523_v1, %v1523_v1  ;;  %v1230_v59 = vrot.slane %v1216_v16, %v8631_v34 }
 0x310   : > { %1629 = vrot.lane.b32.xlu1 %v8132_v35, %s8467_s25  ;;  %v9569_v35 = vrot.slane %v1464_v8, %v8627_v21  ;;  %v3598_v8 = vpack.i.b16 %v9377_v50, %v9364_v40 }
 0x311   : > { %v9546_v25 = vpop.permute.xlu0 %1033  ;;  %v7793_v19 = vcombine.low %v1230_v59, %v1230_v59 }
 0x312   : > { %v9556_v31 = vpop.permute.xlu1 %2203  ;;  %v1583_v5 = vcombine.low %v9576_v44, %v9569_v35  ;;  %v1089_v62 = vsel %vm1065_vm6, %v8833_v26, %v9546_v25  ;;  %v1584_v20 = vcombine.high %v9576_v44, %v9569_v35  ;;  %v3274_v35 = vpack.i.b16 %v9494_v56, %v9481_v32 }
 0x313   : > { %1364 = vrot.lane.b32.xlu0 %v8128_v58, %s8467_s25  ;;  %v1291_v58 = vrot.slane %v1283_v46, %v8631_v34  ;;  %v1091_v25 = vsel %vm1069_vm13, %v1089_v62, %v9396_v45  ;;  %v3280_v62 = vpack.i.b16 %v9529_v24, %v9514_v3 }
 0x314   : > { %1304 = vrot.lane.b32.xlu1 %v7789_v7, %s8470_s29 }
 0x315   : > { %v9559_v0 = vpop.permute.xlu0 %1043  ;;  %v7796_v7 = vcombine.low %v1291_v58, %v1291_v58  ;;  %v8127_v53 = vcombine.high %v1291_v58, %v1291_v58  ;;  %v3262_v58 = vpack.i.b16 %v9422_v39, %v9412_v36 }
 0x316   : > { %v9565_v49 = vpop.permute.xlu1 %2207  ;;  %v1093_v63 = vsel %vm1072_vm14, %v1091_v25, %v9559_v0 }
 0x317   : > { %1654 = vrot.lane.b32.xlu0 %v7814_v30, %s8466_s16  ;;  %v1284_v30 = vcombine.high %v1274_v29, %v1282_v42  ;;  %v8131_v42 = vcombine.high %v1523_v1, %v1523_v1  ;;  %v3627_v29 = vrot.slane %v3598_v8, %v8627_v21  ;;  %v8125_v8 = vcombine.high %v1230_v59, %v1230_v59 }
 0x318   : > { %1314 = vrot.lane.b32.xlu1 %v8123_v27, %s8469_s28  ;;  %v1591_v27 = vrot.slane %v1583_v5, %v8631_v34  ;;  %v1095_v44 = vsel %vm1075_vm0, %v1093_v63, %v9405_v60  ;;  %v9679_v60 = vrot.slane %v3280_v62, %v8627_v21 }
 0x319   : > { %v9571_v14 = vpop.permute.xlu0 %1053 }
 0x31a   : > { %v1004_v15 = vpop.permute.xlu1 %1003 }
 0x31b   : > { %1664 = vrot.lane.b32.xlu0 %v8136_v13, %s8467_s25  ;;  %v9595_v13 = vrot.slane %v3604_v10, %v8627_v21  ;;  %v7811_v10 = vcombine.low %v1591_v27, %v1591_v27 }
 0x31c   : > { %1604 = vrot.lane.b32.xlu1 %v7804_v61, %s8470_s29  ;;  %v1516_v61 = vcombine.high %v9542_v52, %v9535_v41  ;;  %v1298_v41 = vrot.slane %v1284_v30, %v8631_v34 }
 0x31d   : > { %v9582_v47 = vpop.permute.xlu0 %1063  ;;  %v3636_v52 = vcombine.low %v3627_v29, %v9595_v13  ;;  %v3637_v0 = vcombine.high %v3627_v29, %v9595_v13  ;;  %v1097_v13 = vsel %vm1078_vm1, %v1095_v44, %v9571_v14  ;;  %v3606_v14 = vshrl.u32 %v9402_v11, 16 }
 0x31e   : > { %v1014_v46 = vpop.permute.xlu1 %1013  ;;  %v7800_v59 = vcombine.low %v1298_v41, %v1298_v41  ;;  %v1099_v62 = vsel %vm1081_vm12, %v1097_v13, %v9417_v23  ;;  %v3600_v11 = vshrl.u32 %v9377_v50, 16  ;;  %v3599_v50 = vshrl.u32 %v9364_v40, 16 }
 0x31f   : > { %1339 = vrot.lane.b32.xlu0 %v7796_v7, %s8470_s29  ;;  %v3268_v7 = vpack.i.b16 %v9446_v51, %v9433_v55  ;;  %v9635_v26 = vrot.slane %v3636_v52, %v8631_v34 }
 0x320   : > { %1324 = vrot.lane.b32.xlu1 %v7793_v19, %s8464_s12 }
 0x321   : > { %v9590_v16 = vpop.permute.xlu0 %2588  ;;  %v9613_v19 = vrot.slane %v3268_v7, %v8627_v21  ;;  %v3616_v7 = vpack.i.b16 %v9466_v37, %v9454_v4  ;;  %v8178_v25 = vcombine.high %v9635_v26, %v9635_v26 }
 0x322   : > { %v9602_v38 = vpop.permute.xlu1 %1023 }
 0x323   : > { %1349 = vrot.lane.b32.xlu0 %v8127_v53, %s8469_s28  ;;  %v9617_v53 = vrot.slane %v1516_v61, %v8631_v34  ;;  %v3610_v61 = vpack.i.b16 %v9440_v17, %v9427_v57  ;;  %v9651_v45 = vrot.slane %v3616_v7, %v8627_v21 }
 0x324   : > { %1614 = vrot.lane.b32.xlu1 %v8131_v42, %s8469_s28  ;;  %v9625_v42 = vrot.slane %v3262_v58, %v8627_v21 }
 0x325   : > { %v9607_v5 = vpop.permute.xlu0 %2592 }
 0x326   : > { %v999_v1 = vpop.permute.xlu1 %998 }
 0x327   : > { %1639 = vrot.lane.b32.xlu0 %v7811_v10, %s8470_s29  ;;  %v1068_v30 = vsel %vm1065_vm6, %v9057_v28, %v999_v1  ;;  %v3300_v28 = vcombine.low %v9625_v42, %v9613_v19 }
 0x328   : > { %1334 = vrot.lane.b32.xlu1 %v8125_v8, %s8465_s14  ;;  %v1071_v58 = vsel %vm1069_vm13, %v1068_v30, %v1004_v15  ;;  %v7808_v8 = vcombine.low %v9617_v53, %v9617_v53  ;;  %v8135_v30 = vcombine.high %v1591_v27, %v1591_v27 }
 0x329   : > { %v9629_v10 = vpop.permute.xlu0 %2596  ;;  %v9671_v27 = vrot.slane %v3300_v28, %v8631_v34  ;;  %v9685_v28 = vrot.slane %v1584_v20, %v8631_v34 }
 0x32a   : > { %v1009_v1 = vpop.permute.xlu1 %1008 }
 0x32b   : > { %1359 = vrot.lane.b32.xlu0 %v7800_v59, %s8464_s12  ;;  %v1074_v52 = vsel %vm1072_vm14, %v1071_v58, %v1009_v1  ;;  %v9660_v59 = vrot.slane %v3610_v61, %v8627_v21  ;;  %v3301_v1 = vcombine.high %v9625_v42, %v9613_v19  ;;  %v8170_v20 = vcombine.high %v9671_v27, %v9671_v27 }
 0x32c   : > { %1624 = vrot.lane.b32.xlu1 %v7808_v8, %s8464_s12  ;;  %v1077_v7 = vsel %vm1075_vm0, %v1074_v52, %v1014_v46  ;;  %v8129_v46 = vcombine.high %v1298_v41, %v1298_v41  ;;  %v3651_v8 = vrot.slane %v3637_v0, %v8631_v34  ;;  %v3359_v52 = vrot.slane %v3274_v35, %v8627_v21 }
 0x32d   : > { %v9655_v15 = vpop.permute.xlu0 %2600  ;;  %v3704_v61 = vcombine.low %v9660_v59, %v9651_v45  ;;  %v3605_v19 = vshrl.u32 %v9392_v43, 16  ;;  %v1101_v42 = vsel %vm11880_vm11, %v1099_v62, %v9582_v47  ;;  %v3270_v47 = vshrl.u32 %v9446_v51, 16 }
 0x32e   : > { %v1019_v58 = vpop.permute.xlu1 %1018  ;;  %v3368_v23 = vcombine.low %v3359_v52, %v9679_v60  ;;  %v3315_v13 = vrot.slane %v3301_v1, %v8631_v34  ;;  %v3269_v62 = vshrl.u32 %v9433_v55, 16 }
 0x32f   : > { %1649 = vrot.lane.b32.xlu0 %v8135_v30, %s8469_s28  ;;  %v1080_v29 = vsel %vm1078_vm1, %v1077_v7, %v1019_v58  ;;  %v9711_v44 = vrot.slane %v3704_v61, %v8631_v34  ;;  %v3607_v43 = vpack.i.b16 %v3606_v14, %v3605_v19  ;;  %v7909_v58 = vcombine.low %v3651_v8, %v3651_v8 }
 0x330   : > { %3764 = vrot.lane.b32.xlu1 %v8178_v25, %s8468_s26  ;;  %v1083_v41 = vsel %vm1081_vm12, %v1080_v29, %v9602_v38  ;;  %v7815_v38 = vcombine.low %v9685_v28, %v9685_v28  ;;  %v3601_v29 = vpack.i.b16 %v3600_v11, %v3599_v50  ;;  %v3705_v61 = vcombine.high %v9660_v59, %v9651_v45 }
 0x331   : > { %v9681_v63 = vpop.permute.xlu0 %2197  ;;  %v8182_v51 = vcombine.high %v9711_v44, %v9711_v44  ;;  %v9729_v14 = vrot.slane %v3368_v23, %v8631_v34  ;;  %v9732_v1 = vrot.slane %v3607_v43, %v8627_v21  ;;  %v7890_v45 = vcombine.low %v3315_v13, %v3315_v13 }
 0x332   : > { %v1029_v30 = vpop.permute.xlu1 %1028  ;;  %v9739_v59 = vrot.slane %v3601_v29, %v8627_v21  ;;  %v3369_v11 = vcombine.high %v3359_v52, %v9679_v60  ;;  %v3612_v23 = vshrl.u32 %v9440_v17, 16  ;;  %v8180_v52 = vcombine.high %v3651_v8, %v3651_v8 }
 0x333   : > { %1369 = vrot.lane.b32.xlu0 %v8129_v46, %s8465_s14  ;;  %v1086_v0 = vsel %vm11880_vm11, %v1083_v41, %v1029_v30  ;;  %v3264_v46 = vshrl.u32 %v9422_v39, 16  ;;  %v3263_v39 = vshrl.u32 %v9412_v36, 16  ;;  %v3271_v41 = vpack.i.b16 %v3270_v47, %v3269_v62 }
 0x334   : > { %v7788_v25 = vcombine.low %v1086_v0, %v1101_v42  ;;  %3428 = vrot.lane.b32.xlu1 %v8170_v20, %s8468_s26  ;;  %v3618_v20 = vshrl.u32 %v9466_v37, 16  ;;  %v8174_v36 = vcombine.high %v9729_v14, %v9729_v14  ;;  %v3719_v42 = vrot.slane %v3705_v61, %v8631_v34 }
 0x335   : > { %v9705_v35 = vpop.permute.xlu0 %2201  ;;  %v3265_v30 = vpack.i.b16 %v3264_v46, %v3263_v39  ;;  %v3670_v0 = vcombine.low %v9739_v59, %v9732_v1  ;;  %v3617_v37 = vshrl.u32 %v9454_v4, 16  ;;  %v3611_v50 = vshrl.u32 %v9427_v57, 16 }
 0x336   : > { %1108 = vst [vmem:[#allocation3 + $0x8] sm:$0x33] %v7788_v25  ;;  %v9716_v7 = vpop.permute.xlu1 %3093  ;;  %v9753_v25 = vrot.slane %v3271_v41, %v8627_v21  ;;  %v3282_v47 = vshrl.u32 %v9529_v24, 16  ;;  %v7916_v17 = vcombine.low %v3719_v42, %v3719_v42  ;;  %v3383_v4 = vrot.slane %v3369_v11, %v8631_v34 }
 0x337   : > { %1659 = vrot.lane.b32.xlu0 %v7815_v38, %s8464_s12  ;;  %v9760_v38 = vrot.slane %v3265_v30, %v8627_v21  ;;  %v3619_v43 = vpack.i.b16 %v3618_v20, %v3617_v37  ;;  %v3613_v29 = vpack.i.b16 %v3612_v23, %v3611_v50  ;;  %v3678_v46 = vrot.slane %v3670_v0, %v8631_v34 }
 0x338   : > { %3774 = vrot.lane.b32.xlu1 %v7909_v58, %s8466_s16  ;;  %v3276_v62 = vshrl.u32 %v9494_v56, 16  ;;  %v3281_v57 = vshrl.u32 %v9514_v3, 16  ;;  %v8172_v61 = vcombine.high %v3315_v13, %v3315_v13  ;;  %v3275_v39 = vshrl.u32 %v9481_v32, 16 }
 0x339   : > { %v9723_v40 = vpop.permute.xlu0 %2205  ;;  %v3334_v8 = vcombine.low %v9760_v38, %v9753_v25  ;;  %v7897_v30 = vcombine.low %v3383_v4, %v3383_v4  ;;  %v9782_v20 = vrot.slane %v3613_v29, %v8627_v21  ;;  %v7906_v11 = vcombine.low %v3678_v46, %v3678_v46 }
 0x33a   : > { %v9736_v55 = vpop.permute.xlu1 %3103  ;;  %v3283_v41 = vpack.i.b16 %v3282_v47, %v3281_v57  ;;  %v3277_v56 = vpack.i.b16 %v3276_v62, %v3275_v39  ;;  %v8184_v23 = vcombine.high %v3719_v42, %v3719_v42  ;;  %v2622_v47 = vpack.i.b16 %v9655_v15, %v9629_v10 }
 0x33b   : > { %3799 = vrot.lane.b32.xlu0 %v8182_v51, %s8468_s26  ;;  %v9775_v51 = vrot.slane %v3619_v43, %v8627_v21  ;;  %v3342_v13 = vrot.slane %v3334_v8, %v8631_v34  ;;  %v8176_v29 = vcombine.high %v3383_v4, %v3383_v4  ;;  %v3671_v42 = vcombine.high %v9739_v59, %v9732_v1 }
 0x33c   : > { %3438 = vrot.lane.b32.xlu1 %v7890_v45, %s8466_s16  ;;  %v9789_v32 = vrot.slane %v3283_v41, %v8627_v21  ;;  %v9795_v37 = vrot.slane %v3277_v56, %v8627_v21  ;;  %v2616_v62 = vpack.i.b16 %v9607_v5, %v9590_v16  ;;  %v9812_v39 = vrot.slane %v2622_v47, %v8627_v21 }
 0x33d   : > { %v9743_v19 = vpop.permute.xlu0 %2209  ;;  %v7887_v50 = vcombine.low %v3342_v13, %v3342_v13  ;;  %v3335_v1 = vcombine.high %v9760_v38, %v9753_v25 }
 0x33e   : > { %v9757_v60 = vpop.permute.xlu1 %3113  ;;  %v3402_v43 = vcombine.low %v9795_v37, %v9789_v32  ;;  %v9821_v59 = vrot.slane %v2616_v62, %v8627_v21 }
 0x33f   : > { %3463 = vrot.lane.b32.xlu0 %v8174_v36, %s8468_s26  ;;  %v3738_v36 = vcombine.low %v9782_v20, %v9775_v51 }
 0x340   : > { %3784 = vrot.lane.b32.xlu1 %v8180_v52, %s8467_s25 }
 0x341   : > { %v9764_v58 = vpop.permute.xlu0 %3128  ;;  %v3746_v8 = vrot.slane %v3738_v36, %v8631_v34  ;;  %v2710_v36 = vcombine.low %v9821_v59, %v9812_v39 }
 0x342   : > { %v3089_v24 = vpop.permute.xlu1 %3088 }
 0x343   : > { %3809 = vrot.lane.b32.xlu0 %v7916_v17, %s8466_s16  ;;  %v7913_v4 = vcombine.low %v3746_v8, %v3746_v8  ;;  %v3157_v38 = vsel %vm1065_vm6, %v9197_v6, %v3089_v24  ;;  %v8183_v62 = vcombine.high %v3746_v8, %v3746_v8  ;;  %v2231_v6 = vpack.i.b16 %v9743_v19, %v9723_v40 }
 0x344   : > { %3448 = vrot.lane.b32.xlu1 %v8172_v61, %s8467_s25  ;;  %v8179_v61 = vcombine.high %v3678_v46, %v3678_v46  ;;  %v8171_v46 = vcombine.high %v3342_v13, %v3342_v13  ;;  %v2610_v13 = vpack.i.b16 %v9505_v22, %v9490_v54 }
 0x345   : > { %v9778_v45 = vpop.permute.xlu0 %3138 }
 0x346   : > { %v3099_v3 = vpop.permute.xlu1 %3098  ;;  %v9859_v8 = vrot.slane %v2610_v13, %v8627_v21 }
 0x347   : > { %3473 = vrot.lane.b32.xlu0 %v7897_v30, %s8466_s16  ;;  %v9816_v30 = vrot.slane %v3402_v43, %v8631_v34 }
 0x348   : > { %3759 = vrot.lane.b32.xlu1 %v7906_v11, %s8470_s29  ;;  %v3685_v11 = vrot.slane %v3671_v42, %v8631_v34  ;;  %v2604_v42 = vpack.i.b16 %v9473_v12, %v9459_v2 }
 0x349   : > { %v9791_v0 = vpop.permute.xlu0 %3148  ;;  %v7894_v25 = vcombine.low %v9816_v30, %v9816_v30 }
 0x34a   : > { %v3109_v52 = vpop.permute.xlu1 %3108  ;;  %v7910_v47 = vcombine.low %v3685_v11, %v3685_v11 }
 0x34b   : > { %3819 = vrot.lane.b32.xlu0 %v8184_v23, %s8467_s25 }
 0x34c   : > { %3423 = vrot.lane.b32.xlu1 %v7887_v50, %s8470_s29 }
 0x34d   : > { %v3124_v17 = vpop.permute.xlu0 %3123 }
 0x34e   : > { %v9809_v57 = vpop.permute.xlu1 %3118  ;;  %v3172_v50 = vsel %vm1065_vm6, %v9277_v33, %v3124_v17  ;;  %v3159_v33 = vsel %vm1069_vm13, %v3157_v38, %v9716_v7  ;;  %v2225_v7 = vpack.i.b16 %v9705_v35, %v9681_v63  ;;  %v9874_v38 = vrot.slane %v2231_v6, %v8627_v21 }
 0x34f   : > { %3483 = vrot.lane.b32.xlu0 %v8176_v29, %s8467_s25  ;;  %v3349_v29 = vrot.slane %v3335_v1, %v8631_v34  ;;  %v3174_v24 = vsel %vm1069_vm13, %v3172_v50, %v9764_v58 }
 0x350   : > { %3769 = vrot.lane.b32.xlu1 %v8179_v61, %s8469_s28  ;;  %v9854_v61 = vrot.slane %v2710_v36, %v8631_v34  ;;  %v3739_v36 = vcombine.high %v9782_v20, %v9775_v51 }
 0x351   : > { %v3134_v41 = vpop.permute.xlu0 %3133 }
 0x352   : > { %v9824_v56 = vpop.permute.xlu1 %1987  ;;  %v3176_v1 = vsel %vm1072_vm14, %v3174_v24, %v3134_v41  ;;  %v2213_v41 = vpack.i.b16 %v9538_v18, %v9526_v48  ;;  %v8158_v51 = vcombine.high %v9854_v61, %v9854_v61 }
 0x353   : > { %3794 = vrot.lane.b32.xlu0 %v7913_v4, %s8470_s29  ;;  %v3161_v4 = vsel %vm1072_vm14, %v3159_v33, %v3099_v3  ;;  %v2633_v3 = vrot.slane %v2604_v42, %v8627_v21  ;;  %v3178_v13 = vsel %vm1075_vm0, %v3176_v1, %v9778_v45  ;;  %v8181_v33 = vcombine.high %v3685_v11, %v3685_v11 }
 0x354   : > { %3433 = vrot.lane.b32.xlu1 %v8171_v46, %s8469_s28  ;;  %v2219_v46 = vpack.i.b16 %v9565_v49, %v9556_v31  ;;  %v3163_v50 = vsel %vm1075_vm0, %v3161_v4, %v9736_v55  ;;  %v9890_v55 = vrot.slane %v2225_v7, %v8627_v21  ;;  %v2242_v24 = vrot.slane %v2213_v41, %v8627_v21 }
 0x355   : > { %v9829_v23 = vpop.permute.xlu0 %2022  ;;  %v3165_v20 = vsel %vm1078_vm1, %v3163_v50, %v3109_v52  ;;  %v9895_v4 = vrot.slane %v3739_v36, %v8631_v34  ;;  %v8175_v11 = vcombine.high %v9816_v30, %v9816_v30 }
 0x356   : > { %v9841_v43 = vpop.permute.xlu1 %1997  ;;  %v2250_v6 = vrot.slane %v2219_v46, %v8627_v21  ;;  %v2319_v52 = vcombine.low %v9890_v55, %v9874_v38 }
 0x357   : > { %3458 = vrot.lane.b32.xlu0 %v7894_v25, %s8470_s29  ;;  %v7891_v25 = vcombine.low %v3349_v29, %v3349_v29 }
 0x358   : > { %3779 = vrot.lane.b32.xlu1 %v7910_v47, %s8464_s12  ;;  %v2251_v36 = vcombine.low %v2242_v24, %v2250_v6  ;;  %v9919_v30 = vrot.slane %v2319_v52, %v8631_v34  ;;  %v2611_v52 = vshrl.u32 %v9490_v54, 16 }
 0x359   : > { %v3144_v17 = vpop.permute.xlu0 %3143 }
 0x35a   : > { %v9866_v58 = vpop.permute.xlu1 %2007  ;;  %v3180_v42 = vsel %vm1078_vm1, %v3178_v13, %v3144_v17  ;;  %v3167_v17 = vsel %vm1081_vm12, %v3165_v20, %v9757_v60  ;;  %v8173_v60 = vcombine.high %v3349_v29, %v3349_v29  ;;  %v2643_v20 = vcombine.high %v2633_v3, %v9859_v8 }
 0x35b   : > { %3804 = vrot.lane.b32.xlu0 %v8183_v62, %s8469_s28  ;;  %v2642_v62 = vcombine.low %v2633_v3, %v9859_v8  ;;  %v3182_v1 = vsel %vm1081_vm12, %v3180_v42, %v9791_v0  ;;  %v3169_v7 = vsel %vm11880_vm11, %v3167_v17, %v9809_v57  ;;  %v2711_v0 = vcombine.high %v9821_v59, %v9812_v39 }
 0x35c   : > { %3443 = vrot.lane.b32.xlu1 %v7891_v25, %s8464_s12  ;;  %v7917_v57 = vcombine.low %v9895_v4, %v9895_v4  ;;  %v9926_v39 = vrot.slane %v2251_v36, %v8631_v34  ;;  %v2612_v59 = vshrl.u32 %v9505_v22, 16  ;;  %v8150_v8 = vcombine.high %v9919_v30, %v9919_v30 }
 0x35d   : > { %v9880_v47 = vpop.permute.xlu0 %2032  ;;  %v9911_v13 = vrot.slane %v2642_v62, %v8631_v34  ;;  %v3403_v62 = vcombine.high %v9795_v37, %v9789_v32  ;;  %v9935_v3 = vrot.slane %v2711_v0, %v8631_v34  ;;  %v2605_v36 = vshrl.u32 %v9459_v2, 16 }
 0x35e   : > { %v1983_v45 = vpop.permute.xlu1 %1982  ;;  %v8146_v37 = vcombine.high %v9926_v39, %v9926_v39  ;;  %v2220_v2 = vshrl.u32 %v9556_v31, 16 }
 0x35f   : > { %2805 = vrot.lane.b32.xlu0 %v8158_v51, %s8468_s26  ;;  %v8154_v42 = vcombine.high %v9911_v13, %v9911_v13  ;;  %v2051_v17 = vsel %vm1065_vm6, %v9367_v9, %v1983_v45 }
 0x360   : > { %3789 = vrot.lane.b32.xlu1 %v8181_v33, %s8465_s14  ;;  %v2053_v54 = vsel %vm1069_vm13, %v2051_v17, %v9824_v56  ;;  %v8185_v17 = vcombine.high %v9895_v4, %v9895_v4 }
 0x361   : > { %v3154_v46 = vpop.permute.xlu0 %3153 }
 0x362   : > { %v3184_v25 = vsel %vm11880_vm11, %v3182_v1, %v3154_v46  ;;  %v1993_v50 = vpop.permute.xlu1 %1992  ;;  %v11920_v1 = vld [vmem:[#allocation16_spill] sm:$0xff]  ;;  %v2252_v46 = vcombine.high %v2242_v24, %v2250_v6  ;;  %v7859_v6 = vcombine.low %v9935_v3, %v9935_v3  ;;  %v9955_v24 = vrot.slane %v3403_v62, %v8631_v34 }
 0x363   : > { %v7882_v41 = vcombine.low %v3169_v7, %v3184_v25  ;;  %3468 = vrot.lane.b32.xlu0 %v8175_v11, %s8469_s28  ;;  %v2657_v11 = vrot.slane %v2643_v20, %v8631_v34  ;;  %v2606_v7 = vshrl.u32 %v9473_v12, 16  ;;  %v2613_v25 = vpack.i.b16 %v2612_v59, %v2611_v52 }
 0x364   : > { %3453 = vrot.lane.b32.xlu1 %v8173_v60, %s8465_s14  ;;  %v2221_v12 = vshrl.u32 %v9565_v49, 16  ;;  %v2266_v0 = vrot.slane %v2252_v46, %v8631_v34  ;;  %v2320_v49 = vcombine.high %v9890_v55, %v9874_v38 }
 0x365   : > { %3191 = vst [vmem:[#allocation3 + $0x10] sm:$0x33] %v7882_v41  ;;  %v2043_v51 = vpop.permute.xlu0 %2042  ;;  %v2055_v41 = vsel %vm1072_vm14, %v2053_v54, %v1993_v50  ;;  %v7852_v60 = vcombine.low %v2657_v11, %v2657_v11  ;;  %v9966_v20 = vrot.slane %v2613_v25, %v8627_v21  ;;  %v2618_v25 = vshrl.u32 %v9607_v5, 16 }
 0x366   : > { %v2003_v29 = vpop.permute.xlu1 %2002  ;;  %v2057_v50 = vsel %vm1075_vm0, %v2055_v41, %v9841_v43  ;;  %v7837_v43 = vcombine.low %v2266_v0, %v2266_v0  ;;  %v2334_v46 = vrot.slane %v2320_v49, %v8631_v34 }
 0x367   : > { %3814 = vrot.lane.b32.xlu0 %v7917_v57, %s8464_s12  ;;  %v2607_v57 = vpack.i.b16 %v2606_v7, %v2605_v36  ;;  %v2059_v31 = vsel %vm1078_vm1, %v2057_v50, %v2003_v29 }
 0x368   : > { %2770 = vrot.lane.b32.xlu1 %v8154_v42, %s8468_s26  ;;  %v2215_v42 = vshrl.u32 %v9538_v18, 16  ;;  %v2222_v18 = vpack.i.b16 %v2221_v12, %v2220_v2  ;;  %v7844_v5 = vcombine.low %v2334_v46, %v2334_v46  ;;  %v2226_v2 = vshrl.u32 %v9681_v63, 16 }
 0x369   : > { %v2018_v33 = vpop.permute.xlu0 %2017 }
 0x36a   : > { %v2066_v22 = vsel %vm1065_vm6, %v11920_v1, %v2018_v33  ;;  %v2013_v32 = vpop.permute.xlu1 %2012  ;;  %v7898_v33 = vcombine.low %v9955_v24, %v9955_v24  ;;  %v2624_v1 = vshrl.u32 %v9655_v15, 16  ;;  %v9999_v7 = vrot.slane %v2222_v18, %v8627_v21 }
 0x36b   : > { %2414 = vrot.lane.b32.xlu0 %v8150_v8, %s8468_s26  ;;  %v2068_v9 = vsel %vm1069_vm13, %v2066_v22, %v9829_v23  ;;  %v2214_v8 = vshrl.u32 %v9526_v48, 16  ;;  %v2061_v48 = vsel %vm1081_vm12, %v2059_v31, %v9866_v58  ;;  %v2623_v58 = vshrl.u32 %v9629_v10, 16 }
 0x36c   : > { %2379 = vrot.lane.b32.xlu1 %v8146_v37, %s8468_s26  ;;  %v2063_v4 = vsel %vm11880_vm11, %v2061_v48, %v2013_v32  ;;  %v2233_v32 = vshrl.u32 %v9743_v19, 16  ;;  %v8148_v19 = vcombine.high %v2266_v0, %v2266_v0 }
 0x36d   : > { %v2028_v45 = vpop.permute.xlu0 %2027  ;;  %v2216_v55 = vpack.i.b16 %v2215_v42, %v2214_v8  ;;  %v2625_v36 = vpack.i.b16 %v2624_v1, %v2623_v58  ;;  %v8152_v1 = vcombine.high %v2334_v46, %v2334_v46 }
 0x36e   : > { %v2070_v56 = vsel %vm1072_vm14, %v2068_v9, %v2028_v45  ;;  %v9962_v23 = vpop.permute.xlu1 %1309  ;;  %v8156_v9 = vcombine.high %v2657_v11, %v2657_v11 }
 0x36f   : > { %2815 = vrot.lane.b32.xlu0 %v7859_v6, %s8466_s16  ;;  %v2072_v59 = vsel %vm1075_vm0, %v2070_v56, %v9880_v47  ;;  %v9986_v47 = vrot.slane %v2607_v57, %v8627_v21  ;;  %v10009_v45 = vrot.slane %v2216_v55, %v8627_v21  ;;  %v2617_v6 = vshrl.u32 %v9590_v16, 16 }
 0x370   : > { %2780 = vrot.lane.b32.xlu1 %v7852_v60, %s8466_s16  ;;  %v2227_v60 = vshrl.u32 %v9705_v35, 16  ;;  %v2232_v57 = vshrl.u32 %v9723_v40, 16  ;;  %v2743_v42 = vrot.slane %v2625_v36, %v8627_v21  ;;  %v8160_v35 = vcombine.high %v9935_v3, %v9935_v3 }
 0x371   : > { %v2038_v62 = vpop.permute.xlu0 %2037  ;;  %v2676_v37 = vcombine.low %v9986_v47, %v9966_v20  ;;  %v2285_v10 = vcombine.low %v10009_v45, %v9999_v7  ;;  %v2619_v11 = vpack.i.b16 %v2618_v25, %v2617_v6  ;;  %v8177_v3 = vcombine.high %v9955_v24, %v9955_v24 }
 0x372   : > { %v2074_v52 = vsel %vm1078_vm1, %v2072_v59, %v2038_v62  ;;  %v9983_v38 = vpop.permute.xlu1 %1319  ;;  %v2234_v49 = vpack.i.b16 %v2233_v32, %v2232_v57  ;;  %v2228_v59 = vpack.i.b16 %v2227_v60, %v2226_v2  ;;  %v2286_v25 = vcombine.high %v10009_v45, %v9999_v7 }
 0x373   : > { %3478 = vrot.lane.b32.xlu0 %v7898_v33, %s8464_s12  ;;  %v2076_v29 = vsel %vm1081_vm12, %v2074_v52, %v2043_v51  ;;  %v2684_v56 = vrot.slane %v2676_v37, %v8631_v34  ;;  %v2735_v40 = vrot.slane %v2619_v11, %v8627_v21  ;;  %v2293_v33 = vrot.slane %v2285_v10, %v8631_v34 }
 0x374   : > { %2389 = vrot.lane.b32.xlu1 %v7837_v43, %s8466_s16  ;;  %v2352_v63 = vrot.slane %v2234_v49, %v8627_v21  ;;  %v2344_v31 = vrot.slane %v2228_v59, %v8627_v21  ;;  %v2300_v36 = vrot.slane %v2286_v25, %v8631_v34  ;;  %v11922_v59 = vld [vmem:[#allocation19_spill] sm:$0xff] }
 0x375   : > { %v2048_v22 = vpop.permute.xlu0 %2047  ;;  %v7849_v0 = vcombine.low %v2684_v56, %v2684_v56  ;;  %v2744_v8 = vcombine.low %v2735_v40, %v2743_v42  ;;  %v7834_v43 = vcombine.low %v2293_v33, %v2293_v33  ;;  %v8147_v58 = vcombine.high %v2293_v33, %v2293_v33 }
 0x376   : > { %v2078_v15 = vsel %vm11880_vm11, %v2076_v29, %v2048_v22  ;;  %v10006_v54 = vpop.permute.xlu1 %1609  ;;  %v2353_v55 = vcombine.low %v2344_v31, %v2352_v63  ;;  %v2677_v29 = vcombine.high %v9986_v47, %v9966_v20  ;;  %v8155_v22 = vcombine.high %v2684_v56, %v2684_v56 }
 0x377   : > { %v7833_v51 = vcombine.low %v2063_v4, %v2078_v15  ;;  %3824 = vrot.lane.b32.xlu0 %v8185_v17, %s8465_s14  ;;  %v2752_v48 = vrot.slane %v2744_v8, %v8631_v34  ;;  %v2745_v32 = vcombine.high %v2735_v40, %v2743_v42  ;;  %v2354_v10 = vcombine.high %v2344_v31, %v2352_v63 }
 0x378   : > { %2790 = vrot.lane.b32.xlu1 %v8156_v9, %s8467_s25  ;;  %v2361_v15 = vrot.slane %v2353_v55, %v8631_v34  ;;  %v2691_v20 = vrot.slane %v2677_v29, %v8631_v34  ;;  %v8149_v8 = vcombine.high %v2300_v36, %v2300_v36  ;;  %v8133_v29 = vcombine.high %v9617_v53, %v9617_v53 }
 0x379   : > { %v2084_v12 = vrot.slane %v7833_v51, 6  ;;  %v10013_v41 = vpop.permute.xlu0 %1344  ;;  %v7856_v4 = vcombine.low %v2752_v48, %v2752_v48  ;;  %v8159_v45 = vcombine.high %v2752_v48, %v2752_v48  ;;  %v2759_v60 = vrot.slane %v2745_v32, %v8631_v34 }
 0x37a   : > { %v10022_v16 = vpop.permute.xlu1 %1329  ;;  %v7841_v51 = vcombine.low %v2361_v15, %v2361_v15  ;;  %v7853_v6 = vcombine.low %v2691_v20, %v2691_v20  ;;  %v8151_v11 = vcombine.high %v2361_v15, %v2361_v15  ;;  %v2368_v49 = vrot.slane %v2354_v10, %v8631_v34 }
 0x37b   : > { %2086 = vst [vmem:[#allocation3] sm:$0xcc] %v2084_v12  ;;  %2424 = vrot.lane.b32.xlu0 %v7844_v5, %s8466_s16  ;;  %v7838_v5 = vcombine.low %v2300_v36, %v2300_v36  ;;  %v7860_v2 = vcombine.low %v2759_v60, %v2759_v60 }
 0x37c   : > { %2399 = vrot.lane.b32.xlu1 %v8148_v19, %s8467_s25  ;;  %v8157_v19 = vcombine.high %v2691_v20, %v2691_v20 }
 0x37d   : > { %v10026_v50 = vpop.permute.xlu0 %1354 }
 0x37e   : > { %v10033_v62 = vpop.permute.xlu1 %1619 }
 0x37f   : > { %2825 = vrot.lane.b32.xlu0 %v8160_v35, %s8467_s25  ;;  %v11921_v35 = vld [vmem:[#allocation17_spill] sm:$0xff] }
 0x380   : > { %2765 = vrot.lane.b32.xlu1 %v7849_v0, %s8470_s29 }
 0x381   : > { %v10037_v18 = vpop.permute.xlu0 %1644 }
 0x382   : > { %v10044_v52 = vpop.permute.xlu1 %1629 }
 0x383   : > { %3488 = vrot.lane.b32.xlu0 %v8177_v3, %s8465_s14 }
 0x384   : > { %2374 = vrot.lane.b32.xlu1 %v7834_v43, %s8470_s29  ;;  %v7845_v43 = vcombine.low %v2368_v49, %v2368_v49 }
 0x385   : > { %v10046_v17 = vpop.permute.xlu0 %1364 }
 0x386   : > { %v1305_v24 = vpop.permute.xlu1 %1304 }
 0x387   : > { %2434 = vrot.lane.b32.xlu0 %v8152_v1, %s8467_s25  ;;  %v1373_v40 = vsel %vm1065_vm6, %v11921_v35, %v1305_v24 }
 0x388   : > { %2775 = vrot.lane.b32.xlu1 %v8155_v22, %s8469_s28  ;;  %v1375_v63 = vsel %vm1069_vm13, %v1373_v40, %v9962_v23  ;;  %v8161_v22 = vcombine.high %v2759_v60, %v2759_v60 }
 0x389   : > { %v10053_v37 = vpop.permute.xlu0 %1654 }
 0x38a   : > { %v1315_v46 = vpop.permute.xlu1 %1314 }
 0x38b   : > { %2800 = vrot.lane.b32.xlu0 %v7856_v4, %s8470_s29  ;;  %v1377_v55 = vsel %vm1072_vm14, %v1375_v63, %v1315_v46 }
 0x38c   : > { %2384 = vrot.lane.b32.xlu1 %v8147_v58, %s8469_s28  ;;  %v1379_v23 = vsel %vm1075_vm0, %v1377_v55, %v9983_v38 }
 0x38d   : > { %v10061_v47 = vpop.permute.xlu0 %1664 }
 0x38e   : > { %v10065_v9 = vpop.permute.xlu1 %1604 }
 0x38f   : > { %2409 = vrot.lane.b32.xlu0 %v7841_v51, %s8470_s29 }
 0x390   : > { %2785 = vrot.lane.b32.xlu1 %v7853_v6, %s8464_s12 }
 0x391   : > { %v1340_v7 = vpop.permute.xlu0 %1339 }
 0x392   : > { %v1325_v12 = vpop.permute.xlu1 %1324  ;;  %v1388_v0 = vsel %vm1065_vm6, %v11922_v59, %v1340_v7  ;;  %v8477_v7 = vmov 0  }
 0x393   : > { %2810 = vrot.lane.b32.xlu0 %v8159_v45, %s8469_s28  ;;  %v1390_v3 = vsel %vm1069_vm13, %v1388_v0, %v10013_v41  ;;  %v1381_v4 = vsel %vm1078_vm1, %v1379_v23, %v1325_v12  ;;  %3943 = vmatprep.mubr.bf16.mxu0 %v8477_v7  ;;  %v3869_v12 = vld [vmem:[%s11853_s2] sm:$0xf] }
 0x394   : > { %2394 = vrot.lane.b32.xlu1 %v7838_v5, %s8464_s12  ;;  %v1383_v53 = vsel %vm1081_vm12, %v1381_v4, %v10022_v16  ;;  %v8137_v16 = vcombine.high %v9685_v28, %v9685_v28  ;;  %7622 = vmatprep.mubr.bf16.mxu1 %v8477_v7 }
 0x395   : > { %v1350_v56 = vpop.permute.xlu0 %1349  ;;  %8337 = vset.pattern.permute.xlu1 %v8477_v7  ;;  %8348 = vset.pattern.permute.xlu0 %v8477_v7 }
 0x396   : > { %v10073_v57 = vpop.permute.xlu1 %1614  ;;  %v1392_v1 = vsel %vm1072_vm14, %v1390_v3, %v1350_v56 }
 0x397   : > { %2419 = vrot.lane.b32.xlu0 %v8151_v11, %s8469_s28  ;;  %v1394_v41 = vsel %vm1075_vm0, %v1392_v1, %v10026_v50  ;;  %v8153_v50 = vcombine.high %v2368_v49, %v2368_v49 }
 0x398   : > { %2795 = vrot.lane.b32.xlu1 %v8157_v19, %s8465_s14 }
 0x399   : > { %v10075_v42 = vpop.permute.xlu0 %1639 }
 0x39a   : > { %v1335_v33 = vpop.permute.xlu1 %1334 }
 0x39b   : > { %2820 = vrot.lane.b32.xlu0 %v7860_v2, %s8464_s12  ;;  %v1385_v58 = vsel %vm11880_vm11, %v1383_v53, %v1335_v33 }
 0x39c   : > { %2404 = vrot.lane.b32.xlu1 %v8149_v8, %s8465_s14 }
 0x39d   : > { %v1360_v31 = vpop.permute.xlu0 %1359 }
 0x39e   : > { %v10092_v48 = vpop.permute.xlu1 %1624  ;;  %v1396_v15 = vsel %vm1078_vm1, %v1394_v41, %v1360_v31 }
 0x39f   : > { %2429 = vrot.lane.b32.xlu0 %v7845_v43, %s8464_s12  ;;  %v1398_v38 = vsel %vm1081_vm12, %v1396_v15, %v10046_v17 }
 0x3a0   : > { %1634 = vrot.lane.b32.xlu1 %v8133_v29, %s8465_s14 }
 0x3a1   : > { %v10100_v24 = vpop.permute.xlu0 %1649 }
 0x3a2   : > { %v3765_v25 = vpop.permute.xlu1 %3764 }
 0x3a3   : > { %2830 = vrot.lane.b32.xlu0 %v8161_v22, %s8465_s14 }
 0x3a4   : > { %3872 = vperm.xlu1 %8337, %v3869_v12  }
 0x3a5   : > { %v1370_v46 = vpop.permute.xlu0 %1369 }
 0x3a6   : > { %v1400_v20 = vsel %vm11880_vm11, %v1398_v38, %v1370_v46  ;;  %v10113_v6 = vpop.permute.xlu1 %3428 }
 0x3a7   : > { %v7803_v51 = vcombine.low %v1385_v58, %v1400_v20  ;;  %2439 = vrot.lane.b32.xlu0 %v8153_v50, %s8465_s14 }
 0x3a9   : > { %v1406_v36 = vrot.slane %v7803_v51, 6  ;;  %v10115_v32 = vpop.permute.xlu0 %1659 }
 0x3aa   : > { %v3775_v17 = vpop.permute.xlu1 %3774 }
 0x3ab   : > { %1408 = vst [vmem:[#allocation3 + $0x8] sm:$0xcc] %v1406_v36  ;;  %1669 = vrot.lane.b32.xlu0 %v8137_v16, %s8465_s14 }
 0x3ad   : > { %v3800_v45 = vpop.permute.xlu0 %3799 }
 0x3ae   : > { %v3439_v5 = vpop.permute.xlu1 %3438 }
 0x3b1   : > { %v3464_v10 = vpop.permute.xlu0 %3463 }
 0x3b2   : > { %v3785_v56 = vpop.permute.xlu1 %3784 }
 0x3b5   : > { %v3810_v11 = vpop.permute.xlu0 %3809 }
 0x3b6   : > { %v3449_v28 = vpop.permute.xlu1 %3448 }
 0x3b9   : > { %v3474_v60 = vpop.permute.xlu0 %3473 }
 0x3ba   : > { %v3760_v19 = vpop.permute.xlu1 %3759 }
 0x3bb   : > { %v3828_v22 = vsel %vm1065_vm6, %v9635_v26, %v3760_v19 }
 0x3bc   : > { %v3830_v53 = vsel %vm1069_vm13, %v3828_v22, %v3765_v25 }
 0x3bd   : > { %v3820_v2 = vpop.permute.xlu0 %3819 }
 0x3be   : > { %v3424_v49 = vpop.permute.xlu1 %3423 }
 0x3bf   : > { %v3492_v19 = vsel %vm1065_vm6, %v9671_v27, %v3424_v49 }
 0x3c1   : > { %v3484_v35 = vpop.permute.xlu0 %3483 }
 0x3c2   : > { %v3770_v40 = vpop.permute.xlu1 %3769 }
 0x3c3   : > { %v3832_v50 = vsel %vm1072_vm14, %v3830_v53, %v3770_v40 }
 0x3c4   : > { %v3834_v51 = vsel %vm1075_vm0, %v3832_v50, %v3775_v17 }
 0x3c5   : > { %v3795_v59 = vpop.permute.xlu0 %3794 }
 0x3c6   : > { %v3434_v0 = vpop.permute.xlu1 %3433  ;;  %v3843_v4 = vsel %vm1065_vm6, %v9711_v44, %v3795_v59 }
 0x3c7   : > { %v3845_v38 = vsel %vm1069_vm13, %v3843_v4, %v3800_v45 }
 0x3c9   : > { %v3459_v33 = vpop.permute.xlu0 %3458 }
 0x3ca   : > { %v3780_v8 = vpop.permute.xlu1 %3779  ;;  %v3507_v17 = vsel %vm1065_vm6, %v9729_v14, %v3459_v33 }
 0x3cb   : > { %v3836_v44 = vsel %vm1078_vm1, %v3834_v51, %v3780_v8 }
 0x3cc   : > { %v3838_v7 = vsel %vm1081_vm12, %v3836_v44, %v3785_v56  ;;  %v3509_v56 = vsel %vm1069_vm13, %v3507_v17, %v3464_v10 }
 0x3cd   : > { %v3805_v63 = vpop.permute.xlu0 %3804 }
 0x3ce   : > { %v3444_v3 = vpop.permute.xlu1 %3443  ;;  %v3847_v58 = vsel %vm1072_vm14, %v3845_v38, %v3805_v63  ;;  %v3494_v63 = vsel %vm1069_vm13, %v3492_v19, %v10113_v6 }
 0x3cf   : > { %v3849_v26 = vsel %vm1075_vm0, %v3847_v58, %v3810_v11  ;;  %v3496_v27 = vsel %vm1072_vm14, %v3494_v63, %v3434_v0 }
 0x3d0   : > { %v3498_v33 = vsel %vm1075_vm0, %v3496_v27, %v3439_v5 }
 0x3d1   : > { %v10123_v31 = vpop.permute.xlu0 %2805  ;;  %v3500_v22 = vsel %vm1078_vm1, %v3498_v33, %v3444_v3 }
 0x3d2   : > { %v3790_v43 = vpop.permute.xlu1 %3789  ;;  %v3502_v53 = vsel %vm1081_vm12, %v3500_v22, %v3449_v28 }
 0x3d3   : > { %v3840_v11 = vsel %vm11880_vm11, %v3838_v7, %v3790_v43 }
 0x3d5   : > { %v3469_v55 = vpop.permute.xlu0 %3468 }
 0x3d6   : > { %v3454_v1 = vpop.permute.xlu1 %3453  ;;  %v3511_v49 = vsel %vm1072_vm14, %v3509_v56, %v3469_v55 }
 0x3d7   : > { %v3513_v43 = vsel %vm1075_vm0, %v3511_v49, %v3474_v60  ;;  %v3504_v58 = vsel %vm11880_vm11, %v3502_v53, %v3454_v1 }
 0x3d9   : > { %v3815_v29 = vpop.permute.xlu0 %3814 }
 0x3da   : > { %v10125_v23 = vpop.permute.xlu1 %2770  ;;  %v3851_v16 = vsel %vm1078_vm1, %v3849_v26, %v3815_v29 }
 0x3db   : > { %v3853_v45 = vsel %vm1081_vm12, %v3851_v16, %v3820_v2 }
 0x3dd   : > { %v10127_v41 = vpop.permute.xlu0 %2414 }
 0x3de   : > { %v10133_v15 = vpop.permute.xlu1 %2379 }
 0x3e1   : > { %v10137_v46 = vpop.permute.xlu0 %2815 }
 0x3e2   : > { %v10141_v20 = vpop.permute.xlu1 %2780 }
 0x3e5   : > { %v3479_v36 = vpop.permute.xlu0 %3478 }
 0x3e6   : > { %v10147_v25 = vpop.permute.xlu1 %2389  ;;  %v3515_v6 = vsel %vm1078_vm1, %v3513_v43, %v3479_v36 }
 0x3e7   : > { %v3517_v0 = vsel %vm1081_vm12, %v3515_v6, %v3484_v35 }
 0x3e9   : > { %v3825_v12 = vpop.permute.xlu0 %3824 }
 0x3ea   : > { %v3855_v40 = vsel %vm11880_vm11, %v3853_v45, %v3825_v12  ;;  %v10157_v8 = vpop.permute.xlu1 %2790 }
 0x3eb   : > { %v7920_v59 = vcombine.low %v3840_v11, %v3855_v40 }
 0x3ed   : > { %3862 = vst [vmem:[#allocation3 + $0x18] sm:$0x33] %v7920_v59  ;;  %v10162_v2 = vpop.permute.xlu0 %2424 }
 0x3ee   : > { %v10166_v14 = vpop.permute.xlu1 %2399 }
 0x3f1   : > { %v2826_v29 = vpop.permute.xlu0 %2825 }
 0x3f2   : > { %v2766_v4 = vpop.permute.xlu1 %2765 }
 0x3f3   : > { %v2834_v19 = vsel %vm1065_vm6, %v9911_v13, %v2766_v4 }
 0x3f4   : > { %v3868_v10 = vld [vmem:[#allocation3 + $0x18] sm:$0x33]  ;;  %v2836_v11 = vsel %vm1069_vm13, %v2834_v19, %v10125_v23 }
 0x3f5   : > { %v3489_v38 = vpop.permute.xlu0 %3488  ;;  %v7926_v55 = vcombine.high %v3868_v10, %v3868_v10  ;;  %v7925_v50 = vcombine.low %v3868_v10, %v3868_v10  ;;  %v11924_v23 = vld [vmem:[#allocation20_spill] sm:$0xff] }
 0x3f6   : > { %v3519_v5 = vsel %vm11880_vm11, %v3517_v0, %v3489_v38  ;;  %v2375_v3 = vpop.permute.xlu1 %2374 }
 0x3f7   : > { %v7901_v60 = vcombine.low %v3504_v58, %v3519_v5  ;;  %7927 = vmatprep.subr.msk.bf16.mxu0 %vm11879_vm10, %v7926_v55  ;;  %v3906_v51 = vsel %vm11879_vm10, %v7925_v50, 0  ;;  %v2443_v63 = vsel %vm1065_vm6, %v9926_v39, %v2375_v3  ;;  %vm3900_vm10 = vcmask 293888  }
 0x3f8   : > { %3922 = vmatpush1.bf16.msra.mxu0 %v3906_v51  ;;  %v2445_v43 = vsel %vm1069_vm13, %v2443_v63, %v10133_v15 }
 0x3f9   : > { %v3525_v26 = vrot.slane %v7901_v60, 6  ;;  %v2435_v36 = vpop.permute.xlu0 %2434 }
 0x3fa   : > { %v2776_v28 = vpop.permute.xlu1 %2775 }
 0x3fb   : > { %3527 = vst [vmem:[#allocation3 + $0x10] sm:$0xcc] %v3525_v26  ;;  %v2838_v56 = vsel %vm1072_vm14, %v2836_v11, %v2776_v28 }
 0x3fc   : > { %v2840_v39 = vsel %vm1075_vm0, %v2838_v56, %v10141_v20 }
 0x3fd   : > { %v2801_v44 = vpop.permute.xlu0 %2800 }
 0x3fe   : > { %v2385_v35 = vpop.permute.xlu1 %2384  ;;  %v2849_v17 = vsel %vm1065_vm6, %v9854_v61, %v2801_v44  ;;  %v11923_v61 = vld [vmem:[#allocation18_spill] sm:$0xff] }
 0x3ff   : > { %v2851_v40 = vsel %vm1069_vm13, %v2849_v17, %v10123_v31  ;;  %v1673_v33 = vsel %vm1065_vm6, %v11923_v61, %v10065_v9  ;;  %v1688_v31 = vsel %vm1065_vm6, %v11924_v23, %v10075_v42  ;;  %v2447_v4 = vsel %vm1072_vm14, %v2445_v43, %v2385_v35 }
 0x400   : > { %v1675_v15 = vsel %vm1069_vm13, %v1673_v33, %v10006_v54  ;;  %v1690_v20 = vsel %vm1069_vm13, %v1688_v31, %v10037_v18  ;;  %v2449_v53 = vsel %vm1075_vm0, %v2447_v4, %v10147_v25 }
 0x401   : > { %v2410_v16 = vpop.permute.xlu0 %2409 }
 0x402   : > { %v2786_v7 = vpop.permute.xlu1 %2785  ;;  %v2458_v27 = vsel %vm1065_vm6, %v9919_v30, %v2410_v16 }
 0x403   : > { %v2460_v30 = vsel %vm1069_vm13, %v2458_v27, %v10127_v41  ;;  %v2842_v9 = vsel %vm1078_vm1, %v2840_v39, %v2786_v7  ;;  %v1677_v41 = vsel %vm1072_vm14, %v1675_v15, %v10073_v57 }
 0x404   : > { %v2844_v0 = vsel %vm1081_vm12, %v2842_v9, %v10157_v8  ;;  %v1679_v25 = vsel %vm1075_vm0, %v1677_v41, %v10033_v62 }
 0x405   : > { %v2811_v45 = vpop.permute.xlu0 %2810  ;;  %v1681_v51 = vsel %vm1078_vm1, %v1679_v25, %v10092_v48 }
 0x406   : > { %v2395_v12 = vpop.permute.xlu1 %2394  ;;  %v2853_v13 = vsel %vm1072_vm14, %v2851_v40, %v2811_v45 }
 0x407   : > { %v2855_v22 = vsel %vm1075_vm0, %v2853_v13, %v10137_v46  ;;  %v1692_v46 = vsel %vm1072_vm14, %v1690_v20, %v10100_v24  ;;  %v2451_v18 = vsel %vm1078_vm1, %v2449_v53, %v2395_v12 }
 0x408   : > { %v1694_v8 = vsel %vm1075_vm0, %v1692_v46, %v10053_v37 }
 0x409   : > { %v2420_v1 = vpop.permute.xlu0 %2419  ;;  %v1696_v26 = vsel %vm1078_vm1, %v1694_v8, %v10115_v32 }
 0x40a   : > { %v2796_v49 = vpop.permute.xlu1 %2795  ;;  %v2462_v10 = vsel %vm1072_vm14, %v2460_v30, %v2420_v1 }
 0x40b   : > { %v2464_v55 = vsel %vm1075_vm0, %v2462_v10, %v10162_v2  ;;  %v2846_v57 = vsel %vm11880_vm11, %v2844_v0, %v2796_v49  ;;  %v2453_v2 = vsel %vm1081_vm12, %v2451_v18, %v10166_v14  ;;  %v1683_v14 = vsel %vm1081_vm12, %v1681_v51, %v10044_v52  ;;  %v3863_v52 = vld [vmem:[%s11852_s1] sm:$0x3] }
 0x40d   : > { %v2821_v59 = vpop.permute.xlu0 %2820 }
 0x40e   : > { %v2857_v42 = vsel %vm1078_vm1, %v2855_v22, %v2821_v59  ;;  %v2405_v38 = vpop.permute.xlu1 %2404 }
 0x40f   : > { %v2859_v54 = vsel %vm1081_vm12, %v2857_v42, %v2826_v29  ;;  %v2455_v28 = vsel %vm11880_vm11, %v2453_v2, %v2405_v38 }
 0x411   : > { %v2430_v6 = vpop.permute.xlu0 %2429 }
 0x412   : > { %v2466_v58 = vsel %vm1078_vm1, %v2464_v55, %v2430_v6  ;;  %v1635_v44 = vpop.permute.xlu1 %1634 }
 0x413   : > { %v2468_v60 = vsel %vm1081_vm12, %v2466_v58, %v2435_v36  ;;  %v1698_v36 = vsel %vm1081_vm12, %v1696_v26, %v10061_v47  ;;  %v1685_v48 = vsel %vm11880_vm11, %v1683_v14, %v1635_v44 }
 0x415   : > { %v2831_v50 = vpop.permute.xlu0 %2830 }
 0x416   : > { %v2861_v24 = vsel %vm11880_vm11, %v2859_v54, %v2831_v50 }
 0x417   : > { %v7863_v5 = vcombine.low %v2846_v57, %v2861_v24 }
 0x419   : > { %v2867_v29 = vrot.slane %v7863_v5, 6  ;;  %v2440_v3 = vpop.permute.xlu0 %2439 }
 0x41a   : > { %v2470_v62 = vsel %vm11880_vm11, %v2468_v60, %v2440_v3 }
 0x41b   : > { %2869 = vst [vmem:[#allocation3 + $0x20] sm:$0xcc] %v2867_v29  ;;  %v7848_v37 = vcombine.low %v2455_v28, %v2470_v62 }
 0x41d   : > { %2477 = vst [vmem:[#allocation3 + $0x20] sm:$0x33] %v7848_v37  ;;  %v1670_v35 = vpop.permute.xlu0 %1669 }
 0x41e   : > { %v1700_v16 = vsel %vm11880_vm11, %v1698_v36, %v1670_v35  ;;  %vm3952_vm11 = vcmask 1043456  }
 0x41f   : > { %v7818_v32 = vcombine.low %v1685_v48, %v1700_v16  ;;  %v3873_v47 = vpop.permute.xlu1 %3872 }
 0x421   : > { %1707 = vst [vmem:[#allocation3] sm:$0x33] %v7818_v32 }
 0x424   : > { %v8351_v7 = vld [vmem:[#allocation3 + $0x24] ss:$-16 sps:$4 sm:$0xff]   ;;  %v8353_v45 = vld [vmem:[#allocation3 + $0x20] ss:$-16 sps:$4 sm:$0xff]  }
 0x425   : > { %3923 = vmatprep.subr.bf16.mxu0 %v8351_v7 }
 0x426   : > { %3924 = vmatpush1.bf16.msra.mxu0 %v8353_v45 }
 0x428   : > { %v8354_v12 = vld [vmem:[#allocation3 + $0xc] ss:$-8 sps:$4 sm:$0xff]   ;;  %v8356_v1 = vld [vmem:[#allocation3 + $0x8] ss:$-8 sps:$4 sm:$0xff]  }
 0x429   : > { %3925 = vmatprep.subr.bf16.mxu0 %v8354_v12 }
 0x42a   : > { %3926 = vmatpush1.bf16.msra.mxu0 %v8356_v1 }
 0x42d   : > { %7928 = vmatmul.mubr.msk.bf16.vlgmr.msra.gmra.mxu0 %vm3900_vm10, %v3863_v52 }
 0x4ed   : > { %v3945_v19 = vpop.f32.mrf.mxu0 }
 0x4ee   : > { %v3946_v17 = vadd.f32 %v3945_v19, %v3873_v47 }
 0x4ef   : > { %v3947_v11 = vpop.f32.mrf.mxu0 }
 0x4f0   : > { %v3948_v40 = vadd.f32 %v3947_v11, %v3873_v47  ;;  %v3959_v59 = vmul.f32 %v3946_v17, %v3946_v17  ;;  %v3953_v27 = vsel %vm3952_vm11, %v3946_v17, 0.0 }
 0x4f1   : > { %v3949_v63 = vpop.f32.mrf.mxu0 }
 0x4f2   : > { %v3960_v56 = vmul.f32 %v3948_v40, %v3948_v40  ;;  %v3954_v13 = vsel %vm3952_vm11, %v3948_v40, 0.0  ;;  %v3961_v33 = vsel %vm3952_vm11, %v3959_v59, 0.0 }
 0x4f3   : > { %v3950_v49 = vpop.f32.mrf.mxu0  ;;  %v3955_v61 = vadd.f32 %v3954_v13, %v3953_v27 }
 0x4f4   : > { %v3962_v23 = vsel %vm3952_vm11, %v3960_v56, 0.0 }
 0x4f5   : > { %3956 = vadd.xlane.f32.xlu0 %v3955_v61  ;;  %v3963_v31 = vadd.f32 %v3962_v23, %v3961_v33 }
 0x4f7   : > { %3964 = vadd.xlane.f32.xlu1 %v3963_v31 }
 0x57e   : > { %v3957_v43 = vpop.xlane.xlu0 %3956 }
 0x57f   : > { %v3958_v39 = vmul.f32 0.00390625, %v3957_v43 }
 0x580   : > { %v3965_v30 = vpop.xlane.xlu1 %3964 }
 0x581   : > { %v3966_v22 = vmul.f32 0.00390625, %v3965_v30  ;;  %v3967_v6 = vmul.f32 %v3958_v39, %v3958_v39  ;;  %v3969_v10 = vsub.f32 %v3946_v17, %v3958_v39  ;;  %v3970_v41 = vsub.f32 %v3948_v40, %v3958_v39 }
 0x583   : > { %v3968_v4 = vsub.f32 %v3966_v22, %v3967_v6 }
 0x585   : > { %v3971_v9 = vadd.f32 1e-05, %v3968_v4 }
 0x587   : > { %8365 = vrsqrt.f32 %v3971_v9 }
 0x594   : > { %v8366_v42 = vpop.eup %8365 }
 0x595   : > { %v3973_v15 = vmul.f32 %v8366_v42, %v3969_v10  ;;  %v3974_v46 = vmul.f32 %v8366_v42, %v3970_v41 }
 0x597   : > { %v3975_v20 = vmax.f32 %v3973_v15, 0.0  ;;  %v3976_v53 = vmax.f32 %v3974_v46, 0.0 }
 0x599   : > { %3981 = vrot.lane.b32.xlu1 %v3975_v20, %s8467_s25  ;;  %3978 = vrot.lane.b32.xlu0 %v3975_v20, %s8465_s14 }
 0x59d   : > { %3987 = vrot.lane.b32.xlu1 %v3975_v20, %s8466_s16  ;;  %3984 = vrot.lane.b32.xlu0 %v3975_v20, %s8464_s12 }
 0x5a1   : > { %3993 = vrot.lane.b32.xlu1 %v3975_v20, %s8468_s26  ;;  %3990 = vrot.lane.b32.xlu0 %v3975_v20, %s8469_s28 }
 0x5a5   : > { %4000 = vrot.lane.b32.xlu1 %v3976_v53, %s8465_s14  ;;  %3996 = vrot.lane.b32.xlu0 %v3975_v20, %s8470_s29 }
 0x5a9   : > { %4006 = vrot.lane.b32.xlu1 %v3976_v53, %s8464_s12  ;;  %4003 = vrot.lane.b32.xlu0 %v3976_v53, %s8467_s25 }
 0x5ad   : > { %4012 = vrot.lane.b32.xlu1 %v3976_v53, %s8469_s28  ;;  %4009 = vrot.lane.b32.xlu0 %v3976_v53, %s8466_s16 }
 0x5b1   : > { %4018 = vrot.lane.b32.xlu1 %v3976_v53, %s8470_s29  ;;  %4015 = vrot.lane.b32.xlu0 %v3976_v53, %s8468_s26 }
 0x60b   : > { %v3982_v0 = vpop.permute.xlu1 %3981  ;;  %v3979_v38 = vpop.permute.xlu0 %3978 }
 0x60c   : > { %v4021_v58 = vcombine.low %v3975_v20, %v3982_v0 }
 0x60e   : > { %v4028_v2 = vrot.slane %v4021_v58, %v8627_v21 }
 0x60f   : > { %v3988_v55 = vpop.permute.xlu1 %3987  ;;  %v3985_v54 = vpop.permute.xlu0 %3984 }
 0x610   : > { %v4029_v50 = vcombine.low %v3979_v38, %v3985_v54 }
 0x612   : > { %v4036_v24 = vrot.slane %v4029_v50, %v8627_v21 }
 0x613   : > { %v3994_v18 = vpop.permute.xlu1 %3993  ;;  %v3991_v57 = vpop.permute.xlu0 %3990 }
 0x614   : > { %v4037_v5 = vcombine.low %v3988_v55, %v3994_v18  ;;  %v4053_v60 = vcombine.low %v4028_v2, %v4036_v24  ;;  %v4054_v3 = vcombine.high %v4028_v2, %v4036_v24 }
 0x616   : > { %v4044_v51 = vrot.slane %v4037_v5, %v8627_v21  ;;  %v4061_v35 = vrot.slane %v4053_v60, %v8631_v34  ;;  %v4068_v48 = vrot.slane %v4054_v3, %v8631_v34 }
 0x617   : > { %v4001_v25 = vpop.permute.xlu1 %4000  ;;  %v3997_v8 = vpop.permute.xlu0 %3996 }
 0x618   : > { %v4045_v29 = vcombine.low %v3991_v57, %v3997_v8 }
 0x61a   : > { %v4052_v26 = vrot.slane %v4045_v29, %v8627_v21 }
 0x61b   : > { %v4007_v28 = vpop.permute.xlu1 %4006  ;;  %v4004_v62 = vpop.permute.xlu0 %4003 }
 0x61c   : > { %v4069_v44 = vcombine.low %v4044_v51, %v4052_v26  ;;  %v4070_v37 = vcombine.high %v4044_v51, %v4052_v26  ;;  %v4097_v14 = vcombine.low %v4001_v25, %v4007_v28  ;;  %v4089_v36 = vcombine.low %v3976_v53, %v4004_v62 }
 0x61e   : > { %v4077_v16 = vrot.slane %v4069_v44, %v8631_v34  ;;  %v4084_v32 = vrot.slane %v4070_v37, %v8631_v34  ;;  %v4104_v19 = vrot.slane %v4097_v14, %v8627_v21  ;;  %v4096_v17 = vrot.slane %v4089_v36, %v8627_v21 }
 0x61f   : > { %v4013_v7 = vpop.permute.xlu1 %4012  ;;  %v4010_v45 = vpop.permute.xlu0 %4009 }
 0x620   : > { %v4085_v12 = vcombine.low %v4061_v35, %v4077_v16  ;;  %v4086_v1 = vcombine.high %v4061_v35, %v4077_v16  ;;  %v4087_v52 = vcombine.low %v4068_v48, %v4084_v32  ;;  %v4088_v47 = vcombine.high %v4068_v48, %v4084_v32 }
 0x621   : > { %v4121_v23 = vcombine.low %v4096_v17, %v4104_v19  ;;  %v4122_v31 = vcombine.high %v4096_v17, %v4104_v19 }
 0x622   : > { %v8188_v11 = vpack.c.bf16 %v4086_v1, %v4086_v1  ;;  %v8186_v40 = vpack.c.bf16 %v4085_v12, %v4085_v12  ;;  %v8192_v56 = vpack.c.bf16 %v4088_v47, %v4088_v47  ;;  %v8190_v27 = vpack.c.bf16 %v4087_v52, %v4087_v52 }
 0x623   : > { %v4019_v59 = vpop.permute.xlu1 %4018  ;;  %v4016_v63 = vpop.permute.xlu0 %4015  ;;  %v4129_v9 = vrot.slane %v4121_v23, %v8631_v34  ;;  %v4136_v10 = vrot.slane %v4122_v31, %v8631_v34 }
 0x624   : > { %v4113_v13 = vcombine.low %v4013_v7, %v4019_v59  ;;  %v4105_v49 = vcombine.low %v4010_v45, %v4016_v63  ;;  %v4199_v61 = vshrl.u32 %v8188_v11, 16  ;;  %v4182_v33 = vshrl.u32 %v8186_v40, 16 }
 0x625   : > { %v4233_v6 = vshrl.u32 %v8192_v56, 16  ;;  %v4216_v4 = vshrl.u32 %v8190_v27, 16  ;;  %v4202_v51 = vshll.u32 %v8188_v11, 16  ;;  %v4185_v26 = vshll.u32 %v8186_v40, 16 }
 0x626   : > { %v4120_v43 = vrot.slane %v4113_v13, %v8627_v21  ;;  %v4112_v39 = vrot.slane %v4105_v49, %v8627_v21  ;;  %4323 = vrot.lane.b32.xlu1 %v4199_v61, %s8473_s8  ;;  %4321 = vrot.lane.b32.xlu0 %v4182_v33, %s8473_s8  ;;  %v4201_v60 = vrot.slane %v4199_v61, 7  ;;  %v4184_v3 = vrot.slane %v4182_v33, 7 }
 0x627   : > { %v4235_v28 = vrot.slane %v4233_v6, 7  ;;  %v4218_v62 = vrot.slane %v4216_v4, 7  ;;  %v4236_v35 = vshll.u32 %v8192_v56, 16  ;;  %v4219_v48 = vshll.u32 %v8190_v27, 16 }
 0x628   : > { %v4137_v30 = vcombine.low %v4112_v39, %v4120_v43  ;;  %v4138_v22 = vcombine.high %v4112_v39, %v4120_v43  ;;  %v4204_v44 = vor.u32 %v4202_v51, %v4201_v60  ;;  %v4187_v37 = vor.u32 %v4185_v26, %v4184_v3 }
 0x629   : > { %v4238_v16 = vor.u32 %v4236_v35, %v4235_v28  ;;  %v4221_v32 = vor.u32 %v4219_v48, %v4218_v62  ;;  %v4205_v56 = vrot.slane %v4201_v60, 4  ;;  %v4188_v27 = vrot.slane %v4184_v3, 4 }
 0x62a   : > { %v4145_v42 = vrot.slane %v4137_v30, %v8631_v34  ;;  %v4152_v15 = vrot.slane %v4138_v22, %v8631_v34  ;;  %4327 = vrot.lane.b32.xlu1 %v4233_v6, %s8473_s8  ;;  %4325 = vrot.lane.b32.xlu0 %v4216_v4, %s8473_s8  ;;  %v4239_v31 = vrot.slane %v4235_v28, 4  ;;  %v4222_v43 = vrot.slane %v4218_v62, 4  ;;  %v4310_v62 = vld [vmem:[#allocation2 + $0x2c] sm:$0x1] }
 0x62c   : > { %v4153_v20 = vcombine.low %v4129_v9, %v4145_v42  ;;  %v4154_v41 = vcombine.high %v4129_v9, %v4145_v42  ;;  %v4155_v46 = vcombine.low %v4136_v10, %v4152_v15  ;;  %v4156_v53 = vcombine.high %v4136_v10, %v4152_v15  ;;  %v4292_v15 = vld [vmem:[#allocation2 + $0xc] sm:$0xf] }
 0x62e   : > { %v8187_v0 = vpack.c.bf16 %v4153_v20, %v4153_v20  ;;  %v8189_v38 = vpack.c.bf16 %v4154_v41, %v4154_v41  ;;  %v8191_v55 = vpack.c.bf16 %v4155_v46, %v4155_v46  ;;  %v8193_v54 = vpack.c.bf16 %v4156_v53, %v4156_v53  ;;  %v4285_v41 = vld [vmem:[#allocation2] sm:$0xf] }
 0x630   : > { %v4227_v50 = vshll.u32 %v8191_v55, 16  ;;  %v4244_v18 = vshll.u32 %v8193_v54, 16  ;;  %v4193_v57 = vshll.u32 %v8187_v0, 16  ;;  %v4210_v58 = vshll.u32 %v8189_v38, 16 }
 0x631   : > { %v4207_v14 = vshrl.u32 %v8189_v38, 16  ;;  %v4190_v36 = vshrl.u32 %v8187_v0, 16  ;;  %v4241_v12 = vshrl.u32 %v8193_v54, 16  ;;  %v4224_v1 = vshrl.u32 %v8191_v55, 16  ;;  %v4306_v55 = vld [vmem:[#allocation2 + $0x24] sm:$0xf] }
 0x632   : > { %v7943_v24 = vrot.slane %v4227_v50, 11  ;;  %v7944_v5 = vrot.slane %v4244_v18, 11  ;;  %v7941_v25 = vrot.slane %v4193_v57, 11  ;;  %v7942_v8 = vrot.slane %v4210_v58, 11 }
 0x633   : > { %v4209_v7 = vrot.slane %v4207_v14, 7  ;;  %v4192_v45 = vrot.slane %v4190_v36, 7  ;;  %v4243_v19 = vrot.slane %v4241_v12, 7  ;;  %v4226_v17 = vrot.slane %v4224_v1, 7 }
 0x634   : > { %v8343_v2 = vpack.i.bf16 %v7944_v5, %v7943_v24  ;;  %v8338_v29 = vpack.i.bf16 %v7942_v8, %v7941_v25  ;;  %v4296_v24 = vld [vmem:[#allocation2 + $0x14] sm:$0x1]  ;;  %v4289_v25 = vld [vmem:[#allocation2 + $0x8] sm:$0x1] }
 0x635   : > { %v4214_v52 = vrot.slane %v4209_v7, 4  ;;  %v4197_v47 = vrot.slane %v4192_v45, 4  ;;  %v4248_v11 = vrot.slane %v4243_v19, 4  ;;  %v4231_v40 = vrot.slane %v4226_v17, 4 }
 0x636   : > { %8344 = vrot.lane.b32.xlu1 %v8343_v2, %s8473_s8  ;;  %8339 = vrot.lane.b32.xlu0 %v8338_v29, %s8473_s8  ;;  %v4212_v59 = vor.u32 %v4210_v58, %v4209_v7  ;;  %v4195_v63 = vor.u32 %v4193_v57, %v4192_v45  ;;  %v4246_v33 = vor.u32 %v4244_v18, %v4243_v19 }
 0x637   : > { %v4229_v23 = vor.u32 %v4227_v50, %v4226_v17  ;;  %v4299_v50 = vld [vmem:[#allocation2 + $0x18] sm:$0xf] }
 0x638   : > { %v4213_v49 = vsel %vm8662_vm2, %v4205_v56, %v4212_v59  ;;  %v4196_v61 = vsel %vm8662_vm2, %v4188_v27, %v4195_v63  ;;  %v4247_v39 = vsel %vm8662_vm2, %v4239_v31, %v4246_v33 }
 0x639   : > { %v4230_v30 = vsel %vm8662_vm2, %v4222_v43, %v4229_v23  ;;  %vm11929_vm2 = vcmask 0  }
 0x63a   : > { %4255 = vrot.lane.b32.xlu1 %v4204_v44, %s8473_s8  ;;  %4249 = vrot.lane.b32.xlu0 %v4187_v37, %s8473_s8  ;;  %v4303_v37 = vld [vmem:[#allocation2 + $0x20] sm:$0x1] }
 0x63e   : > { %4267 = vrot.lane.b32.xlu1 %v4238_v16, %s8473_s8  ;;  %4261 = vrot.lane.b32.xlu0 %v4221_v32, %s8473_s8 }
 0x642   : > { %4259 = vrot.lane.b32.xlu1 %v4214_v52, %s8473_s8  ;;  %4253 = vrot.lane.b32.xlu0 %v4197_v47, %s8473_s8 }
 0x646   : > { %4271 = vrot.lane.b32.xlu1 %v4248_v11, %s8473_s8  ;;  %4265 = vrot.lane.b32.xlu0 %v4231_v40, %s8473_s8 }
 0x64a   : > { %4257 = vrot.lane.b32.xlu1 %v4213_v49, %s8473_s8  ;;  %4251 = vrot.lane.b32.xlu0 %v4196_v61, %s8473_s8 }
 0x64e   : > { %4269 = vrot.lane.b32.xlu1 %v4247_v39, %s8473_s8  ;;  %4263 = vrot.lane.b32.xlu0 %v4230_v30, %s8473_s8 }
 0x698   : > { %v4324_v22 = vpop.permute.xlu1 %4323  ;;  %v4322_v6 = vpop.permute.xlu0 %4321 }
 0x69c   : > { %v4328_v4 = vpop.permute.xlu1 %4327  ;;  %v4326_v9 = vpop.permute.xlu0 %4325 }
 0x6a8   : > { %v10312_v10 = vpop.permute.xlu1 %8344  ;;  %v8340_v42 = vpop.permute.xlu0 %8339 }
 0x6a9   : > { %v8342_v45 = vunpack.i.h.bf16 %v8340_v42  ;;  %v8341_v12 = vunpack.i.l.bf16 %v8340_v42  ;;  %v8347_v63 = vunpack.i.h.bf16 %v10312_v10  ;;  %v8346_v56 = vunpack.i.l.bf16 %v10312_v10 }
 0x6ac   : > { %v4256_v20 = vpop.permute.xlu1 %4255  ;;  %v4250_v46 = vpop.permute.xlu0 %4249 }
 0x6ad   : > { %v4293_v0 = vsel %vm8680_vm5, %v4256_v20, %v4292_v15  ;;  %v4286_v38 = vsel %vm8680_vm5, %v4250_v46, %v4285_v41 }
 0x6ae   : > { %4294 = vst [vmem:[#allocation2 + $0xc] sm:$0xf] %v4293_v0  ;;  %4287 = vst [vmem:[#allocation2] sm:$0xf] %v4286_v38 }
 0x6b0   : > { %v4268_v54 = vpop.permute.xlu1 %4267  ;;  %v4262_v18 = vpop.permute.xlu0 %4261 }
 0x6b1   : > { %v4307_v57 = vsel %vm8680_vm5, %v4268_v54, %v4306_v55  ;;  %v4300_v58 = vsel %vm8680_vm5, %v4262_v18, %v4299_v50  ;;  %vm11931_vm5 = vmmov %vm11929_vm2 }
 0x6b2   : > { %4308 = vst [vmem:[#allocation2 + $0x24] sm:$0xf] %v4307_v57  ;;  %4301 = vst [vmem:[#allocation2 + $0x18] sm:$0xf] %v4300_v58 }
 0x6b4   : > { %v4260_v5 = vpop.permute.xlu1 %4259  ;;  %v4254_v8 = vpop.permute.xlu0 %4253 }
 0x6b5   : > { %v4297_v29 = vsel %vm8694_vm7, %v4260_v5, %v4296_v24  ;;  %v4290_v60 = vsel %vm8694_vm7, %v4254_v8, %v4289_v25  ;;  %v4333_v3 = vld [vmem:[#allocation2] sm:$0x1]  ;;  %v4336_v51 = vld [vmem:[#allocation2 + $0xc] sm:$0x1] }
 0x6b6   : > { %4298 = vst [vmem:[#allocation2 + $0x14] sm:$0x1] %v4297_v29  ;;  %4291 = vst [vmem:[#allocation2 + $0x8] sm:$0x1] %v4290_v60  ;;  %v4334_v26 = vsel %vm8694_vm7, %v4322_v6, %v4333_v3  ;;  %v4337_v28 = vsel %vm8694_vm7, %v4324_v22, %v4336_v51 }
 0x6b7   : > { %4335 = vst [vmem:[#allocation2] sm:$0x1] %v4334_v26  ;;  %4338 = vst [vmem:[#allocation2 + $0xc] sm:$0x1] %v4337_v28 }
 0x6b8   : > { %v4272_v44 = vpop.permute.xlu1 %4271  ;;  %v4266_v14 = vpop.permute.xlu0 %4265 }
 0x6b9   : > { %v4311_v36 = vsel %vm8694_vm7, %v4272_v44, %v4310_v62  ;;  %v4304_v35 = vsel %vm8694_vm7, %v4266_v14, %v4303_v37  ;;  %v4339_v48 = vld [vmem:[#allocation2 + $0x18] sm:$0x1]  ;;  %v4342_v16 = vld [vmem:[#allocation2 + $0x24] sm:$0x1] }
 0x6ba   : > { %4312 = vst [vmem:[#allocation2 + $0x2c] sm:$0x1] %v4311_v36  ;;  %4305 = vst [vmem:[#allocation2 + $0x20] sm:$0x1] %v4304_v35  ;;  %v4340_v32 = vsel %vm8694_vm7, %v4326_v9, %v4339_v48  ;;  %v4343_v7 = vsel %vm8694_vm7, %v4328_v4, %v4342_v16 }
 0x6bb   : > { %4341 = vst [vmem:[#allocation2 + $0x18] sm:$0x1] %v4340_v32  ;;  %4344 = vst [vmem:[#allocation2 + $0x24] sm:$0x1] %v4343_v7 }
 0x6bc   : > { %v4258_v1 = vpop.permute.xlu1 %4257  ;;  %v4252_v52 = vpop.permute.xlu0 %4251  ;;  %vm11932_vm7 = vmmov %vm11929_vm2 }
 0x6bd   : > { %v4368_v47 = vld [vmem:[#allocation2 + $0x14] sm:$0x1]  ;;  %v4365_v19 = vld [vmem:[#allocation2 + $0x8] sm:$0x1]  ;;  %4295 = vst.msk [vmem:[#allocation2 + $0x10] sm:$0xf] %vm580_vm3, %v4258_v1 }
 0x6be   : > { %4288 = vst.msk [vmem:[#allocation2 + $0x4] sm:$0xf] %vm580_vm3, %v4252_v52  ;;  %v4369_v11 = vsel %vm8716_vm8, %v8342_v45, %v4368_v47  ;;  %v4366_v40 = vsel %vm8716_vm8, %v8341_v12, %v4365_v19  ;;  %v4377_v59 = vld [vmem:[#allocation2] sm:$0xf]  ;;  %v4380_v31 = vld [vmem:[#allocation2 + $0xc] sm:$0xf] }
 0x6bf   : > { %4370 = vst [vmem:[#allocation2 + $0x14] sm:$0x1] %v4369_v11  ;;  %4367 = vst [vmem:[#allocation2 + $0x8] sm:$0x1] %v4366_v40  ;;  %4401 = vrot.lane.b32.xlu0 %v4377_v59, %s8474_s7 }
 0x6c0   : > { %v4270_v27 = vpop.permute.xlu1 %4269  ;;  %v4264_v13 = vpop.permute.xlu0 %4263 }
 0x6c1   : > { %v4374_v49 = vld [vmem:[#allocation2 + $0x2c] sm:$0x1]  ;;  %v4371_v61 = vld [vmem:[#allocation2 + $0x20] sm:$0x1]  ;;  %4309 = vst.msk [vmem:[#allocation2 + $0x28] sm:$0xf] %vm580_vm3, %v4270_v27 }
 0x6c2   : > { %4302 = vst.msk [vmem:[#allocation2 + $0x1c] sm:$0xf] %vm580_vm3, %v4264_v13  ;;  %v4375_v33 = vsel %vm8716_vm8, %v8347_v63, %v4374_v49  ;;  %v4372_v23 = vsel %vm8716_vm8, %v8346_v56, %v4371_v61  ;;  %v4383_v39 = vld [vmem:[#allocation2 + $0x18] sm:$0xf]  ;;  %v4386_v22 = vld [vmem:[#allocation2 + $0x24] sm:$0xf]  ;;  %vm11930_vm3 = vmmov %vm11929_vm2 }
 0x6c3   : > { %4376 = vst [vmem:[#allocation2 + $0x2c] sm:$0x1] %v4375_v33  ;;  %4373 = vst [vmem:[#allocation2 + $0x20] sm:$0x1] %v4372_v23  ;;  %4407 = vrot.lane.b32.xlu0 %v4380_v31, %s8474_s7  ;;  %vm11933_vm8 = vcmask 142472  }
 0x6c4   : > { %v4381_v30 = vld [vmem:[#allocation2 + $0x10] sm:$0xf] }
 0x6c5   : > { %v4378_v43 = vld [vmem:[#allocation2 + $0x4] sm:$0xf] }
 0x6c6   : > { %4403 = vrot.lane.b32.xlu1 %v4378_v43, %s8474_s7  ;;  %v4379_v4 = vld [vmem:[#allocation2 + $0x8] sm:$0x1]  ;;  %v4382_v42 = vld [vmem:[#allocation2 + $0x14] sm:$0x1] }
 0x6c7   : > { %4413 = vrot.lane.b32.xlu0 %v4383_v39, %s8474_s7 }
 0x6c8   : > { %v4387_v9 = vld [vmem:[#allocation2 + $0x28] sm:$0xf] }
 0x6c9   : > { %v4384_v6 = vld [vmem:[#allocation2 + $0x1c] sm:$0xf] }
 0x6ca   : > { %4409 = vrot.lane.b32.xlu1 %v4381_v30, %s8474_s7  ;;  %v4385_v10 = vld [vmem:[#allocation2 + $0x20] sm:$0x1]  ;;  %v4388_v15 = vld [vmem:[#allocation2 + $0x2c] sm:$0x1] }
 0x6cb   : > { %4419 = vrot.lane.b32.xlu0 %v4386_v22, %s8474_s7 }
 0x6ce   : > { %4415 = vrot.lane.b32.xlu1 %v4384_v6, %s8474_s7 }
 0x6cf   : > { %4405 = vrot.lane.b32.xlu0 %v4379_v4, %s8474_s7 }
 0x6d2   : > { %4421 = vrot.lane.b32.xlu1 %v4387_v9, %s8474_s7 }
 0x6d3   : > { %4417 = vrot.lane.b32.xlu0 %v4385_v10, %s8474_s7 }
 0x6d6   : > { %4411 = vrot.lane.b32.xlu1 %v4382_v42, %s8474_s7 }
 0x6da   : > { %4423 = vrot.lane.b32.xlu1 %v4388_v15, %s8474_s7 }
 0x731   : > { %v4402_v20 = vpop.permute.xlu0 %4401 }
 0x732   : > { %4437 = vst.msk [vmem:[#allocation2] sm:$0xf] %vm739_vm9, %v4402_v20 }
 0x735   : > { %v4408_v41 = vpop.permute.xlu0 %4407 }
 0x736   : > { %4440 = vst.msk [vmem:[#allocation2 + $0xc] sm:$0xf] %vm739_vm9, %v4408_v41 }
 0x738   : > { %v4404_v46 = vpop.permute.xlu1 %4403 }
 0x739   : > { %4438 = vst.msk [vmem:[#allocation2 + $0x4] sm:$0xf] %vm739_vm9, %v4404_v46  ;;  %v4414_v53 = vpop.permute.xlu0 %4413  ;;  %v4449_v0 = vld [vmem:[#allocation2] sm:$0xf] }
 0x73a   : > { %4443 = vst.msk [vmem:[#allocation2 + $0x18] sm:$0xf] %vm739_vm9, %v4414_v53  ;;  %4473 = vrot.lane.b32.xlu0 %v4449_v0, %s8475_s9 }
 0x73c   : > { %v4410_v38 = vpop.permute.xlu1 %4409 }
 0x73d   : > { %4441 = vst.msk [vmem:[#allocation2 + $0x10] sm:$0xf] %vm739_vm9, %v4410_v38  ;;  %v4420_v55 = vpop.permute.xlu0 %4419  ;;  %v4452_v54 = vld [vmem:[#allocation2 + $0xc] sm:$0xf] }
 0x73e   : > { %4446 = vst.msk [vmem:[#allocation2 + $0x24] sm:$0xf] %vm739_vm9, %v4420_v55  ;;  %4479 = vrot.lane.b32.xlu0 %v4452_v54, %s8475_s9 }
 0x740   : > { %v4416_v50 = vpop.permute.xlu1 %4415  ;;  %v4450_v18 = vld [vmem:[#allocation2 + $0x4] sm:$0xf] }
 0x741   : > { %4444 = vst.msk [vmem:[#allocation2 + $0x1c] sm:$0xf] %vm739_vm9, %v4416_v50  ;;  %4475 = vrot.lane.b32.xlu1 %v4450_v18, %s8475_s9  ;;  %v4406_v57 = vpop.permute.xlu0 %4405  ;;  %v4455_v58 = vld [vmem:[#allocation2 + $0x18] sm:$0xf] }
 0x742   : > { %4439 = vst.msk [vmem:[#allocation2 + $0x8] sm:$0x1] %vm11929_vm2, %v4406_v57  ;;  %4485 = vrot.lane.b32.xlu0 %v4455_v58, %s8475_s9  ;;  %vm11935_vm2 = vmmov %vm11933_vm8 }
 0x744   : > { %v4422_v24 = vpop.permute.xlu1 %4421  ;;  %v4453_v5 = vld [vmem:[#allocation2 + $0x10] sm:$0xf] }
 0x745   : > { %4447 = vst.msk [vmem:[#allocation2 + $0x28] sm:$0xf] %vm739_vm9, %v4422_v24  ;;  %4481 = vrot.lane.b32.xlu1 %v4453_v5, %s8475_s9  ;;  %v4418_v25 = vpop.permute.xlu0 %4417  ;;  %v4458_v8 = vld [vmem:[#allocation2 + $0x24] sm:$0xf]  ;;  %vm11934_vm9 = vmmov %vm11933_vm8 }
 0x746   : > { %4445 = vst.msk [vmem:[#allocation2 + $0x20] sm:$0x1] %vm11930_vm3, %v4418_v25  ;;  %4491 = vrot.lane.b32.xlu0 %v4458_v8, %s8475_s9  ;;  %vm11936_vm3 = vmmov %vm11935_vm2 }
 0x748   : > { %v4412_v2 = vpop.permute.xlu1 %4411  ;;  %v4456_v29 = vld [vmem:[#allocation2 + $0x1c] sm:$0xf] }
 0x749   : > { %4442 = vst.msk [vmem:[#allocation2 + $0x14] sm:$0x1] %vm11931_vm5, %v4412_v2  ;;  %4487 = vrot.lane.b32.xlu1 %v4456_v29, %s8475_s9  ;;  %v4451_v60 = vld [vmem:[#allocation2 + $0x8] sm:$0x1]  ;;  %vm11937_vm5 = vmmov %vm11935_vm2 }
 0x74a   : > { %4477 = vrot.lane.b32.xlu0 %v4451_v60, %s8475_s9 }
 0x74c   : > { %v4424_v3 = vpop.permute.xlu1 %4423  ;;  %v4459_v51 = vld [vmem:[#allocation2 + $0x28] sm:$0xf] }
 0x74d   : > { %4448 = vst.msk [vmem:[#allocation2 + $0x2c] sm:$0x1] %vm11932_vm7, %v4424_v3  ;;  %4493 = vrot.lane.b32.xlu1 %v4459_v51, %s8475_s9  ;;  %v4457_v26 = vld [vmem:[#allocation2 + $0x20] sm:$0x1]  ;;  %vm11938_vm7 = vmmov %vm11935_vm2 }
 0x74e   : > { %4489 = vrot.lane.b32.xlu0 %v4457_v26, %s8475_s9 }
 0x750   : > { %v4454_v28 = vld [vmem:[#allocation2 + $0x14] sm:$0x1] }
 0x751   : > { %4483 = vrot.lane.b32.xlu1 %v4454_v28, %s8475_s9 }
 0x754   : > { %v4460_v62 = vld [vmem:[#allocation2 + $0x2c] sm:$0x1] }
 0x755   : > { %4495 = vrot.lane.b32.xlu1 %v4460_v62, %s8475_s9 }
 0x7ac   : > { %v4474_v44 = vpop.permute.xlu0 %4473 }
 0x7ad   : > { %4509 = vst.msk [vmem:[#allocation2] sm:$0xf] %vm11933_vm8, %v4474_v44  ;;  %vm11939_vm8 = vmmov %vm11935_vm2 }
 0x7b0   : > { %v4480_v37 = vpop.permute.xlu0 %4479 }
 0x7b1   : > { %4512 = vst.msk [vmem:[#allocation2 + $0xc] sm:$0xf] %vm11934_vm9, %v4480_v37  ;;  %vm11940_vm9 = vcmask 139400  }
 0x7b3   : > { %v4476_v14 = vpop.permute.xlu1 %4475 }
 0x7b4   : > { %4510 = vst.msk [vmem:[#allocation2 + $0x4] sm:$0xf] %vm11935_vm2, %v4476_v14  ;;  %v4486_v36 = vpop.permute.xlu0 %4485  ;;  %v4796_v35 = vld [vmem:[#allocation2] sm:$0xf] }
 0x7b5   : > { %4515 = vst.msk [vmem:[#allocation2 + $0x18] sm:$0xf] %vm11936_vm3, %v4486_v36  ;;  %4812 = vrot.lane.b32.xlu0 %v4796_v35, %s8476_s10  ;;  %vm11941_vm3 = vmmov %vm11940_vm9  ;;  %v5096_v59 = vld [vmem:[#allocation2] sm:$0xf] }
 0x7b6   : > { %v7209_v4 = vld [vmem:[#allocation2] sm:$0xe] }
 0x7b7   : > { %v4482_v48 = vpop.permute.xlu1 %4481  ;;  %v8073_v46 = vrot.slane %v7209_v4, 9  ;;  %v6873_v37 = vld [vmem:[#allocation2] sm:$0xe] }
 0x7b8   : > { %4513 = vst.msk [vmem:[#allocation2 + $0x10] sm:$0xf] %vm11937_vm5, %v4482_v48  ;;  %v4492_v16 = vpop.permute.xlu0 %4491  ;;  %v4798_v32 = vld [vmem:[#allocation2 + $0xc] sm:$0xf]  ;;  %vm11942_vm5 = vmmov %vm11941_vm3  ;;  %v6162_v48 = vld [vmem:[#allocation2] sm:$0xf] }
 0x7b9   : > { %4518 = vst.msk [vmem:[#allocation2 + $0x24] sm:$0xf] %vm11938_vm7, %v4492_v16  ;;  %4816 = vrot.lane.b32.xlu0 %v4798_v32, %s8476_s10  ;;  %vm11943_vm7 = vmmov %vm11941_vm3  ;;  %v5098_v13 = vld [vmem:[#allocation2 + $0xc] sm:$0xf]  ;;  %v10483_v4 = vld [vmem:[#allocation2] sm:$0xf] }
 0x7ba   : > { %v7212_v53 = vld [vmem:[#allocation2 + $0xc] sm:$0xe] }
 0x7bb   : > { %v4488_v7 = vpop.permute.xlu1 %4487  ;;  %v4797_v45 = vld [vmem:[#allocation2 + $0x4] sm:$0xf]  ;;  %v8074_v58 = vrot.slane %v7212_v53, 9 }
 0x7bc   : > { %4516 = vst.msk [vmem:[#allocation2 + $0x1c] sm:$0xf] %vm11939_vm8, %v4488_v7  ;;  %4814 = vrot.lane.b32.xlu1 %v4797_v45, %s8476_s10  ;;  %v4478_v12 = vpop.permute.xlu0 %4477  ;;  %v4800_v1 = vld [vmem:[#allocation2 + $0x18] sm:$0xf]  ;;  %v5097_v23 = vld [vmem:[#allocation2 + $0x4] sm:$0xf] }
 0x7bd   : > { %4511 = vst.msk [vmem:[#allocation2 + $0x8] sm:$0x1] %vm11940_vm9, %v4478_v12  ;;  %4820 = vrot.lane.b32.xlu0 %v4800_v1, %s8476_s10  ;;  %v10418_v31 = vld [vmem:[#allocation2 + $0x4] sm:$0xf]  ;;  %v5100_v39 = vld [vmem:[#allocation2 + $0x18] sm:$0xf] }
 0x7be   : > { %v7210_v30 = vld [vmem:[#allocation2 + $0x4] sm:$0xf]  ;;  %v7215_v24 = vld [vmem:[#allocation2 + $0x18] sm:$0xe]  ;;  %v8054_v7 = vrot.slane %v6873_v37, 9 }
 0x7bf   : > { %v4494_v52 = vpop.permute.xlu1 %4493  ;;  %v4799_v47 = vld [vmem:[#allocation2 + $0x10] sm:$0xf]  ;;  %v7235_v42 = vrot.slane %v7210_v30, 5  ;;  %v8075_v60 = vrot.slane %v7215_v24, 9  ;;  %v10455_v62 = vld [vmem:[#allocation2 + $0x4] sm:$0xf] }
 0x7c0   : > { %4519 = vst.msk [vmem:[#allocation2 + $0x28] sm:$0xf] %vm11935_vm2, %v4494_v52  ;;  %4818 = vrot.lane.b32.xlu1 %v4799_v47, %s8476_s10  ;;  %v4490_v19 = vpop.permute.xlu0 %4489  ;;  %v4802_v17 = vld [vmem:[#allocation2 + $0x24] sm:$0xf]  ;;  %v10411_v49 = vld [vmem:[#allocation2 + $0x10] sm:$0xf] }
 0x7c1   : > { %4517 = vst.msk [vmem:[#allocation2 + $0x20] sm:$0x1] %vm11941_vm3, %v4490_v19  ;;  %4824 = vrot.lane.b32.xlu0 %v4802_v17, %s8476_s10  ;;  %v4543_v43 = vpack.i.b16 %v10411_v49, %v10418_v31  ;;  %v5099_v6 = vld [vmem:[#allocation2 + $0x10] sm:$0xf]  ;;  %v5102_v10 = vld [vmem:[#allocation2 + $0x24] sm:$0xf]  ;;  %v7236_v38 = vsel %vm8808_vm15, %v8073_v46, %v7235_v42 }
 0x7c2   : > { %v10428_v15 = vld [vmem:[#allocation2 + $0x10] sm:$0xf]  ;;  %v7218_v3 = vld [vmem:[#allocation2 + $0x24] sm:$0xe]  ;;  %v6899_v35 = vrot.slane %v10455_v62, 5  ;;  %v6175_v52 = vshrl.u32 %v6162_v48, 16 }
 0x7c3   : > { %v4484_v11 = vpop.permute.xlu1 %4483  ;;  %v4801_v40 = vld [vmem:[#allocation2 + $0x1c] sm:$0xf]  ;;  %v4628_v9 = vrot.slane %v4543_v43, %v8627_v21  ;;  %v7242_v55 = vrot.slane %v10428_v15, 5  ;;  %v8076_v44 = vrot.slane %v7218_v3, 9  ;;  %v10464_v32 = vld [vmem:[#allocation2 + $0x10] sm:$0xf] }
 0x7c4   : > { %4514 = vst.msk [vmem:[#allocation2 + $0x14] sm:$0x1] %vm11942_vm5, %v4484_v11  ;;  %4822 = vrot.lane.b32.xlu1 %v4801_v40, %s8476_s10  ;;  %v10413_v61 = vld [vmem:[#allocation2 + $0x1c] sm:$0xf]  ;;  %v7211_v14 = vld [vmem:[#allocation2 + $0x8] sm:$0x1]  ;;  %v6900_v19 = vsel %vm8808_vm15, %v8054_v7, %v6899_v35 }
 0x7c5   : > { %5112 = vrot.lane.b32.xlu0 %v5096_v59, %s8474_s7  ;;  %v5101_v41 = vld [vmem:[#allocation2 + $0x1c] sm:$0xf]  ;;  %v7243_v5 = vsel %vm8808_vm15, %v8074_v58, %v7242_v55  ;;  %v7238_v45 = vrot.slane %v7211_v14, 5  ;;  %v6876_v12 = vld [vmem:[#allocation2 + $0xc] sm:$0xe]  ;;  %v6178_v47 = vshll.u32 %v6162_v48, 16 }
 0x7c6   : > { %v10438_v50 = vld [vmem:[#allocation2 + $0x1c] sm:$0xf]  ;;  %v7237_v17 = vrot.slane %v7235_v42, 4  ;;  %v6906_v11 = vrot.slane %v10464_v32, 5  ;;  %v6177_v43 = vrot.slane %v6175_v52, 4 }
 0x7c7   : > { %v4496_v63 = vpop.permute.xlu1 %4495  ;;  %v4803_v56 = vld [vmem:[#allocation2 + $0x28] sm:$0xf]  ;;  %v7249_v25 = vrot.slane %v10438_v50, 5  ;;  %v10473_v40 = vld [vmem:[#allocation2 + $0x1c] sm:$0xf] }
 0x7c8   : > { %v10407_v27 = vld [vmem:[#allocation2 + $0x28] sm:$0xf]  ;;  %4520 = vst.msk [vmem:[#allocation2 + $0x2c] sm:$0x1] %vm11943_vm7, %v4496_v63  ;;  %4826 = vrot.lane.b32.xlu1 %v4803_v56, %s8476_s10  ;;  %v7239_v59 = vsel %vm8808_vm15, %v7237_v17, %v7238_v45  ;;  %v8055_v63 = vrot.slane %v6876_v12, 9 }
 0x7c9   : > { %5116 = vrot.lane.b32.xlu0 %v5098_v13, %s8474_s7  ;;  %v4549_v33 = vpack.i.b16 %v10407_v27, %v10413_v61  ;;  %v5103_v57 = vld [vmem:[#allocation2 + $0x28] sm:$0xf]  ;;  %v7250_v51 = vsel %vm8808_vm15, %v8075_v60, %v7249_v25  ;;  %v7217_v13 = vld [vmem:[#allocation2 + $0x20] sm:$0x1]  ;;  %v10488_v42 = vld [vmem:[#allocation2 + $0x4] sm:$0xf] }
 0x7ca   : > { %v10448_v29 = vld [vmem:[#allocation2 + $0x28] sm:$0xf]  ;;  %v6907_v30 = vsel %vm8808_vm15, %v8055_v63, %v6906_v11  ;;  %v6882_v46 = vld [vmem:[#allocation2 + $0x24] sm:$0xe]  ;;  %v10503_v60 = vld [vmem:[#allocation2 + $0x10] sm:$0xf] }
 0x7cb   : > { %v4636_v22 = vrot.slane %v4549_v33, %v8627_v21  ;;  %v7256_v26 = vrot.slane %v10448_v29, 5  ;;  %v7214_v1 = vld [vmem:[#allocation2 + $0x14] sm:$0x1]  ;;  %v6165_v33 = vld [vmem:[#allocation2 + $0xc] sm:$0xf]  ;;  %v4551_v63 = vshrl.u32 %v10407_v27, 16 }
 0x7cc   : > { %5114 = vrot.lane.b32.xlu1 %v5097_v23, %s8474_s7  ;;  %v7245_v56 = vrot.slane %v7214_v1, 5  ;;  %v6879_v23 = vld [vmem:[#allocation2 + $0x18] sm:$0xe]  ;;  %v6199_v15 = vshrl.u32 %v6165_v33, 16  ;;  %v6202_v53 = vshll.u32 %v6165_v33, 16  ;;  %v6208_v1 = vshll.u32 %v10503_v60, 16 }
 0x7cd   : > { %5120 = vrot.lane.b32.xlu0 %v5100_v39, %s8474_s7  ;;  %v4637_v20 = vcombine.low %v4628_v9, %v4636_v22  ;;  %v4638_v18 = vcombine.high %v4628_v9, %v4636_v22  ;;  %v7257_v36 = vsel %vm8808_vm15, %v8076_v44, %v7256_v26  ;;  %v6180_v39 = vrot.slane %v6178_v47, 5  ;;  %v6171_v14 = vld [vmem:[#allocation2 + $0x24] sm:$0xf]  ;;  %v6878_v52 = vld [vmem:[#allocation2 + $0x14] sm:$0x1] }
 0x7ce   : > { %v7244_v22 = vrot.slane %v7242_v55, 4  ;;  %v7252_v9 = vrot.slane %v7217_v13, 5  ;;  %v6201_v3 = vrot.slane %v6199_v15, 4  ;;  %v7258_v45 = vrot.slane %v7256_v26, 4 }
 0x7cf   : > { %v10436_v54 = vrot.slane %v4637_v20, %v8631_v34  ;;  %v4652_v2 = vrot.slane %v4638_v18, %v8631_v34  ;;  %v7220_v55 = vld [vmem:[#allocation2 + $0x2c] sm:$0x1]  ;;  %v6181_v50 = vor.u32 %v6180_v39, %v6177_v43  ;;  %v6168_v18 = vld [vmem:[#allocation2 + $0x18] sm:$0xf]  ;;  %v6247_v17 = vshrl.u32 %v6171_v14, 16 }
 0x7d0   : > { %5118 = vrot.lane.b32.xlu1 %v5099_v6, %s8474_s7  ;;  %v6913_v6 = vrot.slane %v10473_v40, 5  ;;  %v7246_v20 = vsel %vm8808_vm15, %v7244_v22, %v7245_v56  ;;  %v6223_v44 = vshrl.u32 %v6168_v18, 16  ;;  %v6226_v37 = vshll.u32 %v6168_v18, 16  ;;  %v6881_v43 = vld [vmem:[#allocation2 + $0x20] sm:$0x1] }
 0x7d1   : > { %5124 = vrot.lane.b32.xlu0 %v5102_v10, %s8474_s7  ;;  %v8198_v8 = vcombine.high %v10436_v54, %v10436_v54  ;;  %v7955_v28 = vcombine.low %v4652_v2, %v4652_v2  ;;  %v8200_v16 = vcombine.high %v4652_v2, %v4652_v2  ;;  %v10486_v10 = vld [vmem:[#allocation2 + $0x28] sm:$0xf]  ;;  %v6188_v33 = vshrl.u32 %v10488_v42, 16  ;;  %v10546_v18 = vld [vmem:[#allocation2 + $0x4] sm:$0xf] }
 0x7d2   : > { %v6920_v24 = vrot.slane %v10486_v10, 5  ;;  %v6875_v2 = vld [vmem:[#allocation2 + $0x8] sm:$0x1]  ;;  %v6225_v29 = vrot.slane %v6223_v44, 4  ;;  %v6228_v26 = vrot.slane %v6226_v37, 5  ;;  %v4545_v39 = vshrl.u32 %v10411_v49, 16 }
 0x7d3   : > { %v6902_v47 = vrot.slane %v6875_v2, 5  ;;  %v6249_v62 = vrot.slane %v6247_v17, 4  ;;  %v6915_v32 = vrot.slane %v6913_v6, 4  ;;  %v6884_v44 = vld [vmem:[#allocation2 + $0x2c] sm:$0x1]  ;;  %v5793_v37 = vshll.u32 %v10546_v18, 16 }
 0x7d4   : > { %5122 = vrot.lane.b32.xlu1 %v5101_v41, %s8474_s7  ;;  %v8056_v41 = vrot.slane %v6879_v23, 9  ;;  %v6901_v23 = vrot.slane %v6899_v35, 4 }
 0x7d5   : > { %7261 = vrot.lane.b32.xlu0 %v7236_v38, %s8474_s7  ;;  %v7251_v38 = vrot.slane %v7249_v25, 4  ;;  %v8057_v25 = vrot.slane %v6882_v46, 9 }
 0x7d6   : > { %v6914_v58 = vsel %vm8808_vm15, %v8056_v41, %v6913_v6  ;;  %v4544_v41 = vshrl.u32 %v10418_v31, 16 }
 0x7d7   : > { %v6921_v7 = vsel %vm8808_vm15, %v8057_v25, %v6920_v24 }
 0x7d8   : > { %5126 = vrot.lane.b32.xlu1 %v5103_v57, %s8474_s7  ;;  %v5784_v57 = vshrl.u32 %v10483_v4, 16 }
 0x7d9   : > { %7265 = vrot.lane.b32.xlu0 %v7243_v5, %s8474_s7  ;;  %v6184_v5 = vshll.u32 %v10488_v42, 16 }
 0x7da   : > { %v10506_v48 = vrot.slane %v5784_v57, 4  ;;  %v4546_v57 = vpack.i.b16 %v4545_v39, %v4544_v41  ;;  %v10585_v39 = vrot.slane %v5793_v37, 5  ;;  %v10594_v41 = vld [vmem:[#allocation2 + $0x18] sm:$0xf] }
 0x7db   : > { %v10515_v12 = vrot.slane %v6184_v5, 5  ;;  %v6212_v5 = vshrl.u32 %v10503_v60, 16 }
 0x7dc   : > { %4732 = vrot.lane.b32.xlu1 %v8198_v8, %s8468_s26  ;;  %v7253_v8 = vsel %vm8808_vm15, %v7251_v38, %v7252_v9  ;;  %v6909_v9 = vrot.slane %v6878_v52, 5  ;;  %v6229_v38 = vor.u32 %v6228_v26, %v6225_v29  ;;  %v10579_v26 = vld [vmem:[#allocation2 + $0x1c] sm:$0xf] }
 0x7dd   : > { %7269 = vrot.lane.b32.xlu0 %v7250_v51, %s8474_s7  ;;  %v7259_v51 = vrot.slane %v7220_v55, 5  ;;  %v6916_v55 = vrot.slane %v6881_v43, 5  ;;  %v6922_v43 = vrot.slane %v6920_v24, 4 }
 0x7df   : > { %v7260_v56 = vsel %vm8808_vm15, %v7258_v45, %v7259_v51  ;;  %v5777_v51 = vld [vmem:[#allocation2 + $0x18] sm:$0xf]  ;;  %v6917_v6 = vsel %vm8808_vm15, %v6915_v32, %v6916_v55  ;;  %v10570_v45 = vld [vmem:[#allocation2 + $0x10] sm:$0xf]  ;;  %v10608_v32 = vld [vmem:[#allocation2 + $0x28] sm:$0xf] }
 0x7e0   : > { %4742 = vrot.lane.b32.xlu1 %v7955_v28, %s8466_s16  ;;  %v6204_v28 = vrot.slane %v6202_v53, 5  ;;  %v6908_v53 = vrot.slane %v6906_v11, 4  ;;  %v5835_v17 = vshll.u32 %v5777_v51, 16 }
 0x7e1   : > { %7273 = vrot.lane.b32.xlu0 %v7257_v36, %s8474_s7  ;;  %v6182_v36 = vrot.slane %v6181_v50, 4 }
 0x7e2   : > { %v6205_v13 = vor.u32 %v6204_v28, %v6201_v3  ;;  %v6910_v11 = vsel %vm8808_vm15, %v6908_v53, %v6909_v9  ;;  %v6230_v28 = vrot.slane %v6229_v38, 4  ;;  %v10587_v9 = vld [vmem:[#allocation2 + $0xc] sm:$0xf]  ;;  %v5837_v24 = vrot.slane %v5835_v17, 5 }
 0x7e3   : > { %v6187_v22 = vsel %vm8911_vm4, %v6182_v36, %v10515_v12  ;;  %v5797_v38 = vshrl.u32 %v10546_v18, 16  ;;  %v6214_v17 = vrot.slane %v6212_v5, 4 }
 0x7e4   : > { %4752 = vrot.lane.b32.xlu1 %v8200_v16, %s8467_s25  ;;  %v5787_v16 = vshll.u32 %v10483_v4, 16  ;;  %v10533_v4 = vrot.slane %v6208_v1, 5  ;;  %v6206_v46 = vrot.slane %v6205_v13, 4 }
 0x7e5   : > { %6925 = vrot.lane.b32.xlu0 %v6900_v19, %s8476_s10  ;;  %v10519_v19 = vld [vmem:[#allocation2 + $0x1c] sm:$0xf] }
 0x7e6   : > { %v6232_v15 = vshll.u32 %v10519_v19, 16  ;;  %v6211_v31 = vsel %vm8911_vm4, %v6206_v46, %v10533_v4  ;;  %v5789_v2 = vrot.slane %v5787_v16, 5  ;;  %v6236_v40 = vshrl.u32 %v10519_v19, 16 }
 0x7e7   : > { %v4662_v16 = vrot.slane %v4546_v57, %v8627_v21 }
 0x7e8   : > { %7263 = vrot.lane.b32.xlu1 %v7239_v59, %s8474_s7  ;;  %v6250_v59 = vshll.u32 %v6171_v14, 16  ;;  %v5790_v13 = vor.u32 %v5789_v2, %v10506_v48  ;;  %v6238_v42 = vrot.slane %v6236_v40, 4 }
 0x7e9   : > { %6929 = vrot.lane.b32.xlu0 %v6907_v30, %s8476_s10  ;;  %v4550_v30 = vshrl.u32 %v10413_v61, 16  ;;  %v6903_v61 = vsel %vm8808_vm15, %v6901_v23, %v6902_v47  ;;  %v5832_v47 = vshrl.u32 %v5777_v51, 16  ;;  %v10581_v23 = vld [vmem:[#allocation2 + $0x24] sm:$0xf] }
 0x7ea   : > { %v6252_v35 = vrot.slane %v6250_v59, 5  ;;  %v5780_v59 = vld [vmem:[#allocation2 + $0x24] sm:$0xf]  ;;  %v5791_v53 = vrot.slane %v5790_v13, 4 }
 0x7eb   : > { %v4552_v49 = vpack.i.b16 %v4551_v63, %v4550_v30  ;;  %v5834_v10 = vrot.slane %v5832_v47, 4  ;;  %v6190_v47 = vrot.slane %v6188_v33, 4 }
 0x7ec   : > { %7267 = vrot.lane.b32.xlu1 %v7246_v20, %s8474_s7  ;;  %v10536_v20 = vld [vmem:[#allocation2 + $0x28] sm:$0xf]  ;;  %v6253_v25 = vor.u32 %v6252_v35, %v6249_v62  ;;  %v5856_v62 = vshrl.u32 %v5780_v59, 16  ;;  %v5859_v35 = vshll.u32 %v5780_v59, 16 }
 0x7ed   : > { %6933 = vrot.lane.b32.xlu0 %v6914_v58, %s8476_s10  ;;  %v6256_v50 = vshll.u32 %v10536_v20, 16  ;;  %v5774_v58 = vld [vmem:[#allocation2 + $0xc] sm:$0xf]  ;;  %v10560_v3 = vrot.slane %v4552_v49, %v8627_v21  ;;  %v6260_v52 = vshrl.u32 %v10536_v20, 16  ;;  %v5841_v49 = vshll.u32 %v10579_v26, 16 }
 0x7ee   : > { %v5808_v14 = vshrl.u32 %v5774_v58, 16  ;;  %v5811_v36 = vshll.u32 %v5774_v58, 16  ;;  %v6254_v63 = vrot.slane %v6253_v25, 4  ;;  %v5821_v58 = vshrl.u32 %v10570_v45, 16 }
 0x7ef   : > { %v4671_v29 = vcombine.low %v4662_v16, %v10560_v3  ;;  %v5796_v25 = vsel %vm8911_vm4, %v5791_v53, %v10585_v39  ;;  %v5858_v51 = vrot.slane %v5856_v62, 4  ;;  %v10618_v37 = vrot.slane %v5841_v49, 5 }
 0x7f0   : > { %7271 = vrot.lane.b32.xlu1 %v7253_v8, %s8474_s7  ;;  %v10552_v8 = vrot.slane %v6232_v15, 5  ;;  %v5810_v30 = vrot.slane %v5808_v14, 4  ;;  %v5817_v15 = vshll.u32 %v10570_v45, 16  ;;  %v4539_v49 = vshrl.u32 %v10581_v23, 16 }
 0x7f1   : > { %6937 = vrot.lane.b32.xlu0 %v6921_v7, %s8476_s10  ;;  %v10567_v7 = vrot.slane %v6256_v50, 5  ;;  %v4679_v55 = vrot.slane %v4671_v29, %v8631_v34  ;;  %v10604_v50 = vld [vmem:[#allocation2] sm:$0xf] }
 0x7f2   : > { %v6235_v1 = vsel %vm8911_vm4, %v6230_v28, %v10552_v8  ;;  %v10616_v2 = vrot.slane %v5817_v15, 5  ;;  %v5861_v28 = vrot.slane %v5859_v35, 5  ;;  %v6191_v35 = vor.u32 %v6190_v47, %v10515_v12 }
 0x7f3   : > { %v6259_v48 = vsel %vm8911_vm4, %v6254_v63, %v10567_v7  ;;  %v8199_v15 = vcombine.high %v4679_v55, %v4679_v55  ;;  %v6239_v12 = vor.u32 %v6238_v42, %v10552_v8  ;;  %v6560_v42 = vld [vmem:[#allocation2 + $0x18] sm:$0xe] }
 0x7f4   : > { %7275 = vrot.lane.b32.xlu1 %v7260_v56, %s8474_s7  ;;  %v6923_v56 = vrot.slane %v6884_v44, 5  ;;  %v5838_v44 = vor.u32 %v5837_v24, %v5834_v10  ;;  %v5862_v29 = vor.u32 %v5861_v28, %v5858_v51  ;;  %v6215_v10 = vor.u32 %v6214_v17, %v10533_v4  ;;  %v6173_v51 = vld [vmem:[#allocation2 + $0x2c] sm:$0x1]  ;;  %v10672_v28 = vld [vmem:[#allocation2 + $0x10] sm:$0xf] }
 0x7f5   : > { %6270 = vrot.lane.b32.xlu0 %v6187_v22, %s8474_s7  ;;  %v5813_v22 = vrot.slane %v5811_v36, 5  ;;  %v6164_v36 = vld [vmem:[#allocation2 + $0x8] sm:$0x1]  ;;  %v4533_v24 = vshrl.u32 %v10587_v9, 16  ;;  %v10689_v47 = vrot.slane %v6239_v12, 4 }
 0x7f6   : > { %v6924_v46 = vsel %vm8808_vm15, %v6922_v43, %v6923_v56  ;;  %v5869_v56 = vshrl.u32 %v10608_v32, 16  ;;  %v6194_v43 = vshll.u32 %v6164_v36, 16  ;;  %v5839_v33 = vrot.slane %v5838_v44, 4  ;;  %v10679_v36 = vld [vmem:[#allocation2 + $0x1c] sm:$0xf] }
 0x7f7   : > { %v5814_v57 = vor.u32 %v5813_v22, %v5810_v30  ;;  %v6170_v22 = vld [vmem:[#allocation2 + $0x20] sm:$0x1]  ;;  %v5773_v17 = vld [vmem:[#allocation2 + $0x8] sm:$0x1] }
 0x7f8   : > { %6927 = vrot.lane.b32.xlu1 %v6903_v61, %s8476_s10  ;;  %v4537_v61 = vpack.i.b16 %v10581_v23, %v10594_v41  ;;  %v5844_v19 = vsel %vm8911_vm4, %v5839_v33, %v10618_v37  ;;  %v6242_v40 = vshll.u32 %v6170_v22, 16  ;;  %v10663_v23 = vld [vmem:[#allocation2 + $0x28] sm:$0xf]  ;;  %v6557_v22 = vld [vmem:[#allocation2 + $0xc] sm:$0xe]  ;;  %v5823_v33 = vrot.slane %v5821_v58, 4 }
 0x7f9   : > { %6274 = vrot.lane.b32.xlu0 %v6211_v31, %s8474_s7  ;;  %v4672_v31 = vcombine.high %v4662_v16, %v10560_v3  ;;  %v5845_v3 = vshrl.u32 %v10579_v26, 16  ;;  %v7952_v16 = vcombine.low %v4679_v55, %v4679_v55  ;;  %v5815_v59 = vrot.slane %v5814_v57, 4 }
 0x7fa   : > { %v4568_v14 = vrot.slane %v4537_v61, %v8627_v21  ;;  %v5863_v61 = vrot.slane %v5862_v29, 4  ;;  %v4532_v57 = vshrl.u32 %v10604_v50, 16  ;;  %v5803_v18 = vshll.u32 %v5773_v17, 16 }
 0x7fb   : > { %v10629_v63 = vrot.slane %v4672_v31, %v8631_v34  ;;  %v5820_v60 = vsel %vm8911_vm4, %v5815_v59, %v10616_v2  ;;  %v10691_v59 = vld [vmem:[#allocation2 + $0x4] sm:$0xf] }
 0x7fc   : > { %6931 = vrot.lane.b32.xlu1 %v6910_v11, %s8476_s10  ;;  %v4531_v11 = vpack.i.b16 %v10587_v9, %v10604_v50  ;;  %v4538_v9 = vshrl.u32 %v10594_v41, 16  ;;  %v10677_v50 = vrot.slane %v6242_v40, 5  ;;  %v4534_v44 = vpack.i.b16 %v4533_v24, %v4532_v57 }
 0x7fd   : > { %6278 = vrot.lane.b32.xlu0 %v6235_v1, %s8474_s7  ;;  %v5865_v1 = vshll.u32 %v10608_v32, 16  ;;  %v7956_v31 = vcombine.low %v10629_v63, %v10629_v63  ;;  %v8201_v8 = vcombine.high %v10629_v63, %v10629_v63  ;;  %v6601_v63 = vrot.slane %v10663_v23, 5 }
 0x7fe   : > { %v4560_v13 = vrot.slane %v4531_v11, %v8627_v21  ;;  %v6192_v11 = vrot.slane %v6191_v35, 4  ;;  %v4594_v35 = vrot.slane %v4534_v44, %v8627_v21  ;;  %v8037_v40 = vrot.slane %v6560_v42, 9 }
 0x7ff   : > { %v10640_v62 = vrot.slane %v5865_v1, 5  ;;  %v6245_v26 = vsel %vm8911_vm4, %v10689_v47, %v10677_v50 }
 0x800   : > { %6935 = vrot.lane.b32.xlu1 %v6917_v6, %s8476_s10  ;;  %v6167_v6 = vld [vmem:[#allocation2 + $0x14] sm:$0x1]  ;;  %v4569_v5 = vcombine.low %v4560_v13, %v4568_v14 }
 0x801   : > { %6282 = vrot.lane.b32.xlu0 %v6259_v48, %s8474_s7  ;;  %v6218_v30 = vshll.u32 %v6167_v6, 16  ;;  %v4570_v48 = vcombine.high %v4560_v13, %v4568_v14  ;;  %v5868_v41 = vsel %vm8911_vm4, %v5863_v61, %v10640_v62  ;;  %v4540_v14 = vpack.i.b16 %v4539_v49, %v4538_v9  ;;  %v6563_v6 = vld [vmem:[#allocation2 + $0x24] sm:$0xe] }
 0x802   : > { %v10656_v4 = vrot.slane %v4569_v5, %v8631_v34  ;;  %v6587_v5 = vrot.slane %v10672_v28, 5  ;;  %v5847_v61 = vrot.slane %v5845_v3, 4  ;;  %v5779_v3 = vld [vmem:[#allocation2 + $0x20] sm:$0x1]  ;;  %v6559_v28 = vld [vmem:[#allocation2 + $0x14] sm:$0x1] }
 0x803   : > { %v10652_v53 = vrot.slane %v6218_v30, 5  ;;  %v10659_v55 = vrot.slane %v4570_v48, %v8631_v34  ;;  %v5799_v30 = vrot.slane %v5797_v38, 4  ;;  %v6594_v48 = vrot.slane %v10679_v36, 5  ;;  %v6554_v38 = vld [vmem:[#allocation2] sm:$0xe] }
 0x804   : > { %6939 = vrot.lane.b32.xlu1 %v6924_v46, %s8476_s10  ;;  %v10650_v46 = vrot.slane %v6194_v43, 5  ;;  %v8194_v13 = vcombine.high %v10656_v4, %v10656_v4  ;;  %v6262_v43 = vrot.slane %v6260_v52, 4  ;;  %v4602_v20 = vrot.slane %v4540_v14, %v8627_v21  ;;  %v5782_v36 = vld [vmem:[#allocation2 + $0x2c] sm:$0x1] }
 0x805   : > { %5879 = vrot.lane.b32.xlu0 %v5796_v25, %s8476_s10  ;;  %v10670_v25 = vrot.slane %v6215_v10, 4  ;;  %v7948_v29 = vcombine.low %v10659_v55, %v10659_v55  ;;  %v6266_v52 = vshll.u32 %v6173_v51, 16  ;;  %v6580_v10 = vrot.slane %v10691_v59, 5  ;;  %v6556_v59 = vld [vmem:[#allocation2 + $0x8] sm:$0x1] }
 0x806   : > { %v6263_v58 = vor.u32 %v6262_v43, %v10567_v7  ;;  %v5800_v24 = vor.u32 %v5799_v30, %v10585_v39  ;;  %v8035_v12 = vrot.slane %v6554_v38, 9  ;;  %v10727_v9 = vsel %vm8808_vm15, %v8037_v40, %v6594_v48 }
 0x807   : > { %v6221_v1 = vsel %vm8911_vm4, %v10670_v25, %v10652_v53  ;;  %v8196_v7 = vcombine.high %v10659_v55, %v10659_v55  ;;  %v4603_v39 = vcombine.low %v4594_v35, %v4602_v20  ;;  %v4604_v51 = vcombine.high %v4594_v35, %v4602_v20 }
 0x808   : > { %4727 = vrot.lane.b32.xlu1 %v7952_v16, %s8470_s29  ;;  %v6197_v16 = vsel %vm8911_vm4, %v6192_v11, %v10650_v46  ;;  %v5824_v46 = vor.u32 %v5823_v33, %v10616_v2  ;;  %v10738_v11 = vrot.slane %v5803_v18, 5  ;;  %v6581_v55 = vsel %vm8808_vm15, %v8035_v12, %v6580_v10 }
 0x809   : > { %5883 = vrot.lane.b32.xlu0 %v5820_v60, %s8476_s10  ;;  %v5776_v60 = vld [vmem:[#allocation2 + $0x14] sm:$0x1]  ;;  %v5848_v50 = vor.u32 %v5847_v61, %v10618_v37  ;;  %v10746_v47 = vrot.slane %v5800_v24, 4  ;;  %v5851_v17 = vshll.u32 %v5779_v3, 16  ;;  %v4611_v43 = vrot.slane %v4603_v39, %v8631_v34 }
 0x80a   : > { %v5827_v49 = vshll.u32 %v5776_v60, 16  ;;  %v6590_v37 = vrot.slane %v6559_v28, 5  ;;  %v10763_v42 = vrot.slane %v4604_v51, %v8631_v34  ;;  %v6603_v33 = vrot.slane %v6601_v63, 4  ;;  %v5405_v28 = vld [vmem:[#allocation2 + $0x28] sm:$0xf] }
 0x80b   : > { %v6589_v35 = vrot.slane %v6587_v5, 4  ;;  %v6582_v20 = vrot.slane %v6580_v10, 4  ;;  %v6596_v53 = vrot.slane %v6594_v48, 4  ;;  %v6609_v10 = vshrl.u32 %v6581_v55, 16 }
 0x80c   : > { %4737 = vrot.lane.b32.xlu1 %v8199_v15, %s8469_s28  ;;  %v8038_v15 = vrot.slane %v6563_v6, 9  ;;  %v10742_v44 = vrot.slane %v5827_v49, 5  ;;  %v6562_v6 = vld [vmem:[#allocation2 + $0x20] sm:$0x1]  ;;  %v5806_v24 = vsel %vm8911_vm4, %v10746_v47, %v10738_v11  ;;  %v7949_v39 = vcombine.low %v10763_v42, %v10763_v42 }
 0x80d   : > { %5887 = vrot.lane.b32.xlu0 %v5844_v19, %s8476_s10  ;;  %v8036_v19 = vrot.slane %v6557_v22, 9  ;;  %v5871_v22 = vrot.slane %v5869_v56, 4  ;;  %v6597_v60 = vrot.slane %v6562_v6, 5  ;;  %v5875_v56 = vshll.u32 %v5782_v36, 16 }
 0x80e   : > { %v10715_v45 = vsel %vm8808_vm15, %v8038_v15, %v6601_v63  ;;  %v6583_v15 = vrot.slane %v6556_v59, 5  ;;  %v6591_v23 = vsel %vm8808_vm15, %v6589_v35, %v6590_v37  ;;  %v7945_v63 = vcombine.low %v4611_v43, %v4611_v43 }
 0x80f   : > { %v6588_v57 = vsel %vm8808_vm15, %v8036_v19, %v6587_v5  ;;  %v6614_v2 = vpack.i.b16 %v10715_v45, %v10727_v9  ;;  %v5872_v18 = vor.u32 %v5871_v22, %v10640_v62  ;;  %v10777_v5 = vrot.slane %v5848_v50, 4  ;;  %v5404_v22 = vld [vmem:[#allocation2 + $0x24] sm:$0xf] }
 0x810   : > { %4747 = vrot.lane.b32.xlu1 %v7956_v31, %s8464_s12  ;;  %v6565_v31 = vld [vmem:[#allocation2 + $0x2c] sm:$0x1]  ;;  %v6608_v14 = vpack.i.b16 %v6588_v57, %v6581_v55  ;;  %v6598_v48 = vsel %vm8808_vm15, %v6596_v53, %v6597_v60  ;;  %v10781_v19 = vrot.slane %v5851_v17, 5  ;;  %v10783_v40 = vrot.slane %v5875_v56, 5  ;;  %v5399_v55 = vld [vmem:[#allocation2 + $0x10] sm:$0xf] }
 0x811   : > { %5891 = vrot.lane.b32.xlu0 %v5868_v41, %s8476_s10  ;;  %v6264_v41 = vrot.slane %v6263_v58, 4  ;;  %v6645_v30 = vrot.slane %v6614_v2, %v8627_v21  ;;  %v6584_v62 = vsel %vm8808_vm15, %v6582_v20, %v6583_v15  ;;  %v6615_v3 = vshrl.u32 %v10727_v9, 16  ;;  %v10812_v2 = vld [vmem:[#allocation2 + $0x4] sm:$0xf]  ;;  %v5401_v53 = vld [vmem:[#allocation2 + $0x18] sm:$0xf] }
 0x812   : > { %v6637_v32 = vrot.slane %v6608_v14, %v8627_v21  ;;  %v6620_v49 = vpack.i.b16 %v6591_v23, %v6584_v62  ;;  %v6622_v51 = vshrl.u32 %v6591_v23, 16  ;;  %v6621_v50 = vshrl.u32 %v6584_v62, 16  ;;  %v5403_v62 = vld [vmem:[#allocation2 + $0x20] sm:$0x1] }
 0x813   : > { %v5417_v59 = vshll.u32 %v10812_v2, 16  ;;  %v6627_v60 = vshrl.u32 %v6598_v48, 16  ;;  %v5421_v15 = vshrl.u32 %v10812_v2, 16  ;;  %v5445_v35 = vshrl.u32 %v5399_v55, 16  ;;  %v5397_v2 = vld [vmem:[#allocation2 + $0x8] sm:$0x1] }
 0x814   : > { %4757 = vrot.lane.b32.xlu1 %v8201_v8, %s8465_s14  ;;  %v6268_v8 = vrot.slane %v6266_v52, 5  ;;  %v6646_v52 = vcombine.low %v6637_v32, %v6645_v30  ;;  %v6647_v38 = vcombine.high %v6637_v32, %v6645_v30  ;;  %v10827_v9 = vrot.slane %v6620_v49, %v8627_v21  ;;  %v5398_v32 = vld [vmem:[#allocation2 + $0xc] sm:$0xf] }
 0x815   : > { %4697 = vrot.lane.b32.xlu0 %v8194_v13, %s8468_s26  ;;  %v6604_v13 = vrot.slane %v6565_v31, 5  ;;  %v5854_v31 = vsel %vm8911_vm4, %v10777_v5, %v10781_v19  ;;  %v5493_v30 = vshrl.u32 %v5405_v28, 16  ;;  %v10857_v5 = vrot.slane %v5417_v59, 5 }
 0x816   : > { %v10799_v0 = vrot.slane %v6646_v52, %v8631_v34  ;;  %v5395_v52 = vld [vmem:[#allocation2] sm:$0xf]  ;;  %v5456_v49 = vshrl.u32 %v5401_v53, 16 }
 0x817   : > { %v10771_v25 = vsel %vm8808_vm15, %v6603_v33, %v6604_v13  ;;  %v5441_v13 = vshll.u32 %v5399_v55, 16  ;;  %v5406_v33 = vld [vmem:[#allocation2 + $0x2c] sm:$0x1]  ;;  %v5495_v19 = vrot.slane %v5493_v30, 4  ;;  %vm11954_vm15 = vcmask 916480  }
 0x818   : > { %6272 = vrot.lane.b32.xlu1 %v6197_v16, %s8474_s7  ;;  %v10748_v16 = vrot.slane %v5824_v46, 4  ;;  %v6626_v58 = vpack.i.b16 %v10771_v25, %v6598_v48  ;;  %v6616_v46 = vshrl.u32 %v10715_v45, 16  ;;  %v8197_v45 = vcombine.high %v10763_v42, %v10763_v42 }
 0x819   : > { %4707 = vrot.lane.b32.xlu0 %v7948_v29, %s8466_s16  ;;  %v6269_v29 = vsel %vm8911_vm4, %v6264_v41, %v6268_v8  ;;  %v8242_v14 = vcombine.high %v10799_v0, %v10799_v0  ;;  %v6628_v47 = vshrl.u32 %v10771_v25, 16  ;;  %v10847_v42 = vpack.i.b16 %v6622_v51, %v6621_v50 }
 0x81a   : > { %v5830_v12 = vsel %vm8911_vm4, %v10748_v16, %v10742_v44  ;;  %v10823_v11 = vrot.slane %v6626_v58, %v8627_v21  ;;  %v6617_v41 = vpack.i.b16 %v6616_v46, %v6615_v3  ;;  %v5402_v16 = vld [vmem:[#allocation2 + $0x1c] sm:$0xf]  ;;  %v10859_v48 = vrot.slane %v5441_v13, 5 }
 0x81b   : > { %v5465_v20 = vshll.u32 %v5402_v16, 16  ;;  %v6629_v25 = vpack.i.b16 %v6628_v47, %v6627_v60  ;;  %v5432_v58 = vshrl.u32 %v5398_v32, 16  ;;  %v5408_v3 = vshrl.u32 %v5395_v52, 16 }
 0x81c   : > { %6276 = vrot.lane.b32.xlu1 %v6221_v1, %s8474_s7  ;;  %v6610_v1 = vshrl.u32 %v6588_v57, 16  ;;  %v10801_v57 = vrot.slane %v5872_v18, 4  ;;  %v6714_v37 = vcombine.low %v10827_v9, %v10823_v11  ;;  %v10851_v56 = vrot.slane %v6617_v41, %v8627_v21 }
 0x81d   : > { %4717 = vrot.lane.b32.xlu0 %v8196_v7, %s8467_s25  ;;  %v10804_v7 = vrot.slane %v6647_v38, %v8631_v34  ;;  %v5480_v18 = vshrl.u32 %v5404_v22, 16  ;;  %v5483_v38 = vshll.u32 %v5404_v22, 16  ;;  %v5411_v51 = vshll.u32 %v5395_v52, 16 }
 0x81e   : > { %v6611_v61 = vpack.i.b16 %v6610_v1, %v6609_v10  ;;  %v5878_v8 = vsel %vm8911_vm4, %v10801_v57, %v10783_v40  ;;  %v5469_v1 = vshrl.u32 %v5402_v16, 16  ;;  %v5423_v41 = vrot.slane %v5421_v15, 4 }
 0x81f   : > { %v8042_v36 = vcombine.low %v10804_v7, %v10804_v7  ;;  %v8244_v6 = vcombine.high %v10804_v7, %v10804_v7  ;;  %v5482_v55 = vrot.slane %v5480_v18, 4  ;;  %v5475_v47 = vshll.u32 %v5403_v62, 16 }
 0x820   : > { %6280 = vrot.lane.b32.xlu1 %v6245_v26, %s8474_s7  ;;  %v8195_v26 = vcombine.high %v4611_v43, %v4611_v43  ;;  %v10830_v44 = vrot.slane %v6611_v61, %v8627_v21  ;;  %v5489_v43 = vshll.u32 %v5405_v28, 16  ;;  %v5459_v61 = vshll.u32 %v5401_v53, 16 }
 0x821   : > { %4692 = vrot.lane.b32.xlu0 %v7945_v63, %s8470_s29  ;;  %v5400_v63 = vld [vmem:[#allocation2 + $0x14] sm:$0x1]  ;;  %v5485_v28 = vrot.slane %v5483_v38, 5  ;;  %v5458_v13 = vrot.slane %v5456_v49, 4  ;;  %v10876_v22 = vrot.slane %v6714_v37, %v8631_v34  ;;  %v5427_v60 = vshll.u32 %v5397_v2, 16 }
 0x822   : > { %v10861_v10 = vrot.slane %v5489_v43, 5  ;;  %v5451_v50 = vshll.u32 %v5400_v63, 16  ;;  %v5461_v43 = vrot.slane %v5459_v61, 5  ;;  %v5410_v15 = vrot.slane %v5408_v3, 4 }
 0x823   : > { %v6680_v53 = vcombine.low %v10830_v44, %v10851_v56  ;;  %v5477_v18 = vrot.slane %v5475_v47, 5  ;;  %v8246_v40 = vcombine.high %v10876_v22, %v10876_v22  ;;  %v10901_v57 = vrot.slane %v6629_v25, %v8627_v21 }
 0x824   : > { %6284 = vrot.lane.b32.xlu1 %v6269_v29, %s8474_s7  ;;  %v6715_v29 = vcombine.high %v10827_v9, %v10823_v11  ;;  %v5471_v11 = vrot.slane %v5469_v1, 4  ;;  %v5496_v16 = vor.u32 %v5495_v19, %v10861_v10  ;;  %v5424_v1 = vor.u32 %v5423_v41, %v10857_v5 }
 0x825   : > { %4702 = vrot.lane.b32.xlu0 %v8195_v26, %s8469_s28  ;;  %v10866_v26 = vrot.slane %v5465_v20, 5  ;;  %v5486_v20 = vor.u32 %v5485_v28, %v5482_v55  ;;  %v5453_v52 = vrot.slane %v5451_v50, 5  ;;  %v5462_v19 = vor.u32 %v5461_v43, %v5458_v13 }
 0x826   : > { %v6729_v37 = vrot.slane %v6715_v29, %v8631_v34  ;;  %v5497_v38 = vrot.slane %v5496_v16, 4  ;;  %v5425_v25 = vrot.slane %v5424_v1, 4 }
 0x827   : > { %v10840_v17 = vpop.permute.xlu0 %4812  ;;  %v5487_v61 = vrot.slane %v5486_v20, 4 }
 0x828   : > { %5881 = vrot.lane.b32.xlu1 %v5806_v24, %s8476_s10  ;;  %v5435_v24 = vshll.u32 %v5398_v32, 16  ;;  %v5472_v32 = vor.u32 %v5471_v11, %v10866_v26 }
 0x829   : > { %4712 = vrot.lane.b32.xlu0 %v7949_v39, %s8464_s12  ;;  %v5499_v39 = vshll.u32 %v5406_v33, 16  ;;  %v5492_v55 = vsel %vm8911_vm4, %v5487_v61, %v10861_v10 }
 0x82a   : > { %v5437_v59 = vrot.slane %v5435_v24, 5 }
 0x82b   : > { %v10855_v23 = vpop.permute.xlu0 %4816  ;;  %v5501_v33 = vrot.slane %v5499_v39, 5  ;;  %v6739_v39 = vrot.slane %v10847_v42, %v8627_v21  ;;  %v8049_v42 = vcombine.low %v6729_v37, %v6729_v37 }
 0x82c   : > { %5885 = vrot.lane.b32.xlu1 %v5830_v12, %s8476_s10  ;;  %v5447_v12 = vrot.slane %v5445_v35, 4  ;;  %v5413_v35 = vrot.slane %v5411_v51, 5  ;;  %v5463_v51 = vrot.slane %v5462_v19, 4 }
 0x82d   : > { %4722 = vrot.lane.b32.xlu0 %v8197_v45, %s8465_s14  ;;  %v5434_v45 = vrot.slane %v5432_v58, 4  ;;  %v5473_v58 = vrot.slane %v5472_v32, 4  ;;  %v10905_v24 = vsel %vm8911_vm4, %v5497_v38, %v5501_v33  ;;  %v6748_v41 = vcombine.low %v6739_v39, %v10901_v57 }
 0x82e   : > { %v10863_v46 = vpop.permute.xlu1 %4814  ;;  %v5414_v49 = vor.u32 %v5413_v35, %v5410_v15  ;;  %v5468_v7 = vsel %vm8911_vm4, %v5463_v51, %v10866_v26  ;;  %v8248_v26 = vcombine.high %v6729_v37, %v6729_v37  ;;  %v5513_v38 = vshrl.u32 %v5492_v55, 16 }
 0x82f   : > { %v10869_v9 = vpop.permute.xlu0 %4820  ;;  %v5438_v63 = vor.u32 %v5437_v59, %v5434_v45  ;;  %v10919_v2 = vsel %vm8911_vm4, %v5473_v58, %v5477_v18  ;;  %v6681_v59 = vcombine.high %v10830_v44, %v10851_v56  ;;  %v5511_v43 = vpack.i.b16 %v5492_v55, %v5468_v7 }
 0x830   : > { %5889 = vrot.lane.b32.xlu1 %v5854_v31, %s8476_s10  ;;  %v5448_v31 = vor.u32 %v5447_v12, %v10859_v48  ;;  %v5523_v50 = vpack.i.b16 %v10905_v24, %v10919_v2  ;;  %v5415_v16 = vrot.slane %v5414_v49, 4  ;;  %v5512_v58 = vshrl.u32 %v5468_v7, 16 }
 0x831   : > { %6774 = vrot.lane.b32.xlu0 %v8242_v14, %s8468_s26  ;;  %v5439_v11 = vrot.slane %v5438_v63, 4  ;;  %v6695_v15 = vrot.slane %v6681_v59, %v8631_v34  ;;  %v6749_v63 = vcombine.high %v6739_v39, %v10901_v57 }
 0x832   : > { %v10872_v30 = vpop.permute.xlu1 %4818  ;;  %v5449_v29 = vrot.slane %v5448_v31, 4  ;;  %v6756_v31 = vrot.slane %v6748_v41, %v8631_v34  ;;  %v5610_v33 = vrot.slane %v5523_v50, %v8627_v21  ;;  %v5514_v39 = vpack.i.b16 %v5513_v38, %v5512_v58 }
 0x833   : > { %v10886_v14 = vpop.permute.xlu0 %4824  ;;  %v5444_v10 = vsel %vm8911_vm4, %v5439_v11, %v10859_v48  ;;  %v5420_v48 = vsel %vm8911_vm4, %v5415_v16, %v10857_v5  ;;  %v5542_v5 = vrot.slane %v5511_v43, %v8627_v21  ;;  %v8245_v49 = vcombine.high %v6695_v15, %v6695_v15 }
 0x834   : > { %5893 = vrot.lane.b32.xlu1 %v5878_v8, %s8476_s10  ;;  %v5429_v8 = vrot.slane %v5427_v60, 5  ;;  %v10915_v3 = vsel %vm8911_vm4, %v5449_v29, %v5453_v52  ;;  %v5505_v32 = vpack.i.b16 %v5444_v10, %v5420_v48  ;;  %v8046_v20 = vcombine.low %v6756_v31, %v6756_v31  ;;  %s7661_s10 = scalar_lea.sflag [#allocation6], %s8607_s13 }
 0x835   : > { %6784 = vrot.lane.b32.xlu0 %v8042_v36, %s8466_s16  ;;  %v6688_v36 = vrot.slane %v6680_v53, %v8631_v34  ;;  %v8043_v52 = vcombine.low %v6695_v15, %v6695_v15  ;;  %v5507_v29 = vshrl.u32 %v5444_v10, 16  ;;  %v5506_v57 = vshrl.u32 %v5420_v48, 16 }
 0x836   : > { %v10892_v62 = vpop.permute.xlu1 %4822  ;;  %v10935_v47 = vsel %vm8911_vm4, %v5425_v25, %v5429_v8  ;;  %v5534_v53 = vrot.slane %v5505_v32, %v8627_v21  ;;  %v6763_v11 = vrot.slane %v6749_v63, %v8631_v34  ;;  %v5525_v50 = vshrl.u32 %v10905_v24, 16  ;;  %vm11955_vm4 = vmmov %vm11954_vm15 }
 0x837   : > { %v10908_v12 = vpop.permute.xlu0 %5112  ;;  %v8039_v45 = vcombine.low %v6688_v36, %v6688_v36  ;;  %v5517_v13 = vpack.i.b16 %v10915_v3, %v10935_v47  ;;  %v8243_v56 = vcombine.high %v6688_v36, %v6688_v36  ;;  %v5508_v41 = vpack.i.b16 %v5507_v29, %v5506_v57  ;;  %vm11957_vm8 = vmmov %vm11955_vm4 }
 0x838   : > { %6809 = vrot.lane.b32.xlu1 %v8246_v40, %s8468_s26  ;;  %v5543_v18 = vcombine.low %v5534_v53, %v5542_v5  ;;  %v8247_v40 = vcombine.high %v6756_v31, %v6756_v31  ;;  %v5544_v25 = vcombine.high %v5534_v53, %v5542_v5  ;;  %v5519_v16 = vshrl.u32 %v10915_v3, 16  ;;  %vm11958_vm9 = vmmov %vm11955_vm4 }
 0x839   : > { %6794 = vrot.lane.b32.xlu0 %v8244_v6, %s8467_s25  ;;  %v5602_v27 = vrot.slane %v5517_v13, %v8627_v21  ;;  %v5576_v59 = vrot.slane %v5514_v39, %v8627_v21  ;;  %v5524_v13 = vshrl.u32 %v10919_v2, 16  ;;  %v5518_v43 = vshrl.u32 %v10935_v47, 16  ;;  %vm11961_vm2 = vmmov %vm11955_vm4 }
 0x83a   : > { %v10924_v28 = vpop.permute.xlu1 %4826  ;;  %v10982_v36 = vrot.slane %v5543_v18, %v8631_v34  ;;  %v8050_v24 = vcombine.low %v6763_v11, %v6763_v11  ;;  %v8249_v18 = vcombine.high %v6763_v11, %v6763_v11  ;;  %v4836_v63 = vpack.i.b16 %v10886_v14, %v10869_v9  ;;  %vm11962_vm3 = vmmov %vm11961_vm2 }
 0x83b   : > { %v10944_v6 = vpop.permute.xlu0 %5116  ;;  %v5611_v37 = vcombine.low %v5602_v27, %v5610_v33  ;;  %v5526_v31 = vpack.i.b16 %v5525_v50, %v5524_v13  ;;  %v5520_v15 = vpack.i.b16 %v5519_v16, %v5518_v43  ;;  %v4848_v16 = vpack.i.b16 %v10924_v28, %v10892_v62  ;;  %vm11968_vm5 = vmmov %vm11961_vm2 }
 0x83c   : > { %6819 = vrot.lane.b32.xlu1 %v8049_v42, %s8466_s16  ;;  %11947 = vst [vmem:[#allocation17_spill] sm:$0xff] %v10982_v36  ;;  %v5612_v42 = vcombine.high %v5602_v27, %v5610_v33  ;;  %v8218_v7 = vcombine.high %v10982_v36, %v10982_v36  ;;  %v4867_v11 = vrot.slane %v4836_v63, %v8627_v21  ;;  %vm11969_vm7 = vmmov %vm11961_vm2 }
 0x83d   : > { %6769 = vrot.lane.b32.xlu0 %v8039_v45, %s8470_s29  ;;  %v10976_v8 = vrot.slane %v5611_v37, %v8631_v34  ;;  %v5558_v45 = vrot.slane %v5544_v25, %v8631_v34  ;;  %v5644_v27 = vrot.slane %v5526_v31, %v8627_v21  ;;  %v5636_v53 = vrot.slane %v5520_v15, %v8627_v21 }
 0x83e   : > { %v10953_v60 = vpop.permute.xlu1 %5114  ;;  %v5626_v3 = vrot.slane %v5612_v42, %v8631_v34  ;;  %v4842_v13 = vpack.i.b16 %v10872_v30, %v10863_v46  ;;  %v4935_v31 = vrot.slane %v4848_v16, %v8627_v21 }
 0x83f   : > { %v10959_v44 = vpop.permute.xlu0 %5120  ;;  %11946 = vst [vmem:[#allocation16_spill] sm:$0xff] %v10976_v8  ;;  %v8222_v55 = vcombine.high %v10976_v8, %v10976_v8  ;;  %v7993_v32 = vcombine.low %v5558_v45, %v5558_v45  ;;  %v5645_v38 = vcombine.low %v5636_v53, %v5644_v27 }
 0x840   : > { %6829 = vrot.lane.b32.xlu1 %v8248_v26, %s8467_s25  ;;  %v5568_v26 = vrot.slane %v5508_v41, %v8627_v21  ;;  %v8000_v47 = vcombine.low %v5626_v3, %v5626_v3  ;;  %v8224_v57 = vcombine.high %v5626_v3, %v5626_v3 }
 0x841   : > { %6779 = vrot.lane.b32.xlu0 %v8243_v56, %s8469_s28  ;;  %v5653_v39 = vrot.slane %v5645_v38, %v8631_v34 }
 0x842   : > { %v10964_v35 = vpop.permute.xlu1 %5118  ;;  %v5577_v56 = vcombine.low %v5568_v26, %v5576_v59  ;;  %v5578_v58 = vcombine.high %v5568_v26, %v5576_v59  ;;  %v5646_v59 = vcombine.high %v5636_v53, %v5644_v27 }
 0x843   : > { %v10969_v1 = vpop.permute.xlu0 %5124  ;;  %v8223_v15 = vcombine.high %v5653_v39, %v5653_v39 }
 0x844   : > { %6804 = vrot.lane.b32.xlu1 %v8046_v20, %s8470_s29  ;;  %v8220_v20 = vcombine.high %v5558_v45, %v5558_v45  ;;  %v5585_v37 = vrot.slane %v5577_v56, %v8631_v34  ;;  %v5592_v41 = vrot.slane %v5578_v58, %v8631_v34  ;;  %v7997_v45 = vcombine.low %v5653_v39, %v5653_v39 }
 0x845   : > { %6789 = vrot.lane.b32.xlu0 %v8043_v52, %s8464_s12  ;;  %v5142_v39 = vpack.i.b16 %v10964_v35, %v10953_v60 }
 0x846   : > { %v10972_v19 = vpop.permute.xlu1 %5122  ;;  %v7990_v29 = vcombine.low %v5585_v37, %v5585_v37  ;;  %v8219_v42 = vcombine.high %v5585_v37, %v5585_v37  ;;  %v7994_v26 = vcombine.low %v5592_v41, %v5592_v41  ;;  %v8221_v27 = vcombine.high %v5592_v41, %v5592_v41 }
 0x847   : > { %v10979_v61 = vpop.permute.xlu0 %7261 }
 0x848   : > { %6814 = vrot.lane.b32.xlu1 %v8247_v40, %s8469_s28 }
 0x849   : > { %6799 = vrot.lane.b32.xlu0 %v8245_v49, %s8465_s14  ;;  %v4830_v49 = vpack.i.b16 %v10855_v23, %v10840_v17 }
 0x84a   : > { %v10985_v51 = vpop.permute.xlu1 %5126 }
 0x84b   : > { %v10993_v10 = vpop.permute.xlu0 %7265  ;;  %v4859_v50 = vrot.slane %v4830_v49, %v8627_v21  ;;  %v5148_v58 = vpack.i.b16 %v10985_v51, %v10972_v19 }
 0x84c   : > { %5706 = vrot.lane.b32.xlu1 %v8222_v55, %s8468_s26 }
 0x84d   : > { %5671 = vrot.lane.b32.xlu0 %v8218_v7, %s8468_s26  ;;  %v4868_v43 = vcombine.low %v4859_v50, %v4867_v11  ;;  %v4869_v37 = vcombine.high %v4859_v50, %v4867_v11 }
 0x84e   : > { %v11001_v48 = vpop.permute.xlu1 %4732 }
 0x84f   : > { %v11007_v33 = vpop.permute.xlu0 %7269  ;;  %v11063_v38 = vrot.slane %v4868_v43, %v8631_v34  ;;  %v4883_v50 = vrot.slane %v4869_v37, %v8631_v34 }
 0x850   : > { %6824 = vrot.lane.b32.xlu1 %v8050_v24, %s8464_s12  ;;  %v5136_v24 = vpack.i.b16 %v10969_v1, %v10959_v44 }
 0x851   : > { %5681 = vrot.lane.b32.xlu0 %v7993_v32, %s8466_s16  ;;  %v5130_v32 = vpack.i.b16 %v10944_v6, %v10908_v12  ;;  %11948 = vst [vmem:[#allocation19_spill] sm:$0xff] %v11063_v38  ;;  %v8202_v41 = vcombine.high %v11063_v38, %v11063_v38 }
 0x852   : > { %v11009_v2 = vpop.permute.xlu1 %4742  ;;  %v5167_v53 = vrot.slane %v5136_v24, %v8627_v21  ;;  %v4838_v24 = vshrl.u32 %v10886_v14, 16 }
 0x853   : > { %v11014_v5 = vpop.permute.xlu0 %7273 }
 0x854   : > { %5716 = vrot.lane.b32.xlu1 %v8000_v47, %s8466_s16  ;;  %v5660_v47 = vrot.slane %v5646_v59, %v8631_v34 }
 0x855   : > { %5691 = vrot.lane.b32.xlu0 %v8220_v20, %s8467_s25  ;;  %v4927_v20 = vrot.slane %v4842_v13, %v8627_v21 }
 0x856   : > { %v11018_v52 = vpop.permute.xlu1 %4752  ;;  %v8225_v13 = vcombine.high %v5660_v47, %v5660_v47 }
 0x857   : > { %v11024_v40 = vpop.permute.xlu0 %6925  ;;  %v4936_v63 = vcombine.low %v4927_v20, %v4935_v31  ;;  %v4937_v16 = vcombine.high %v4927_v20, %v4935_v31  ;;  %v4837_v20 = vshrl.u32 %v10869_v9, 16 }
 0x858   : > { %6834 = vrot.lane.b32.xlu1 %v8249_v18, %s8465_s14 }
 0x859   : > { %5666 = vrot.lane.b32.xlu0 %v7990_v29, %s8470_s29  ;;  %v5159_v29 = vrot.slane %v5130_v32, %v8627_v21  ;;  %v11084_v43 = vrot.slane %v4936_v63, %v8631_v34  ;;  %v4951_v63 = vrot.slane %v4937_v16, %v8631_v34 }
 0x85a   : > { %v11029_v25 = vpop.permute.xlu1 %7263 }
 0x85b   : > { %v11034_v55 = vpop.permute.xlu0 %6929  ;;  %v5168_v11 = vcombine.low %v5159_v29, %v5167_v53  ;;  %11949 = vst [vmem:[#allocation18_spill] sm:$0xff] %v11084_v43  ;;  %v8206_v14 = vcombine.high %v11084_v43, %v11084_v43 }
 0x85c   : > { %5726 = vrot.lane.b32.xlu1 %v8224_v57, %s8467_s25  ;;  %v8001_v57 = vcombine.low %v5660_v47, %v5660_v47  ;;  %v6943_v38 = vpack.i.b16 %v11034_v55, %v11024_v40 }
 0x85d   : > { %5676 = vrot.lane.b32.xlu0 %v8219_v42, %s8469_s28  ;;  %v11092_v31 = vrot.slane %v5168_v11, %v8631_v34 }
 0x85e   : > { %v11041_v7 = vpop.permute.xlu1 %7267 }
 0x85f   : > { %v11048_v3 = vpop.permute.xlu0 %6933  ;;  %11950 = vst [vmem:[#allocation20_spill] sm:$0xff] %v11092_v31 }
 0x860   : > { %5701 = vrot.lane.b32.xlu1 %v7997_v45, %s8470_s29  ;;  %v5235_v45 = vrot.slane %v5148_v58, %v8627_v21  ;;  %v4831_v58 = vshrl.u32 %v10840_v17, 16  ;;  %v4844_v17 = vshrl.u32 %v10872_v30, 16  ;;  %v5132_v30 = vshrl.u32 %v10944_v6, 16 }
 0x861   : > { %5686 = vrot.lane.b32.xlu0 %v7994_v26, %s8464_s12  ;;  %v5227_v26 = vrot.slane %v5142_v39, %v8627_v21  ;;  %v5169_v39 = vcombine.high %v5159_v29, %v5167_v53  ;;  %v4849_v29 = vshrl.u32 %v10892_v62, 16 }
 0x862   : > { %v11054_v56 = vpop.permute.xlu1 %7271 }
 0x863   : > { %v11060_v18 = vpop.permute.xlu0 %6937  ;;  %v5236_v47 = vcombine.low %v5227_v26, %v5235_v45 }
 0x864   : > { %5711 = vrot.lane.b32.xlu1 %v8223_v15, %s8469_s28  ;;  %v7963_v15 = vcombine.low %v4883_v50, %v4883_v50 }
 0x865   : > { %5696 = vrot.lane.b32.xlu0 %v8221_v27, %s8465_s14  ;;  %v4832_v27 = vshrl.u32 %v10855_v23, 16  ;;  %v8210_v23 = vcombine.high %v11092_v31, %v11092_v31  ;;  %v11113_v16 = vrot.slane %v5236_v47, %v8631_v34  ;;  %v4843_v47 = vshrl.u32 %v10863_v46, 16 }
 0x866   : > { %v11069_v49 = vpop.permute.xlu1 %7275 }
 0x867   : > { %v11074_v42 = vpop.permute.xlu0 %6270  ;;  %v4833_v9 = vpack.i.b16 %v4832_v27, %v4831_v58  ;;  %11951 = vst [vmem:[#allocation10_spill] sm:$0xff] %v11113_v16  ;;  %v8204_v27 = vcombine.high %v4883_v50, %v4883_v50  ;;  %v4845_v50 = vpack.i.b16 %v4844_v17, %v4843_v47  ;;  %v8208_v17 = vcombine.high %v4951_v63, %v4951_v63 }
 0x868   : > { %5721 = vrot.lane.b32.xlu1 %v8001_v57, %s8464_s12  ;;  %v4839_v57 = vpack.i.b16 %v4838_v24, %v4837_v20  ;;  %v5138_v24 = vshrl.u32 %v10969_v1, 16  ;;  %v5183_v20 = vrot.slane %v5169_v39, %v8631_v34  ;;  %v8214_v1 = vcombine.high %v11113_v16, %v11113_v16 }
 0x869   : > { %4996 = vrot.lane.b32.xlu0 %v8202_v41, %s8468_s26  ;;  %v4850_v41 = vshrl.u32 %v10924_v28, 16 }
 0x86a   : > { %v11080_v59 = vpop.permute.xlu1 %6927  ;;  %v11117_v53 = vrot.slane %v4839_v57, %v8627_v21  ;;  %v5137_v57 = vshrl.u32 %v10959_v44, 16  ;;  %v7978_v6 = vcombine.low %v5183_v20, %v5183_v20 }
 0x86b   : > { %v11089_v32 = vpop.permute.xlu0 %6274  ;;  %v4851_v58 = vpack.i.b16 %v4850_v41, %v4849_v29 }
 0x86c   : > { %5731 = vrot.lane.b32.xlu1 %v8225_v13, %s8465_s14 }
 0x86d   : > { %5006 = vrot.lane.b32.xlu0 %v7963_v15, %s8466_s16  ;;  %v7970_v15 = vcombine.low %v4951_v63, %v4951_v63  ;;  %v4969_v44 = vrot.slane %v4851_v58, %v8627_v21  ;;  %v5149_v58 = vshrl.u32 %v10972_v19, 16  ;;  %v5143_v63 = vshrl.u32 %v10953_v60, 16 }
 0x86e   : > { %v11096_v37 = vpop.permute.xlu1 %6931 }
 0x86f   : > { %v11104_v11 = vpop.permute.xlu0 %6278 }
 0x870   : > { %5031 = vrot.lane.b32.xlu1 %v8206_v14, %s8468_s26  ;;  %v4893_v14 = vrot.slane %v4833_v9, %v8627_v21  ;;  %v5131_v9 = vshrl.u32 %v10908_v12, 16  ;;  %v4961_v12 = vrot.slane %v4845_v50, %v8627_v21 }
 0x871   : > { %5296 = vrot.lane.b32.xlu0 %v8210_v23, %s8468_s26  ;;  %v5237_v23 = vcombine.high %v5227_v26, %v5235_v45  ;;  %v5150_v26 = vshrl.u32 %v10985_v51, 16 }
 0x872   : > { %v11109_v13 = vpop.permute.xlu1 %6935  ;;  %v4902_v39 = vcombine.low %v4893_v14, %v11117_v53  ;;  %v5133_v45 = vpack.i.b16 %v5132_v30, %v5131_v9  ;;  %v8212_v30 = vcombine.high %v5183_v20, %v5183_v20 }
 0x873   : > { %v11122_v28 = vpop.permute.xlu0 %6282  ;;  %v5251_v29 = vrot.slane %v5237_v23, %v8631_v34 }
 0x874   : > { %5041 = vrot.lane.b32.xlu1 %v7970_v15, %s8466_s16  ;;  %v5139_v15 = vpack.i.b16 %v5138_v24, %v5137_v57  ;;  %v4910_v24 = vrot.slane %v4902_v39, %v8631_v34  ;;  %v4970_v57 = vcombine.low %v4961_v12, %v4969_v44  ;;  %v5193_v23 = vrot.slane %v5133_v45, %v8627_v21 }
 0x875   : > { %5016 = vrot.lane.b32.xlu0 %v8204_v27, %s8467_s25  ;;  %v5144_v27 = vshrl.u32 %v10964_v35, 16  ;;  %v7985_v35 = vcombine.low %v5251_v29, %v5251_v29 }
 0x876   : > { %v11129_v62 = vpop.permute.xlu1 %6939  ;;  %v11149_v47 = vrot.slane %v5139_v15, %v8627_v21  ;;  %v7960_v15 = vcombine.low %v4910_v24, %v4910_v24  ;;  %v4978_v45 = vrot.slane %v4970_v57, %v8631_v34 }
 0x877   : > { %v11137_v46 = vpop.permute.xlu0 %5879  ;;  %v5145_v39 = vpack.i.b16 %v5144_v27, %v5143_v63 }
 0x878   : > { %5331 = vrot.lane.b32.xlu1 %v8214_v1, %s8468_s26  ;;  %v5151_v1 = vpack.i.b16 %v5150_v26, %v5149_v58  ;;  %v5202_v9 = vcombine.low %v5193_v23, %v11149_v47  ;;  %v4903_v26 = vcombine.high %v4893_v14, %v11117_v53  ;;  %v8203_v58 = vcombine.high %v4910_v24, %v4910_v24 }
 0x879   : > { %5306 = vrot.lane.b32.xlu0 %v7978_v6, %s8466_s16  ;;  %v8216_v6 = vcombine.high %v5251_v29, %v5251_v29  ;;  %v7967_v29 = vcombine.low %v4978_v45, %v4978_v45  ;;  %v8207_v24 = vcombine.high %v4978_v45, %v4978_v45  ;;  %v5203_v45 = vcombine.high %v5193_v23, %v11149_v47 }
 0x87a   : > { %v11141_v41 = vpop.permute.xlu1 %4727  ;;  %v11165_v20 = vrot.slane %v5151_v1, %v8627_v21  ;;  %v4917_v57 = vrot.slane %v4903_v26, %v8631_v34 }
 0x87b   : > { %v11153_v51 = vpop.permute.xlu0 %5883 }
 0x87c   : > { %5051 = vrot.lane.b32.xlu1 %v8208_v17, %s8467_s25  ;;  %11952 = vst [vmem:[#allocation11_spill] sm:$0xff] %v11153_v51  ;;  %v11173_v17 = vrot.slane %v5145_v39, %v8627_v21  ;;  %v8205_v31 = vcombine.high %v4917_v57, %v4917_v57 }
 0x87d   : > { %5316 = vrot.lane.b32.xlu0 %v8212_v30, %s8467_s25  ;;  %v5210_v30 = vrot.slane %v5202_v9, %v8631_v34 }
 0x87e   : > { %v11157_v50 = vpop.permute.xlu1 %4737  ;;  %v5270_v63 = vcombine.low %v11173_v17, %v11165_v20  ;;  %v5271_v8 = vcombine.high %v11173_v17, %v11165_v20 }
 0x87f   : > { %v11162_v19 = vpop.permute.xlu0 %5887  ;;  %v7975_v14 = vcombine.low %v5210_v30, %v5210_v30 }
 0x880   : > { %5341 = vrot.lane.b32.xlu1 %v7985_v35, %s8466_s16  ;;  %v4971_v35 = vcombine.high %v4961_v12, %v4969_v44  ;;  %v5278_v9 = vrot.slane %v5270_v63, %v8631_v34  ;;  %v6949_v63 = vpack.i.b16 %v11060_v18, %v11048_v3 }
 0x881   : > { %4991 = vrot.lane.b32.xlu0 %v7960_v15, %s8470_s29  ;;  %v7285_v15 = vpack.i.b16 %v11014_v5, %v11007_v33 }
 0x882   : > { %v11167_v60 = vpop.permute.xlu1 %4747  ;;  %v7982_v44 = vcombine.low %v5278_v9, %v5278_v9  ;;  %v4985_v12 = vrot.slane %v4971_v35, %v8631_v34  ;;  %v8215_v20 = vcombine.high %v5278_v9, %v5278_v9 }
 0x883   : > { %v11176_v27 = vpop.permute.xlu0 %5891  ;;  %v7316_v26 = vrot.slane %v7285_v15, %v8627_v21  ;;  %v7291_v15 = vpack.i.b16 %v11041_v7, %v11029_v25 }
 0x884   : > { %5351 = vrot.lane.b32.xlu1 %v8216_v6, %s8467_s25  ;;  %v7971_v47 = vcombine.low %v4985_v12, %v4985_v12 }
 0x885   : > { %5001 = vrot.lane.b32.xlu0 %v8203_v58, %s8469_s28  ;;  %v7964_v58 = vcombine.low %v4917_v57, %v4917_v57  ;;  %v11240_v17 = vrot.slane %v7291_v15, %v8627_v21 }
 0x886   : > { %v11181_v1 = vpop.permute.xlu1 %4757 }
 0x887   : > { %v4698_v53 = vpop.permute.xlu0 %4697 }
 0x888   : > { %5026 = vrot.lane.b32.xlu1 %v7967_v29, %s8470_s29  ;;  %v7279_v29 = vpack.i.b16 %v10993_v10, %v10979_v61 }
 0x889   : > { %5291 = vrot.lane.b32.xlu0 %v7975_v14, %s8470_s29 }
 0x88a   : > { %v11186_v39 = vpop.permute.xlu1 %6272  ;;  %v7308_v43 = vrot.slane %v7279_v29, %v8627_v21 }
 0x88b   : > { %v4708_v6 = vpop.permute.xlu0 %4707 }
 0x88c   : > { %5036 = vrot.lane.b32.xlu1 %v8207_v24, %s8469_s28  ;;  %v8211_v24 = vcombine.high %v5210_v30, %v5210_v30  ;;  %v7317_v23 = vcombine.low %v7308_v43, %v7316_v26  ;;  %v11218_v30 = vrot.slane %v6949_v63, %v8627_v21 }
 0x88d   : > { %5011 = vrot.lane.b32.xlu0 %v7964_v58, %s8464_s12  ;;  %v7297_v58 = vpack.i.b16 %v11069_v49, %v11054_v56 }
 0x88e   : > { %v11195_v16 = vpop.permute.xlu1 %6276 }
 0x88f   : > { %v4718_v14 = vpop.permute.xlu0 %4717  ;;  %v11232_v63 = vrot.slane %v7297_v58, %v8627_v21 }
 0x890   : > { %5326 = vrot.lane.b32.xlu1 %v7982_v44, %s8470_s29  ;;  %v11215_v44 = vrot.slane %v5203_v45, %v8631_v34  ;;  %v11229_v45 = vrot.slane %v6943_v38, %v8627_v21 }
 0x891   : > { %5301 = vrot.lane.b32.xlu0 %v8211_v24, %s8469_s28  ;;  %v4776_v24 = vsel %vm1065_vm6, %v10436_v54, %v11141_v41  ;;  %v6955_v41 = vpack.i.b16 %v11096_v37, %v11080_v59 }
 0x892   : > { %v11209_v35 = vpop.permute.xlu1 %6280  ;;  %11953 = vst [vmem:[#allocation12_spill] sm:$0xff] %v11215_v44  ;;  %v7979_v54 = vcombine.low %v11215_v44, %v11215_v44  ;;  %v6981_v38 = vcombine.low %v11229_v45, %v11218_v30  ;;  %v4778_v58 = vsel %vm1069_vm13, %v4776_v24, %v11001_v48  ;;  %v8209_v48 = vcombine.high %v4985_v12, %v4985_v12 }
 0x893   : > { %v4693_v29 = vpop.permute.xlu0 %4692  ;;  %v4780_v15 = vsel %vm1072_vm14, %v4778_v58, %v11157_v50  ;;  %v11267_v24 = vrot.slane %v5271_v8, %v8631_v34 }
 0x894   : > { %5046 = vrot.lane.b32.xlu1 %v7971_v47, %s8464_s12  ;;  %v4761_v36 = vsel %vm1065_vm6, %v10656_v4, %v4693_v29  ;;  %v6961_v47 = vpack.i.b16 %v11129_v62, %v11109_v13  ;;  %v11245_v4 = vrot.slane %v7317_v23, %v8631_v34  ;;  %v7385_v29 = vcombine.low %v11240_v17, %v11232_v63 }
 0x895   : > { %5021 = vrot.lane.b32.xlu0 %v8205_v31, %s8465_s14  ;;  %v4763_v31 = vsel %vm1069_vm13, %v4761_v36, %v4698_v53  ;;  %v7318_v36 = vcombine.high %v7308_v43, %v7316_v26  ;;  %v11272_v53 = vrot.slane %v6955_v41, %v8627_v21  ;;  %v11279_v12 = vrot.slane %v6981_v38, %v8631_v34 }
 0x896   : > { %v11236_v57 = vpop.permute.xlu1 %6284  ;;  %v11261_v44 = vrot.slane %v6961_v47, %v8627_v21  ;;  %v8258_v50 = vcombine.high %v11245_v4, %v11245_v4  ;;  %v7287_v38 = vshrl.u32 %v11014_v5, 16  ;;  %v7286_v5 = vshrl.u32 %v11007_v33, 16 }
 0x897   : > { %v4703_v9 = vpop.permute.xlu0 %4702  ;;  %v11296_v41 = vrot.slane %v7318_v36, %v8631_v34  ;;  %v7280_v33 = vshrl.u32 %v10979_v61, 16  ;;  %v7299_v61 = vshrl.u32 %v11069_v49, 16  ;;  %v7298_v49 = vshrl.u32 %v11054_v56, 16 }
 0x898   : > { %5336 = vrot.lane.b32.xlu1 %v8215_v20, %s8469_s28  ;;  %v4765_v23 = vsel %vm1072_vm14, %v4763_v31, %v4703_v9  ;;  %v4782_v20 = vsel %vm1075_vm0, %v4780_v15, %v11009_v2  ;;  %v7049_v26 = vcombine.low %v11272_v53, %v11261_v44  ;;  %v7986_v2 = vcombine.low %v11267_v24, %v11267_v24 }
 0x899   : > { %5311 = vrot.lane.b32.xlu0 %v7979_v54, %s8464_s12  ;;  %v4767_v47 = vsel %vm1075_vm0, %v4765_v23, %v4708_v6  ;;  %v4784_v8 = vsel %vm1078_vm1, %v4782_v20, %v11167_v60  ;;  %v11292_v6 = vrot.slane %v7385_v29, %v8631_v34  ;;  %v6982_v60 = vcombine.high %v11229_v45, %v11218_v30 }
 0x89a   : > { %v11263_v51 = vpop.permute.xlu1 %5881  ;;  %v4786_v31 = vsel %vm1081_vm12, %v4784_v8, %v11018_v52  ;;  %v8250_v23 = vcombine.high %v11279_v12, %v11279_v12  ;;  %v7281_v29 = vshrl.u32 %v10993_v10, 16  ;;  %v7386_v52 = vcombine.high %v11240_v17, %v11232_v63 }
 0x89b   : > { %v4713_v58 = vpop.permute.xlu0 %4712  ;;  %v11319_v10 = vrot.slane %v7049_v26, %v8631_v34  ;;  %v8080_v17 = vcombine.low %v11296_v41, %v11296_v41  ;;  %v6996_v20 = vrot.slane %v6982_v60, %v8631_v34  ;;  %v6950_v8 = vshrl.u32 %v11048_v3, 16 }
 0x89c   : > { %5056 = vrot.lane.b32.xlu1 %v8209_v48, %s8465_s14  ;;  %v4769_v43 = vsel %vm1078_vm1, %v4767_v47, %v4713_v58  ;;  %v4788_v48 = vsel %vm11954_vm15, %v4786_v31, %v11181_v1  ;;  %v6951_v1 = vshrl.u32 %v11060_v18, 16  ;;  %v7282_v47 = vpack.i.b16 %v7281_v29, %v7280_v33  ;;  %vm11970_vm15 = vmmov %vm11961_vm2 }
 0x89d   : > { %7445 = vrot.lane.b32.xlu0 %v8258_v50, %s8468_s26  ;;  %v4771_v9 = vsel %vm1081_vm12, %v4769_v43, %v4718_v14  ;;  %v8262_v14 = vcombine.high %v11292_v6, %v11292_v6  ;;  %v7288_v50 = vpack.i.b16 %v7287_v38, %v7286_v5  ;;  %v6945_v58 = vshrl.u32 %v11034_v55, 16 }
 0x89e   : > { %v11286_v54 = vpop.permute.xlu1 %5885  ;;  %v7050_v18 = vcombine.high %v11272_v53, %v11261_v44  ;;  %v8254_v26 = vcombine.high %v11319_v10, %v11319_v10  ;;  %v6944_v55 = vshrl.u32 %v11024_v40, 16  ;;  %v7293_v3 = vshrl.u32 %v11041_v7, 16 }
 0x89f   : > { %v4723_v15 = vpop.permute.xlu0 %4722  ;;  %v11341_v38 = vrot.slane %v7288_v50, %v8627_v21  ;;  %v6952_v60 = vpack.i.b16 %v6951_v1, %v6950_v8  ;;  %v8061_v53 = vcombine.low %v6996_v20, %v6996_v20  ;;  %v11350_v31 = vrot.slane %v7282_v47, %v8627_v21 }
 0x8a0   : > { %5346 = vrot.lane.b32.xlu1 %v7986_v2, %s8464_s12  ;;  %v4773_v30 = vsel %vm11955_vm4, %v4771_v9, %v4723_v15  ;;  %v7400_v2 = vrot.slane %v7386_v52, %v8631_v34  ;;  %v7292_v9 = vshrl.u32 %v11029_v25, 16  ;;  %v6946_v15 = vpack.i.b16 %v6945_v58, %v6944_v55  ;;  %vm11971_vm4 = vmmov %vm11961_vm2 }
 0x8a1   : > { %v7959_v45 = vcombine.low %v4773_v30, %v4788_v48  ;;  %7109 = vrot.lane.b32.xlu0 %v8250_v23, %s8468_s26  ;;  %v7300_v23 = vpack.i.b16 %v7299_v61, %v7298_v49  ;;  %v6963_v29 = vshrl.u32 %v11129_v62, 16  ;;  %v7064_v56 = vrot.slane %v7050_v18, %v8631_v34 }
 0x8a2   : > { %v11313_v36 = vpop.permute.xlu1 %5889  ;;  %v8087_v7 = vcombine.low %v7400_v2, %v7400_v2  ;;  %v7351_v5 = vcombine.low %v11350_v31, %v11341_v38  ;;  %v8260_v48 = vcombine.high %v11296_v41, %v11296_v41  ;;  %v7294_v30 = vpack.i.b16 %v7293_v3, %v7292_v9 }
 0x8a3   : > { %4795 = vst [vmem:[#allocation3 + $0x8] sm:$0x33] %v7959_v45  ;;  %v11324_v63 = vpop.permute.xlu0 %6774  ;;  %v11363_v25 = vrot.slane %v6952_v60, %v8627_v21  ;;  %v6957_v52 = vshrl.u32 %v11096_v37, 16  ;;  %v6962_v62 = vshrl.u32 %v11109_v13, 16  ;;  %v11374_v33 = vrot.slane %v7300_v23, %v8627_v21 }
 0x8a4   : > { %7480 = vrot.lane.b32.xlu1 %v8262_v14, %s8468_s26  ;;  %v11371_v14 = vrot.slane %v6946_v15, %v8627_v21  ;;  %v6956_v41 = vshrl.u32 %v11080_v59, 16  ;;  %v8068_v37 = vcombine.low %v7064_v56, %v7064_v56  ;;  %v7359_v13 = vrot.slane %v7351_v5, %v8631_v34 }
 0x8a5   : > { %7455 = vrot.lane.b32.xlu0 %v8080_v17, %s8466_s16  ;;  %v6964_v50 = vpack.i.b16 %v6963_v29, %v6962_v62  ;;  %v11382_v17 = vrot.slane %v7294_v30, %v8627_v21  ;;  %v8252_v61 = vcombine.high %v6996_v20, %v6996_v20  ;;  %v8264_v55 = vcombine.high %v7400_v2, %v7400_v2 }
 0x8a6   : > { %v11334_v43 = vpop.permute.xlu1 %5893  ;;  %v7015_v47 = vcombine.low %v11371_v14, %v11363_v25  ;;  %v6958_v58 = vpack.i.b16 %v6957_v52, %v6956_v41  ;;  %v8077_v60 = vcombine.low %v7359_v13, %v7359_v13  ;;  %v6306_v9 = vpack.i.b16 %v11236_v57, %v11209_v35 }
 0x8a7   : > { %v11347_v44 = vpop.permute.xlu0 %6784  ;;  %v7419_v59 = vcombine.low %v11382_v17, %v11374_v33  ;;  %v11390_v18 = vrot.slane %v6964_v50, %v8627_v21  ;;  %v8256_v23 = vcombine.high %v7064_v56, %v7064_v56  ;;  %v6300_v29 = vpack.i.b16 %v11195_v16, %v11186_v39 }
 0x8a8   : > { %7144 = vrot.lane.b32.xlu1 %v8254_v26, %s8468_s26  ;;  %v11396_v3 = vrot.slane %v6958_v58, %v8627_v21  ;;  %v7023_v20 = vrot.slane %v7015_v47, %v8631_v34  ;;  %v7352_v56 = vcombine.high %v11350_v31, %v11341_v38  ;;  %v7016_v31 = vcombine.high %v11371_v14, %v11363_v25 }
 0x8a9   : > { %7119 = vrot.lane.b32.xlu0 %v8061_v53, %s8466_s16  ;;  %v7427_v2 = vrot.slane %v7419_v59, %v8631_v34  ;;  %v11417_v41 = vrot.slane %v6300_v29, %v8627_v21  ;;  %v7420_v29 = vcombine.high %v11382_v17, %v11374_v33 }
 0x8aa   : > { %v11354_v40 = vpop.permute.xlu1 %6809  ;;  %v7083_v53 = vcombine.low %v11396_v3, %v11390_v18  ;;  %v8058_v5 = vcombine.low %v7023_v20, %v7023_v20 }
 0x8ab   : > { %v11368_v45 = vpop.permute.xlu0 %6794  ;;  %v8084_v52 = vcombine.low %v7427_v2, %v7427_v2 }
 0x8ac   : > { %7490 = vrot.lane.b32.xlu1 %v8087_v7, %s8466_s16  ;;  %v7091_v62 = vrot.slane %v7083_v53, %v8631_v34  ;;  %v8263_v53 = vcombine.high %v7427_v2, %v7427_v2  ;;  %v7030_v2 = vrot.slane %v7016_v31, %v8631_v34 }
 0x8ad   : > { %7465 = vrot.lane.b32.xlu0 %v8260_v48, %s8467_s25  ;;  %v11410_v48 = vrot.slane %v6306_v9, %v8627_v21  ;;  %v5915_v9 = vpack.i.b16 %v11334_v43, %v11313_v36 }
 0x8ae   : > { %v11377_v1 = vpop.permute.xlu1 %6819 }
 0x8af   : > { %v6770_v8 = vpop.permute.xlu0 %6769  ;;  %v6394_v47 = vcombine.low %v11417_v41, %v11410_v48 }
 0x8b0   : > { %7154 = vrot.lane.b32.xlu1 %v8068_v37, %s8466_s16  ;;  %v8259_v37 = vcombine.high %v7359_v13, %v7359_v13  ;;  %v6838_v59 = vsel %vm1065_vm6, %v10799_v0, %v6770_v8 }
 0x8b1   : > { %7129 = vrot.lane.b32.xlu0 %v8252_v61, %s8467_s25  ;;  %v8065_v61 = vcombine.low %v7091_v62, %v7091_v62  ;;  %v6840_v0 = vsel %vm1069_vm13, %v6838_v59, %v11324_v63  ;;  %v11443_v25 = vrot.slane %v6394_v47, %v8631_v34  ;;  %v8062_v59 = vcombine.low %v7030_v2, %v7030_v2 }
 0x8b2   : > { %v11392_v26 = vpop.permute.xlu1 %6829 }
 0x8b3   : > { %v6780_v49 = vpop.permute.xlu0 %6779 }
 0x8b4   : > { %7500 = vrot.lane.b32.xlu1 %v8264_v55, %s8467_s25  ;;  %v8251_v55 = vcombine.high %v7023_v20, %v7023_v20  ;;  %v6842_v14 = vsel %vm1072_vm14, %v6840_v0, %v6780_v49  ;;  %v6288_v49 = vpack.i.b16 %v11089_v32, %v11074_v42 }
 0x8b5   : > { %7440 = vrot.lane.b32.xlu0 %v8077_v60, %s8470_s29  ;;  %v7366_v60 = vrot.slane %v7352_v56, %v8631_v34 }
 0x8b6   : > { %v6805_v15 = vpop.permute.xlu1 %6804 }
 0x8b7   : > { %v6790_v7 = vpop.permute.xlu0 %6789  ;;  %v6853_v38 = vsel %vm1065_vm6, %v10876_v22, %v6805_v15  ;;  %v6294_v15 = vpack.i.b16 %v11122_v28, %v11104_v11 }
 0x8b8   : > { %7164 = vrot.lane.b32.xlu1 %v8256_v23, %s8467_s25  ;;  %v6855_v22 = vsel %vm1069_vm13, %v6853_v38, %v11354_v40  ;;  %v5909_v23 = vpack.i.b16 %v11286_v54, %v11263_v51  ;;  %v8081_v40 = vcombine.low %v7366_v60, %v7366_v60  ;;  %v6317_v38 = vrot.slane %v6288_v49, %v8627_v21 }
 0x8b9   : > { %7104 = vrot.lane.b32.xlu0 %v8058_v5, %s8470_s29  ;;  %v11460_v5 = vrot.slane %v5915_v9, %v8627_v21  ;;  %v11474_v47 = vrot.slane %v6294_v15, %v8627_v21 }
 0x8ba   : > { %v6815_v30 = vpop.permute.xlu1 %6814 }
 0x8bb   : > { %v6800_v50 = vpop.permute.xlu0 %6799  ;;  %v6857_v20 = vsel %vm1072_vm14, %v6855_v22, %v6815_v30  ;;  %v6844_v30 = vsel %vm1075_vm0, %v6842_v14, %v11347_v44  ;;  %v5903_v44 = vpack.i.b16 %v11176_v27, %v11162_v19  ;;  %v6326_v15 = vcombine.low %v6317_v38, %v11474_v47 }
 0x8bc   : > { %7475 = vrot.lane.b32.xlu1 %v8084_v52, %s8470_s29  ;;  %v6859_v52 = vsel %vm1075_vm0, %v6857_v20, %v11377_v1  ;;  %v6846_v33 = vsel %vm1078_vm1, %v6844_v30, %v6790_v7  ;;  %v11956_v7 = vld [vmem:[#allocation11_spill] sm:$0xff] }
 0x8bd   : > { %7450 = vrot.lane.b32.xlu0 %v8259_v37, %s8469_s28  ;;  %v8238_v37 = vcombine.high %v11443_v25, %v11443_v25  ;;  %v5897_v31 = vpack.i.b16 %v11956_v7, %v11137_v46  ;;  %v6848_v9 = vsel %vm1081_vm12, %v6846_v33, %v11368_v45  ;;  %v8261_v45 = vcombine.high %v7366_v60, %v7366_v60 }
 0x8be   : > { %v11422_v58 = vpop.permute.xlu1 %5706  ;;  %v6850_v14 = vsel %vm11957_vm8, %v6848_v9, %v6800_v50  ;;  %v8253_v60 = vcombine.high %v7030_v2, %v7030_v2  ;;  %v11513_v33 = vrot.slane %v6326_v15, %v8631_v34  ;;  %v6327_v9 = vcombine.high %v6317_v38, %v11474_v47  ;;  %vm11972_vm8 = vmmov %vm11961_vm2 }
 0x8bf   : > { %v11432_v13 = vpop.permute.xlu0 %5671  ;;  %v5926_v49 = vrot.slane %v5897_v31, %v8627_v21  ;;  %v6295_v15 = vshrl.u32 %v11104_v11, 16 }
 0x8c0   : > { %7139 = vrot.lane.b32.xlu1 %v8065_v61, %s8470_s29  ;;  %v11479_v61 = vrot.slane %v5909_v23, %v8627_v21  ;;  %v5934_v23 = vrot.slane %v5903_v44, %v8627_v21 }
 0x8c1   : > { %7114 = vrot.lane.b32.xlu0 %v8251_v55, %s8469_s28  ;;  %v11488_v55 = vrot.slane %v7420_v29, %v8631_v34 }
 0x8c2   : > { %v6825_v8 = vpop.permute.xlu1 %6824  ;;  %v6004_v11 = vcombine.high %v11479_v61, %v11460_v5 }
 0x8c3   : > { %v11452_v63 = vpop.permute.xlu0 %5681  ;;  %v6861_v17 = vsel %vm1078_vm1, %v6859_v52, %v6825_v8  ;;  %v8255_v8 = vcombine.high %v7091_v62, %v7091_v62  ;;  %v8088_v50 = vcombine.low %v11488_v55, %v11488_v55  ;;  %v5935_v52 = vcombine.low %v5926_v49, %v5934_v23 }
 0x8c4   : > { %7485 = vrot.lane.b32.xlu1 %v8263_v53, %s8469_s28  ;;  %v6003_v53 = vcombine.low %v11479_v61, %v11460_v5  ;;  %v6863_v0 = vsel %vm1081_vm12, %v6861_v17, %v11392_v26  ;;  %v6395_v26 = vcombine.high %v11417_v41, %v11410_v48  ;;  %v7084_v48 = vcombine.high %v11396_v3, %v11390_v18 }
 0x8c5   : > { %7460 = vrot.lane.b32.xlu0 %v8081_v40, %s8464_s12  ;;  %v8234_v3 = vcombine.high %v11513_v33, %v11513_v33 }
 0x8c6   : > { %v11466_v56 = vpop.permute.xlu1 %5716  ;;  %v11509_v30 = vrot.slane %v6003_v53, %v8631_v34  ;;  %v11521_v44 = vrot.slane %v6395_v26, %v8631_v34  ;;  %v11960_v53 = vld [vmem:[#allocation16_spill] sm:$0xff]  ;;  %v11543_v38 = vrot.slane %v7084_v48, %v8631_v34  ;;  %v6341_v26 = vrot.slane %v6327_v9, %v8631_v34 }
 0x8c7   : > { %v11482_v1 = vpop.permute.xlu0 %5691 }
 0x8c8   : > { %6489 = vrot.lane.b32.xlu1 %v8238_v37, %s8468_s26  ;;  %v8230_v17 = vcombine.high %v11509_v30, %v11509_v30  ;;  %v8030_v47 = vcombine.low %v11521_v44, %v11521_v44 }
 0x8c9   : > { %7124 = vrot.lane.b32.xlu0 %v8062_v59, %s8464_s12  ;;  %v11959_v59 = vld [vmem:[#allocation17_spill] sm:$0xff] }
 0x8ca   : > { %v6835_v22 = vpop.permute.xlu1 %6834 }
 0x8cb   : > { %v6865_v20 = vsel %vm11958_vm9, %v6863_v0, %v6835_v22  ;;  %v5667_v29 = vpop.permute.xlu0 %5666  ;;  %v11532_v0 = vrot.slane %v5935_v52, %v8631_v34  ;;  %v6296_v22 = vshrl.u32 %v11122_v28, 16  ;;  %vm11973_vm9 = vmmov %vm11961_vm2 }
 0x8cc   : > { %v8053_v40 = vcombine.low %v6850_v14, %v6865_v20  ;;  %7149 = vrot.lane.b32.xlu1 %v8255_v8, %s8469_s28  ;;  %v5735_v31 = vsel %vm1065_vm6, %v11959_v59, %v5667_v29  ;;  %v5936_v29 = vcombine.high %v5926_v49, %v5934_v23  ;;  %v8069_v49 = vcombine.low %v11543_v38, %v11543_v38 }
 0x8cd   : > { %7470 = vrot.lane.b32.xlu0 %v8261_v45, %s8465_s14  ;;  %v5737_v8 = vsel %vm1069_vm13, %v5735_v31, %v11432_v13  ;;  %v6290_v13 = vshrl.u32 %v11089_v32, 16  ;;  %v8226_v45 = vcombine.high %v11532_v0, %v11532_v0  ;;  %v6297_v52 = vpack.i.b16 %v6296_v22, %v6295_v15 }
 0x8ce   : > { %6872 = vst [vmem:[#allocation3 + $0x10] sm:$0x33] %v8053_v40  ;;  %v5727_v62 = vpop.permute.xlu1 %5726  ;;  %v5904_v59 = vshrl.u32 %v11162_v19, 16  ;;  %v6308_v31 = vshrl.u32 %v11236_v57, 16  ;;  %v6307_v57 = vshrl.u32 %v11209_v35, 16  ;;  %v5917_v15 = vshrl.u32 %v11334_v43, 16 }
 0x8cf   : > { %v5677_v37 = vpop.permute.xlu0 %5676  ;;  %v11571_v61 = vrot.slane %v6297_v52, %v8627_v21 }
 0x8d0   : > { %7495 = vrot.lane.b32.xlu1 %v8088_v50, %s8464_s12  ;;  %v5739_v40 = vsel %vm1072_vm14, %v5737_v8, %v5677_v37  ;;  %v6289_v50 = vshrl.u32 %v11074_v42, 16 }
 0x8d1   : > { %7134 = vrot.lane.b32.xlu0 %v8253_v60, %s8465_s14  ;;  %v5741_v37 = vsel %vm1075_vm0, %v5739_v40, %v11452_v63  ;;  %v5905_v60 = vshrl.u32 %v11176_v27, 16  ;;  %v8023_v63 = vcombine.low %v6341_v26, %v6341_v26  ;;  %v8265_v27 = vcombine.high %v11488_v55, %v11488_v55 }
 0x8d2   : > { %v5702_v41 = vpop.permute.xlu1 %5701  ;;  %v6302_v55 = vshrl.u32 %v11195_v16, 16 }
 0x8d3   : > { %v5750_v2 = vsel %vm1065_vm6, %v11960_v53, %v5702_v41  ;;  %v5687_v18 = vpop.permute.xlu0 %5686  ;;  %v6291_v41 = vpack.i.b16 %v6290_v13, %v6289_v50  ;;  %v8236_v13 = vcombine.high %v6341_v26, %v6341_v26 }
 0x8d4   : > { %6098 = vrot.lane.b32.xlu1 %v8230_v17, %s8468_s26  ;;  %v5752_v14 = vsel %vm1069_vm13, %v5750_v2, %v11422_v58  ;;  %v5743_v42 = vsel %vm1078_vm1, %v5741_v37, %v5687_v18  ;;  %v5899_v17 = vshrl.u32 %v11956_v7, 16  ;;  %v6018_v18 = vrot.slane %v6004_v11, %v8631_v34 }
 0x8d5   : > { %6454 = vrot.lane.b32.xlu0 %v8234_v3, %s8468_s26  ;;  %v5745_v53 = vsel %vm1081_vm12, %v5743_v42, %v11482_v1  ;;  %v5898_v3 = vshrl.u32 %v11137_v46, 16  ;;  %v5906_v7 = vpack.i.b16 %v5905_v60, %v5904_v59  ;;  %v6301_v46 = vshrl.u32 %v11186_v39, 16 }
 0x8d6   : > { %v5712_v20 = vpop.permute.xlu1 %5711  ;;  %v8015_v16 = vcombine.low %v6018_v18, %v6018_v18  ;;  %v5916_v39 = vshrl.u32 %v11313_v36, 16  ;;  %v5910_v11 = vshrl.u32 %v11263_v51, 16 }
 0x8d7   : > { %v5754_v28 = vsel %vm1072_vm14, %v5752_v14, %v5712_v20  ;;  %v5697_v58 = vpop.permute.xlu0 %5696  ;;  %v11592_v14 = vrot.slane %v6291_v41, %v8627_v21  ;;  %v5900_v20 = vpack.i.b16 %v5899_v17, %v5898_v3 }
 0x8d8   : > { %6499 = vrot.lane.b32.xlu1 %v8030_v47, %s8466_s16  ;;  %v5756_v32 = vsel %vm1075_vm0, %v5754_v28, %v11466_v56  ;;  %v5950_v56 = vrot.slane %v5936_v29, %v8631_v34  ;;  %v5747_v19 = vsel %vm11961_vm2, %v5745_v53, %v5697_v58  ;;  %v6309_v47 = vpack.i.b16 %v6308_v31, %v6307_v57 }
 0x8d9   : > { %6063 = vrot.lane.b32.xlu0 %v8226_v45, %s8468_s26  ;;  %v6360_v35 = vcombine.low %v11592_v14, %v11571_v61  ;;  %v11602_v29 = vrot.slane %v5906_v7, %v8627_v21  ;;  %v6303_v58 = vpack.i.b16 %v6302_v55, %v6301_v46  ;;  %v5911_v45 = vshrl.u32 %v11286_v54, 16  ;;  %s8266_s26 = sshll.u32 %s8530_s22, 7 }
 0x8da   : > { %v5722_v23 = vpop.permute.xlu1 %5721  ;;  %v5960_v50 = vrot.slane %v5900_v20, %v8627_v21  ;;  %v6427_v52 = vrot.slane %v6309_v47, %v8627_v21  ;;  %v5918_v26 = vpack.i.b16 %v5917_v15, %v5916_v39  ;;  %v8240_v54 = vcombine.high %v11521_v44, %v11521_v44  ;;  %s7673_s9 = scalar_lea.hbm %s11856_s5, %s8266_s26 }
 0x8db   : > { %v5758_v48 = vsel %vm1078_vm1, %v5756_v32, %v5722_v23  ;;  %v11567_v5 = vpop.permute.xlu0 %4996  ;;  %v6368_v36 = vrot.slane %v6360_v35, %v8631_v34  ;;  %v6419_v23 = vrot.slane %v6303_v58, %v8627_v21  ;;  %v8228_v51 = vcombine.high %v5950_v56, %v5950_v56  ;;  %v11963_v35 = vld [vmem:[#allocation20_spill] sm:$0xff] }
 0x8dc   : > { %7159 = vrot.lane.b32.xlu1 %v8069_v49, %s8464_s12  ;;  %v5760_v2 = vsel %vm1081_vm12, %v5758_v48, %v5727_v62  ;;  %v8008_v62 = vcombine.low %v5950_v56, %v5950_v56  ;;  %v5969_v32 = vcombine.low %v5960_v50, %v11602_v29  ;;  %v5912_v49 = vpack.i.b16 %v5911_v45, %v5910_v11 }
 0x8dd   : > { %6464 = vrot.lane.b32.xlu0 %v8023_v63, %s8466_s16  ;;  %v6428_v42 = vcombine.low %v6419_v23, %v6427_v52  ;;  %v6036_v48 = vrot.slane %v5918_v26, %v8627_v21  ;;  %v8257_v44 = vcombine.high %v11543_v38, %v11543_v38  ;;  %v8020_v59 = vcombine.low %v6368_v36, %v6368_v36 }
 0x8de   : > { %v5732_v9 = vpop.permute.xlu1 %5731  ;;  %v6028_v63 = vrot.slane %v5912_v49, %v8627_v21  ;;  %v8232_v53 = vcombine.high %v6018_v18, %v6018_v18  ;;  %v6429_v47 = vcombine.high %v6419_v23, %v6427_v52  ;;  %v11965_v49 = vld [vmem:[#allocation18_spill] sm:$0xff]  ;;  %vm11974_vm2 = vcmask 1041408  }
 0x8df   : > { %v5762_v22 = vsel %vm11962_vm3, %v5760_v2, %v5732_v9  ;;  %v11589_v1 = vpop.permute.xlu0 %5006  ;;  %v6436_v2 = vrot.slane %v6428_v42, %v8631_v34  ;;  %v11966_v42 = vld [vmem:[#allocation10_spill] sm:$0xff]  ;;  %vm11975_vm3 = vmmov %vm11974_vm2 }
 0x8e0   : > { %v8004_v8 = vcombine.low %v5747_v19, %v5762_v22  ;;  %7505 = vrot.lane.b32.xlu1 %v8265_v27, %s8465_s14  ;;  %v5977_v27 = vrot.slane %v5969_v32, %v8631_v34  ;;  %v6037_v31 = vcombine.low %v6028_v63, %v6036_v48  ;;  %v6361_v19 = vcombine.high %v11592_v14, %v11571_v61  ;;  %v11964_v32 = vld [vmem:[#allocation19_spill] sm:$0xff] }
 0x8e1   : > { %6073 = vrot.lane.b32.xlu0 %v8008_v62, %s8466_s16  ;;  %v8027_v3 = vcombine.low %v6436_v2, %v6436_v2  ;;  %v8235_v22 = vcombine.high %v6368_v36, %v6368_v36  ;;  %v8239_v61 = vcombine.high %v6436_v2, %v6436_v2  ;;  %v6443_v39 = vrot.slane %v6429_v47, %v8631_v34 }
 0x8e2   : > { %v5768_v40 = vrot.slane %v8004_v8, 6  ;;  %v11596_v28 = vpop.permute.xlu1 %5031  ;;  %v8005_v21 = vcombine.low %v5977_v27, %v5977_v27  ;;  %v6045_v7 = vrot.slane %v6037_v31, %v8631_v34  ;;  %v5970_v8 = vcombine.high %v5960_v50, %v11602_v29 }
 0x8e3   : > { %v11607_v43 = vpop.permute.xlu0 %5296  ;;  %v8227_v20 = vcombine.high %v5977_v27, %v5977_v27  ;;  %v6375_v46 = vrot.slane %v6361_v19, %v8631_v34  ;;  %v6038_v29 = vcombine.high %v6028_v63, %v6036_v48 }
 0x8e4   : > { %5770 = vst [vmem:[#allocation3] sm:$0xcc] %v5768_v40  ;;  %6108 = vrot.lane.b32.xlu1 %v8015_v16, %s8466_s16  ;;  %v8012_v57 = vcombine.low %v6045_v7, %v6045_v7  ;;  %v5984_v16 = vrot.slane %v5970_v8, %v8631_v34  ;;  %v8231_v45 = vcombine.high %v6045_v7, %v6045_v7 }
 0x8e5   : > { %6474 = vrot.lane.b32.xlu0 %v8236_v13, %s8467_s25  ;;  %v8024_v40 = vcombine.low %v6375_v46, %v6375_v46  ;;  %v6052_v36 = vrot.slane %v6038_v29, %v8631_v34 }
 0x8e6   : > { %v11612_v37 = vpop.permute.xlu1 %5041  ;;  %v8009_v11 = vcombine.low %v5984_v16, %v5984_v16  ;;  %v8229_v7 = vcombine.high %v5984_v16, %v5984_v16 }
 0x8e7   : > { %v11621_v60 = vpop.permute.xlu0 %5016 }
 0x8e8   : > { %6509 = vrot.lane.b32.xlu1 %v8240_v54, %s8467_s25  ;;  %v8031_v54 = vcombine.low %v6443_v39, %v6443_v39 }
 0x8e9   : > { %6083 = vrot.lane.b32.xlu0 %v8228_v51, %s8467_s25 }
 0x8ea   : > { %v5332_v41 = vpop.permute.xlu1 %5331 }
 0x8eb   : > { %v11629_v17 = vpop.permute.xlu0 %5306 }
 0x8ec   : > { %7169 = vrot.lane.b32.xlu1 %v8257_v44, %s8465_s14  ;;  %v8237_v44 = vcombine.high %v6375_v46, %v6375_v46 }
 0x8ed   : > { %6449 = vrot.lane.b32.xlu0 %v8020_v59, %s8470_s29 }
 0x8ee   : > { %v11632_v56 = vpop.permute.xlu1 %5051 }
 0x8ef   : > { %v11637_v38 = vpop.permute.xlu0 %5316 }
 0x8f0   : > { %6118 = vrot.lane.b32.xlu1 %v8232_v53, %s8467_s25  ;;  %v8016_v53 = vcombine.low %v6052_v36, %v6052_v36 }
 0x8f1   : > { %6058 = vrot.lane.b32.xlu0 %v8005_v21, %s8470_s29 }
 0x8f2   : > { %v11639_v9 = vpop.permute.xlu1 %5341 }
 0x8f3   : > { %v4992_v18 = vpop.permute.xlu0 %4991 }
 0x8f4   : > { %6484 = vrot.lane.b32.xlu1 %v8027_v3, %s8470_s29  ;;  %v5060_v23 = vsel %vm1065_vm6, %v11964_v32, %v4992_v18  ;;  %v8241_v18 = vcombine.high %v6443_v39, %v6443_v39  ;;  %v7550_v39 = vld [vmem:[%s11855_s4] sm:$0xf] }
 0x8f5   : > { %6459 = vrot.lane.b32.xlu0 %v8235_v22, %s8469_s28  ;;  %v5062_v34 = vsel %vm1069_vm13, %v5060_v23, %v11567_v5 }
 0x8f6   : > { %v11646_v55 = vpop.permute.xlu1 %5351 }
 0x8f7   : > { %v5002_v62 = vpop.permute.xlu0 %5001 }
 0x8f8   : > { %6093 = vrot.lane.b32.xlu1 %v8012_v57, %s8470_s29  ;;  %v5064_v21 = vsel %vm1072_vm14, %v5062_v34, %v5002_v62  ;;  %v11967_v62 = vld [vmem:[#allocation12_spill] sm:$0xff] }
 0x8f9   : > { %6068 = vrot.lane.b32.xlu0 %v8227_v20, %s8469_s28  ;;  %v5066_v5 = vsel %vm1075_vm0, %v5064_v21, %v11589_v1  ;;  %v8213_v20 = vcombine.high %v11967_v62, %v11967_v62 }
 0x8fa   : > { %v5027_v15 = vpop.permute.xlu1 %5026 }
 0x8fb   : > { %v5292_v14 = vpop.permute.xlu0 %5291  ;;  %v5075_v51 = vsel %vm1065_vm6, %v11965_v49, %v5027_v15 }
 0x8fc   : > { %6494 = vrot.lane.b32.xlu1 %v8239_v61, %s8469_s28  ;;  %v5360_v13 = vsel %vm1065_vm6, %v11963_v35, %v5292_v14  ;;  %v5077_v27 = vsel %vm1069_vm13, %v5075_v51, %v11596_v28  ;;  %v8233_v61 = vcombine.high %v6052_v36, %v6052_v36 }
 0x8fd   : > { %6469 = vrot.lane.b32.xlu0 %v8024_v40, %s8464_s12  ;;  %v5362_v50 = vsel %vm1069_vm13, %v5360_v13, %v11607_v43 }
 0x8fe   : > { %v5037_v58 = vpop.permute.xlu1 %5036 }
 0x8ff   : > { %v5012_v52 = vpop.permute.xlu0 %5011  ;;  %v5079_v3 = vsel %vm1072_vm14, %v5077_v27, %v5037_v58 }
 0x900   : > { %6103 = vrot.lane.b32.xlu1 %v8231_v45, %s8469_s28  ;;  %v5081_v28 = vsel %vm1075_vm0, %v5079_v3, %v11612_v37  ;;  %s240_s28 = scalar_lea.vmem [#allocation7], %s7752_s17 }
 0x901   : > { %6078 = vrot.lane.b32.xlu0 %v8009_v11, %s8464_s12  ;;  %s7675_s29 = sshll.u32 %s240_s28, 4  ;;  %s7676_s29 = int_to_ptr.vmem [resolvable:$true] %s7675_s29 }
 0x902   : > { %v5327_v26 = vpop.permute.xlu1 %5326  ;;  %s8397_s11 = scalar_lea.vmem %s7676_s29, 128 }
 0x903   : > { %v5375_v48 = vsel %vm1065_vm6, %v11966_v42, %v5327_v26  ;;  %v5302_v43 = vpop.permute.xlu0 %5301  ;;  %p8398_p11 = scmp.ne.s32.totalorder %s7676_s29, %s8397_s11 }
 0x904   : > { %6504 = vrot.lane.b32.xlu1 %v8031_v54, %s8464_s12  ;;  %v5377_v63 = vsel %vm1069_vm13, %v5375_v48, %v5332_v41  ;;  %v5364_v59 = vsel %vm1072_vm14, %v5362_v50, %v5302_v43 }
 0x905   : > { %6479 = vrot.lane.b32.xlu0 %v8237_v44, %s8465_s14  ;;  %v5366_v2 = vsel %vm1075_vm0, %v5364_v59, %v11629_v17  ;;  %v5068_v17 = vsel %vm1078_vm1, %v5066_v5, %v5012_v52  ;;  %p8399_p13 = pnand %p8398_p11, %p11982_p12 }
 0x906   : > { %v5047_v31 = vpop.permute.xlu1 %5046  ;;  %v5070_v46 = vsel %vm1081_vm12, %v5068_v17, %v11621_v60 }
 0x907   : > { %v5022_v41 = vpop.permute.xlu0 %5021  ;;  %v5083_v22 = vsel %vm1078_vm1, %v5081_v28, %v5047_v31  ;;  %p8400_p1 = pneg %p8399_p13 }
 0x908   : > { %6113 = vrot.lane.b32.xlu1 %v8016_v53, %s8464_s12  ;;  %v5085_v47 = vsel %vm1081_vm12, %v5083_v22, %v11632_v56  ;;  %v5072_v40 = vsel %vm11968_vm5, %v5070_v46, %v5022_v41  ;;  %v8217_v56 = vcombine.high %v11267_v24, %v11267_v24 }
 0x909   : > { %6088 = vrot.lane.b32.xlu0 %v8229_v7, %s8465_s14 }
 0x90a   : > { %v5337_v19 = vpop.permute.xlu1 %5336 }
 0x90b   : > { %v5379_v57 = vsel %vm1072_vm14, %v5377_v63, %v5337_v19  ;;  %v5312_v8 = vpop.permute.xlu0 %5311 }
 0x90c   : > { %6514 = vrot.lane.b32.xlu1 %v8241_v18, %s8465_s14  ;;  %v5381_v1 = vsel %vm1075_vm0, %v5379_v57, %v11639_v9  ;;  %v5368_v37 = vsel %vm1078_vm1, %v5366_v2, %v5312_v8 }
 0x90d   : > { %5321 = vrot.lane.b32.xlu0 %v8213_v20, %s8465_s14  ;;  %v11704_v14 = vsel %vm1081_vm12, %v5368_v37, %v11637_v38 }
 0x90e   : > { %v5057_v15 = vpop.permute.xlu1 %5056 }
 0x90f   : > { %v5087_v9 = vsel %vm11969_vm7, %v5085_v47, %v5057_v15  ;;  %v7446_v35 = vpop.permute.xlu0 %7445 }
 0x910   : > { %v7974_v16 = vcombine.low %v5072_v40, %v5087_v9  ;;  %6123 = vrot.lane.b32.xlu1 %v8233_v61, %s8465_s14 }
 0x911   : > { %7553 = vperm.xlu0 %8348, %v7550_v39  }
 0x912   : > { %v5093_v60 = vrot.slane %v7974_v16, 6  ;;  %v5347_v13 = vpop.permute.xlu1 %5346 }
 0x913   : > { %v5383_v29 = vsel %vm1078_vm1, %v5381_v1, %v5347_v13  ;;  %v7110_v38 = vpop.permute.xlu0 %7109 }
 0x914   : > { %5095 = vst [vmem:[#allocation3 + $0x8] sm:$0xcc] %v5093_v60  ;;  %5356 = vrot.lane.b32.xlu1 %v8217_v56, %s8465_s14  ;;  %v11715_v58 = vsel %vm1081_vm12, %v5383_v29, %v11646_v55 }
 0x916   : > { %v7481_v45 = vpop.permute.xlu1 %7480 }
 0x917   : > { %v7456_v50 = vpop.permute.xlu0 %7455 }
 0x91a   : > { %v7145_v52 = vpop.permute.xlu1 %7144 }
 0x91b   : > { %v7120_v11 = vpop.permute.xlu0 %7119 }
 0x91e   : > { %v7491_v24 = vpop.permute.xlu1 %7490 }
 0x91f   : > { %v7466_v26 = vpop.permute.xlu0 %7465 }
 0x922   : > { %v7155_v54 = vpop.permute.xlu1 %7154 }
 0x923   : > { %v7130_v36 = vpop.permute.xlu0 %7129 }
 0x926   : > { %v7501_v32 = vpop.permute.xlu1 %7500 }
 0x927   : > { %v7441_v23 = vpop.permute.xlu0 %7440 }
 0x928   : > { %v7509_v3 = vsel %vm1065_vm6, %v11245_v4, %v7441_v23 }
 0x929   : > { %v7511_v5 = vsel %vm1069_vm13, %v7509_v3, %v7446_v35 }
 0x92a   : > { %v7165_v49 = vpop.permute.xlu1 %7164 }
 0x92b   : > { %v7105_v51 = vpop.permute.xlu0 %7104 }
 0x92c   : > { %v7173_v47 = vsel %vm1065_vm6, %v11279_v12, %v7105_v51 }
 0x92d   : > { %v7175_v35 = vsel %vm1069_vm13, %v7173_v47, %v7110_v38 }
 0x92e   : > { %v7476_v42 = vpop.permute.xlu1 %7475 }
 0x92f   : > { %v7451_v55 = vpop.permute.xlu0 %7450  ;;  %v7524_v41 = vsel %vm1065_vm6, %v11292_v6, %v7476_v42 }
 0x930   : > { %v7526_v28 = vsel %vm1069_vm13, %v7524_v41, %v7481_v45  ;;  %v7513_v18 = vsel %vm1072_vm14, %v7511_v5, %v7451_v55 }
 0x931   : > { %v7515_v57 = vsel %vm1075_vm0, %v7513_v18, %v7456_v50 }
 0x932   : > { %v7140_v48 = vpop.permute.xlu1 %7139 }
 0x933   : > { %v7115_v43 = vpop.permute.xlu0 %7114  ;;  %v7188_v15 = vsel %vm1065_vm6, %v11319_v10, %v7140_v48 }
 0x934   : > { %v7190_v60 = vsel %vm1069_vm13, %v7188_v15, %v7145_v52  ;;  %v7177_v56 = vsel %vm1072_vm14, %v7175_v35, %v7115_v43 }
 0x935   : > { %v7179_v45 = vsel %vm1075_vm0, %v7177_v56, %v7120_v11 }
 0x936   : > { %v7486_v44 = vpop.permute.xlu1 %7485 }
 0x937   : > { %v7461_v63 = vpop.permute.xlu0 %7460  ;;  %v7528_v17 = vsel %vm1072_vm14, %v7526_v28, %v7486_v44 }
 0x938   : > { %v7530_v4 = vsel %vm1075_vm0, %v7528_v17, %v7491_v24  ;;  %v7517_v6 = vsel %vm1078_vm1, %v7515_v57, %v7461_v63 }
 0x939   : > { %v7519_v1 = vsel %vm1081_vm12, %v7517_v6, %v7466_v26 }
 0x93a   : > { %v11720_v59 = vpop.permute.xlu1 %6489 }
 0x93b   : > { %v7125_v34 = vpop.permute.xlu0 %7124 }
 0x93c   : > { %v7181_v50 = vsel %vm1078_vm1, %v7179_v45, %v7125_v34 }
 0x93d   : > { %v7183_v52 = vsel %vm1081_vm12, %v7181_v50, %v7130_v36 }
 0x93e   : > { %v7150_v27 = vpop.permute.xlu1 %7149 }
 0x93f   : > { %v7471_v31 = vpop.permute.xlu0 %7470  ;;  %v7192_v29 = vsel %vm1072_vm14, %v7190_v60, %v7150_v27 }
 0x940   : > { %v7521_v61 = vsel %vm11970_vm15, %v7519_v1, %v7471_v31  ;;  %v7194_v10 = vsel %vm1075_vm0, %v7192_v29, %v7155_v54 }
 0x942   : > { %v7496_v53 = vpop.permute.xlu1 %7495 }
 0x943   : > { %v7135_v2 = vpop.permute.xlu0 %7134  ;;  %v7532_v62 = vsel %vm1078_vm1, %v7530_v4, %v7496_v53 }
 0x944   : > { %v7534_v37 = vsel %vm1081_vm12, %v7532_v62, %v7501_v32  ;;  %v7185_v55 = vsel %vm11972_vm8, %v7183_v52, %v7135_v2 }
 0x946   : > { %v11722_v21 = vpop.permute.xlu1 %6098 }
 0x947   : > { %v11728_v7 = vpop.permute.xlu0 %6454 }
 0x94a   : > { %v11732_v19 = vpop.permute.xlu1 %6499 }
 0x94b   : > { %v11736_v22 = vpop.permute.xlu0 %6063 }
 0x94e   : > { %v7160_v8 = vpop.permute.xlu1 %7159 }
 0x94f   : > { %v6465_v20 = vpop.permute.xlu0 %6464  ;;  %v7196_v24 = vsel %vm1078_vm1, %v7194_v10, %v7160_v8 }
 0x950   : > { %v7198_v32 = vsel %vm1081_vm12, %v7196_v24, %v7165_v49 }
 0x952   : > { %v7506_v46 = vpop.permute.xlu1 %7505 }
 0x953   : > { %v7536_v40 = vsel %vm11971_vm4, %v7534_v37, %v7506_v46  ;;  %v6074_v16 = vpop.permute.xlu0 %6073 }
 0x954   : > { %v8091_v9 = vcombine.low %v7521_v61, %v7536_v40 }
 0x956   : > { %7543 = vst [vmem:[#allocation3 + $0x18] sm:$0x33] %v8091_v9  ;;  %v6109_v13 = vpop.permute.xlu1 %6108 }
 0x957   : > { %v6475_v12 = vpop.permute.xlu0 %6474 }
 0x95a   : > { %v6510_v39 = vpop.permute.xlu1 %6509 }
 0x95b   : > { %v6084_v26 = vpop.permute.xlu0 %6083 }
 0x95d   : > { %v7549_v38 = vld [vmem:[#allocation3 + $0x18] sm:$0x33] }
 0x95e   : > { %v7170_v23 = vpop.permute.xlu1 %7169  ;;  %v8097_v51 = vcombine.high %v7549_v38, %v7549_v38  ;;  %v8096_v42 = vcombine.low %v7549_v38, %v7549_v38 }
 0x95f   : > { %v7200_v11 = vsel %vm11973_vm9, %v7198_v32, %v7170_v23  ;;  %v6450_v54 = vpop.permute.xlu0 %6449 }
 0x960   : > { %v8072_v48 = vcombine.low %v7185_v55, %v7200_v11  ;;  %8098 = vmatprep.subr.msk.bf16.mxu1 %vm11974_vm2, %v8097_v51  ;;  %v7585_v43 = vsel %vm11975_vm3, %v8096_v42, 0  ;;  %v6518_v41 = vsel %vm1065_vm6, %v11513_v33, %v6450_v54  ;;  %v7544_v55 = vld [vmem:[%s11854_s3] sm:$0x3] }
 0x961   : > { %7601 = vmatpush1.bf16.msra.mxu1 %v7585_v43  ;;  %v6520_v18 = vsel %vm1069_vm13, %v6518_v41, %v11728_v7 }
 0x962   : > { %v7206_v44 = vrot.slane %v8072_v48, 6  ;;  %v6119_v63 = vpop.permute.xlu1 %6118 }
 0x963   : > { %v6059_v36 = vpop.permute.xlu0 %6058 }
 0x964   : > { %7208 = vst [vmem:[#allocation3 + $0x10] sm:$0xcc] %v7206_v44  ;;  %v6127_v4 = vsel %vm1065_vm6, %v11532_v0, %v6059_v36 }
 0x966   : > { %v6485_v34 = vpop.permute.xlu1 %6484 }
 0x967   : > { %v6460_v49 = vpop.permute.xlu0 %6459  ;;  %v6533_v5 = vsel %vm1065_vm6, %v11443_v25, %v6485_v34  ;;  %v6129_v25 = vsel %vm1069_vm13, %v6127_v4, %v11736_v22 }
 0x968   : > { %v6535_v17 = vsel %vm1069_vm13, %v6533_v5, %v11720_v59  ;;  %v6522_v8 = vsel %vm1072_vm14, %v6520_v18, %v6460_v49 }
 0x969   : > { %v6524_v7 = vsel %vm1075_vm0, %v6522_v8, %v6465_v20 }
 0x96a   : > { %v6094_v27 = vpop.permute.xlu1 %6093 }
 0x96b   : > { %v6069_v31 = vpop.permute.xlu0 %6068  ;;  %v6142_v6 = vsel %vm1065_vm6, %v11509_v30, %v6094_v27  ;;  %vm11976_vm6 = vmmov %vm11971_vm4 }
 0x96c   : > { %v6144_v59 = vsel %vm1069_vm13, %v6142_v6, %v11722_v21  ;;  %v6131_v37 = vsel %vm1072_vm14, %v6129_v25, %v6069_v31  ;;  %vm11977_vm13 = vmmov %vm11971_vm4  ;;  %v7653_v25 = vld [vmem:[%s8613_s15] sm:$0xff]  ;;  %s8401_s15 = sshll.u32 %s8478_s23, 4  ;;  %s8402_s15 = int_to_ptr.vmem [resolvable:$false] %s8401_s15 }
 0x96d   : > { %v6133_v15 = vsel %vm1075_vm0, %v6131_v37, %v6074_v16  ;;  %s8403_s22 = scalar_lea.vmem %s8402_s15, 256  ;;  %p8404_p3 = scmp.lt.s32.totalorder %s7676_s29, %s8402_s15 }
 0x96e   : > { %v6495_v53 = vpop.permute.xlu1 %6494  ;;  %p8405_p5 = scmp.lt.s32.totalorder %s8403_s22, %s8397_s11 }
 0x96f   : > { %v6470_v3 = vpop.permute.xlu0 %6469  ;;  %v6537_v33 = vsel %vm1072_vm14, %v6535_v17, %v6495_v53 }
 0x970   : > { %v6539_v1 = vsel %vm1075_vm0, %v6537_v33, %v11732_v19  ;;  %v6526_v46 = vsel %vm1078_vm1, %v6524_v7, %v6470_v3  ;;  %p8406_p8 = por %p8405_p5, %p8404_p3 }
 0x971   : > { %v6528_v22 = vsel %vm1081_vm12, %v6526_v46, %v6475_v12 }
 0x972   : > { %v6104_v2 = vpop.permute.xlu1 %6103  ;;  %p8407_p10 = pnand %p8406_p8, %p8400_p1 }
 0x973   : > { %v6079_v28 = vpop.permute.xlu0 %6078  ;;  %v6146_v30 = vsel %vm1072_vm14, %v6144_v59, %v6104_v2  ;;  %vm11978_vm14 = vmmov %vm11971_vm4 }
 0x974   : > { %v6148_v20 = vsel %vm1075_vm0, %v6146_v30, %v6109_v13  ;;  %v6135_v19 = vsel %vm1078_vm1, %v6133_v15, %v6079_v28  ;;  %vm11979_vm0 = vmmov %vm11971_vm4 }
 0x975   : > { %v6137_v29 = vsel %vm1081_vm12, %v6135_v19, %v6084_v26  ;;  %vm11981_vm5 = vmmov %vm11979_vm0 }
 0x976   : > { %v6505_v57 = vpop.permute.xlu1 %6504 }
 0x977   : > { %v6480_v62 = vpop.permute.xlu0 %6479  ;;  %v6541_v47 = vsel %vm1078_vm1, %v6539_v1, %v6505_v57 }
 0x978   : > { %v6543_v21 = vsel %vm1081_vm12, %v6541_v47, %v6510_v39  ;;  %v6530_v9 = vsel %vm11976_vm6, %v6528_v22, %v6480_v62 }
 0x97a   : > { %v6114_v0 = vpop.permute.xlu1 %6113 }
 0x97b   : > { %v6089_v61 = vpop.permute.xlu0 %6088  ;;  %v6150_v35 = vsel %vm1078_vm1, %v6148_v20, %v6114_v0  ;;  %vm11980_vm1 = vmmov %vm11979_vm0 }
 0x97c   : > { %v6152_v12 = vsel %vm1081_vm12, %v6150_v35, %v6119_v63  ;;  %v6139_v13 = vsel %vm11978_vm14, %v6137_v29, %v6089_v61 }
 0x97e   : > { %v6515_v40 = vpop.permute.xlu1 %6514 }
 0x97f   : > { %v6545_v60 = vsel %vm11977_vm13, %v6543_v21, %v6515_v40  ;;  %v5322_v39 = vpop.permute.xlu0 %5321 }
 0x980   : > { %v8034_v56 = vcombine.low %v6530_v9, %v6545_v60  ;;  %v5372_v38 = vsel %vm11980_vm1, %v11704_v14, %v5322_v39 }
 0x982   : > { %v6551_v16 = vrot.slane %v8034_v56, 6  ;;  %v6124_v45 = vpop.permute.xlu1 %6123 }
 0x983   : > { %v6154_v10 = vsel %vm11979_vm0, %v6152_v12, %v6124_v45 }
 0x984   : > { %6553 = vst [vmem:[#allocation3 + $0x20] sm:$0xcc] %v6551_v16  ;;  %v8019_v50 = vcombine.low %v6139_v13, %v6154_v10 }
 0x986   : > { %6161 = vst [vmem:[#allocation3 + $0x20] sm:$0x33] %v8019_v50  ;;  %v5357_v24 = vpop.permute.xlu1 %5356 }
 0x987   : > { %v5387_v52 = vsel %vm11981_vm5, %v11715_v58, %v5357_v24 }
 0x988   : > { %v7989_v26 = vcombine.low %v5372_v38, %v5387_v52 }
 0x98a   : > { %5394 = vst [vmem:[#allocation3] sm:$0x33] %v7989_v26 }
 0x98c   : > { %v7554_v14 = vpop.permute.xlu0 %7553 }
 0x98d   : > { %v8359_v32 = vld [vmem:[#allocation3 + $0x24] ss:$-16 sps:$4 sm:$0xff]   ;;  %v8361_v23 = vld [vmem:[#allocation3 + $0x20] ss:$-16 sps:$4 sm:$0xff]  }
 0x98e   : > { %7602 = vmatprep.subr.bf16.mxu1 %v8359_v32 }
 0x98f   : > { %7603 = vmatpush1.bf16.msra.mxu1 %v8361_v23 }
 0x991   : > { %v8362_v51 = vld [vmem:[#allocation3 + $0xc] ss:$-8 sps:$4 sm:$0xff]   ;;  %v8364_v42 = vld [vmem:[#allocation3 + $0x8] ss:$-8 sps:$4 sm:$0xff]  }
 0x992   : > { %7604 = vmatprep.subr.bf16.mxu1 %v8362_v51 }
 0x993   : > { %7605 = vmatpush1.bf16.msra.mxu1 %v8364_v42 }
 0x996   : > { %8099 = vmatmul.mubr.msk.bf16.vlgmr.msra.gmra.mxu1 %vm3900_vm10, %v7544_v55 }
 0xa56   : > { %v7624_v11 = vpop.f32.mrf.mxu1 }
 0xa57   : > { %v7625_v48 = vadd.f32 %v7624_v11, %v7554_v14 }
 0xa58   : > { %v7626_v58 = vpop.f32.mrf.mxu1 }
 0xa59   : > { %v7637_v54 = vmul.f32 %v7625_v48, %v7625_v48  ;;  %v7627_v43 = vadd.f32 %v7626_v58, %v7554_v14  ;;  %v7631_v36 = vsel %vm3952_vm11, %v7625_v48, 0.0 }
 0xa5a   : > { %v7628_v44 = vpop.f32.mrf.mxu1 }
 0xa5b   : > { %v7638_v63 = vmul.f32 %v7627_v43, %v7627_v43  ;;  %v7632_v34 = vsel %vm3952_vm11, %v7627_v43, 0.0  ;;  %v7639_v31 = vsel %vm3952_vm11, %v7637_v54, 0.0 }
 0xa5c   : > { %v7629_v49 = vpop.f32.mrf.mxu1  ;;  %v7633_v27 = vadd.f32 %v7632_v34, %v7631_v36 }
 0xa5d   : > { %v7640_v53 = vsel %vm3952_vm11, %v7638_v63, 0.0 }
 0xa5e   : > { %7634 = vadd.xlane.f32.xlu1 %v7633_v27  ;;  %v7641_v3 = vadd.f32 %v7640_v53, %v7639_v31 }
 0xa60   : > { %7642 = vadd.xlane.f32.xlu0 %v7641_v3 }
 0xae7   : > { %v7635_v2 = vpop.xlane.xlu1 %7634 }
 0xae8   : > { %v7636_v41 = vmul.f32 0.00390625, %v7635_v2 }
 0xae9   : > { %v7643_v5 = vpop.xlane.xlu0 %7642 }
 0xaea   : > { %v7644_v28 = vmul.f32 0.00390625, %v7643_v5  ;;  %v7645_v18 = vmul.f32 %v7636_v41, %v7636_v41  ;;  %v7647_v4 = vsub.f32 %v7625_v48, %v7636_v41  ;;  %v7648_v8 = vsub.f32 %v7627_v43, %v7636_v41 }
 0xaec   : > { %v7646_v17 = vsub.f32 %v7644_v28, %v7645_v18 }
 0xaee   : > { %v7649_v57 = vadd.f32 1e-05, %v7646_v17 }
 0xaf0   : > { %8367 = vrsqrt.f32 %v7649_v57 }
 0xafd   : > { %v8368_v6 = vpop.eup %8367 }
 0xafe   : > { %v7651_v33 = vmul.f32 %v8368_v6, %v7647_v4  ;;  %v7652_v62 = vmul.f32 %v8368_v6, %v7648_v8 }
 0xb00   : > { %v7656_v7 = vcombine.low %v7651_v33, %v7652_v62 }
 0xb02   : > { %v7658_v59 = vadd.f32 %v7656_v7, %v7653_v25 }
 0xb04   : > { %7659 = vst [vmem:[%s240_s28] sm:$0xff] %v7658_v59 }
 0xb05   : > { %8410 = shalt.err (!%p8407_p10)
}
 0xb06   : > { %s8411_s17 = scalar_lea.hbm %s7673_s9, 128  ;;  %s8415_s16 = scalar_lea.hbm %s11856_s5, 256 }
 0xb07   : > { %p8412_p2 = scmp.ne.s32.totalorder %s7673_s9, %s8411_s17  ;;  %p8416_p7 = scmp.lt.s32.totalorder %s7673_s9, %s11856_s5 }
 0xb08   : > { %p8417_p0 = scmp.lt.s32.totalorder %s8415_s16, %s8411_s17 }
 0xb09   : > { %p8413_p4 = pnand %p8412_p2, %p11982_p12 }
 0xb0a   : > { %p8418_p6 = por %p8417_p0, %p8416_p7 }
 0xb0b   : > { %p8414_p9 = pneg %p8413_p4 }
 0xb0d   : > { %p8419_p11 = pnand %p8418_p6, %p8414_p9 }
 0xb0f   : > { %8422 = shalt.err (!%p8419_p11)
}
 0xb10   : > { %8269 = dma.vmem_to_hbm [thread:$0]  (%p11982_p12), %s7676_s29, 128, %s7673_s9, %s7661_s10  }
 0xb11 PF: > { %s7687_s26 = sand.u32 1, %s8449_s18   ;;  %p11983_p13 = scmp.ne.s32.totalorder %s11892_s6, 0 }
 0xb12   : > { %p11984_p1 = scmp.ge.s32.totalorder %s8461_s21, 2  ;;  %s7688_s28 = scalar_lea.sflag [#allocation6], %s7687_s26 }
 0xb14   : > { %p8276_p3 = pnand %p11984_p1, %p11983_p13 }
 0xb16   : > { %p8277_p5 = pneg %p8276_p3 }
 0xb18   : > { %8444 = dma.done.wait (%p8277_p5), %s7688_s28, 128  }
 0xb19   : > { %8446 = vsyncadd (%p8277_p5), %s7688_s28, 4294967168  ;;  %p18_p8 = scmp.ge.s32.totalorder %s8534_s24, 4   ;;  %s11985_s18 = smov %s8453_s19 }
 0xb1a   : > { %s11986_s19 = smov %s8457_s20  ;;  %s11987_s20 = smov %s8546_s27 }
 0xb1b   : > { %s11988_s21 = smov %s8534_s24  ;;  %20 = sbr.rel (!%p18_p8) target bundleno = 5 (0x5), region = 85 }
 0xb20   :  { %7693 = vsyncpa [#allocation5], 1 }
 0xb21   :  { %7695 = vsyncpa [#allocation5 + $0x1], 1 }
 0xb22   :  { %7696 = vsyncpa [#allocation6], 1 }
 0xb23   :  { %7698 = vsyncpa [#allocation6 + $0x1], 1 }

</bundles_post_ra>
